<compile_context>
chip_gen: v5e
topology: v5e:2x2
jax: 0.10.0
libtpu: 0.0.40
codegen_flags: <defaults>
</compile_context>

<pallas_src>
import math
import numpy as np

import jax
import jax.numpy as jnp
from jax.experimental import pallas as pl
from jax.experimental.pallas import tpu as pltpu


# ---------------------------------------------------------------------------
# GELU (tanh approximation).  torch.nn.GELU() defaults to the exact erf form;
# the tanh form deviates by <~3e-3 and keeps the transcendental on the EUP.
# ---------------------------------------------------------------------------
def _gelu(x):
    c = 0.7978845608028654  # sqrt(2/pi)
    return 0.5 * x * (1.0 + jnp.tanh(c * (x + 0.044715 * x * x * x)))


# ---------------------------------------------------------------------------
# Host-side constant operators
# ---------------------------------------------------------------------------
def _adaptive_avg_pool_matrix(in_size, out_size):
    """PyTorch AdaptiveAvgPool windows: [floor(i*In/Out), ceil((i+1)*In/Out))."""
    P = np.zeros((out_size, in_size), dtype=np.float32)
    for i in range(out_size):
        s = (i * in_size) // out_size
        e = -((-(i + 1) * in_size) // out_size)
        P[i, s:e] = 1.0 / float(e - s)
    return P


def _dw3x3_shift_matrices(side=12):
    """S[k, t, t'] = 1 iff token t' is the (dy,dx) neighbour of token t with zero
    padding at the borders; k = (dy+1)*3 + (dx+1) matches a row-major (ky,kx)
    reshape of the 3x3 depthwise conv weights."""
    T = side * side
    S = np.zeros((9, T, T), dtype=np.float32)
    taps = [(dy, dx) for dy in (-1, 0, 1) for dx in (-1, 0, 1)]
    for k, (dy, dx) in enumerate(taps):
        for oy in range(side):
            for ox in range(side):
                iy, ix = oy + dy, ox + dx
                if 0 <= iy < side and 0 <= ix < side:
                    S[k, oy * side + ox, iy * side + ix] = 1.0
    return S


# ---------------------------------------------------------------------------
# Fused projector kernel
#   grid = (batch, hidden_block); the second axis is a reduction ("arbitrary")
#   over column blocks of W1 / row blocks of W2 with an f32 VMEM accumulator.
# ---------------------------------------------------------------------------
def _projector_kernel(x_ref, w1_ref, b1_ref, pool_ref, w2_ref, b2_ref,
                      smat_ref, w9_ref, cb_ref, o_ref, zacc_ref):
    j = pl.program_id(1)

    @pl.when(j == 0)
    def _():
        zacc_ref[...] = jnp.zeros_like(zacc_ref)

    # 1) Linear1 column block + GELU (bf16 x bf16 -> f32 on the MXU, tanh on EUP)
    h = jnp.dot(x_ref[...], w1_ref[...], preferred_element_type=jnp.float32)
    h = _gelu(h + b1_ref[...]).astype(jnp.bfloat16)                     # (N, tn)

    # 2) adaptive average pool over tokens (exact bf16 constant operator)
    p = jnp.dot(pool_ref[...], h, preferred_element_type=jnp.float32)   # (144, tn)

    # 3) Linear2: partial contraction over this hidden-dim block
    zacc_ref[...] += jnp.dot(p.astype(jnp.bfloat16), w2_ref[...],
                             preferred_element_type=jnp.float32)         # (144, C)

    # 4) finalize: bias, depthwise 3x3 conv + residual, store
    @pl.when(j == pl.num_programs(1) - 1)
    def _():
        z = zacc_ref[...] + b2_ref[...]                                  # (144, C) f32
        zb = z.astype(jnp.bfloat16)
        acc = z + cb_ref[...]                       # residual + conv bias
        for k in range(9):                          # one (144, C) tap live at a time
            tap = jnp.dot(smat_ref[k], zb, preferred_element_type=jnp.float32)
            acc = acc + tap * w9_ref[k:k + 1, :]
        o_ref[...] = acc.astype(o_ref.dtype)


# ---------------------------------------------------------------------------
# Factory: builds constants / padded bf16 weights once, returns a jitted apply.
# ---------------------------------------------------------------------------
def _round_up(n, m):
    return (n + m - 1) // m * m


def _pad_last(a, target):
    pad = target - a.shape[-1]
    if pad == 0:
        return a
    return jnp.pad(a, [(0, 0)] * (a.ndim - 1) + [(0, pad)])


def _pick_hidden_block(ouc_p, prefer=512):
    for cand in (prefer, 384, 256, 128):
        if cand <= ouc_p and ouc_p % cand == 0:
            return cand
    return ouc_p


def make_ldpnet_v2_projector(w1, b1, w2, b2, conv_w, conv_b, *,
                             num_tokens, block_ouc=512,
                             out_dtype=jnp.bfloat16):
    """Build the fused projector.

    w1: (inc, ouc), b1: (ouc,)   -- Linear1, stored as (in, out): y = x @ W + b
    w2: (ouc, ouc), b2: (ouc,)   -- Linear2
    conv_w: (3, 3, ouc)          -- depthwise 3x3 weights (torch stores
                                    (ouc,1,3,3): convert with w.squeeze(1).permute(1,2,0))
    conv_b: (ouc,)
    Returns fn: x (B, num_tokens, inc) -> (B, 144, ouc) in out_dtype.
    """
    inc, ouc = w1.shape
    h_side = int(math.sqrt(num_tokens))
    assert h_side * h_side == num_tokens, "num_tokens must be a perfect square"
    N, T = num_tokens, 144

    inc_p = _round_up(inc, 128)
    ouc_p = _round_up(ouc, 128)
    tn = _pick_hidden_block(ouc_p, block_ouc)
    nj = ouc_p // tn

    # constants + padded / bf16-cast weights, built exactly once
    p1 = _adaptive_avg_pool_matrix(h_side, 12)
    pool_mat = jnp.asarray(np.kron(p1, p1), dtype=jnp.bfloat16)        # (144, N)
    smat = jnp.asarray(_dw3x3_shift_matrices(12), dtype=jnp.bfloat16)  # (9, 144, 144)

    w1p = _pad_last(jnp.pad(jnp.asarray(w1, jnp.float32), ((0, inc_p - inc), (0, 0))),
                    ouc_p).astype(jnp.bfloat16)
    w2p = _pad_last(jnp.pad(jnp.asarray(w2, jnp.float32), ((0, ouc_p - ouc), (0, 0))),
                    ouc_p).astype(jnp.bfloat16)
    b1p = _pad_last(jnp.asarray(b1, jnp.float32).reshape(1, -1), ouc_p)
    b2p = _pad_last(jnp.asarray(b2, jnp.float32).reshape(1, -1), ouc_p)
    w9p = _pad_last(jnp.asarray(conv_w, jnp.float32).reshape(9, ouc), ouc_p)
    cbp = _pad_last(jnp.asarray(conv_b, jnp.float32).reshape(1, -1), ouc_p)

    const1 = pl.Buffered(1)  # single-buffer grid-invariant operands

    def _call(xp):
        B = xp.shape[0]
        return pl.pallas_call(
            _projector_kernel,
            out_shape=jax.ShapeDtypeStruct((B, T, ouc_p), out_dtype),
            grid_spec=pltpu.PrefetchScalarGridSpec(
                num_scalar_prefetch=0,
                grid=(B, nj),
                in_specs=[
                    pl.BlockSpec((None, N, inc_p), lambda b, j: (b, 0, 0)),  # x
                    pl.BlockSpec((inc_p, tn), lambda b, j: (0, j)),          # W1 col block
                    pl.BlockSpec((1, tn), lambda b, j: (0, j)),              # b1 block
                    pl.BlockSpec((T, N), lambda b, j: (0, 0),
                                 pipeline_mode=const1),                      # pool matrix
                    pl.BlockSpec((tn, ouc_p), lambda b, j: (j, 0)),          # W2 row block
                    pl.BlockSpec((1, ouc_p), lambda b, j: (0, 0),
                                 pipeline_mode=const1),                      # b2
                    pl.BlockSpec((9, T, T), lambda b, j: (0, 0, 0),
                                 pipeline_mode=const1),                      # shift operators
                    pl.BlockSpec((9, ouc_p), lambda b, j: (0, 0),
                                 pipeline_mode=const1),                      # conv taps
                    pl.BlockSpec((1, ouc_p), lambda b, j: (0, 0),
                                 pipeline_mode=const1),                      # conv bias
                ],
                out_specs=pl.BlockSpec((None, T, ouc_p), lambda b, j: (b, 0, 0)),
                scratch_shapes=[pltpu.VMEM((T, ouc_p), jnp.float32)],        # Linear2 acc
            ),
            # Batch axis is "parallel" (megacore shards it on v7x when B > 1);
            # the hidden-block axis is a reduction -> "arbitrary".
            compiler_params=pltpu.CompilerParams(
                dimension_semantics=("parallel", "arbitrary")),
        )(xp, w1p, b1p, pool_mat, w2p, b2p, smat, w9p, cbp)

    @jax.jit
    def apply(x):
        assert x.shape[1] == N and x.shape[2] == inc
        xp = _pad_last(x, inc_p).astype(jnp.bfloat16)
        out = _call(xp)
        return out[:, :, :ouc] if ouc_p != ouc else out

    return apply


if __name__ == "__main__":
    # Small shapes consistent with the module: 24x24 = 576 visual tokens
    # (so AdaptiveAvgPool2d((12,12)) is meaningful), mm_hidden = hidden = 32.
    B, h_in, inc, ouc = 2, 24, 32, 32
    N = h_in * h_in

    key = jax.random.PRNGKey(0)
    ks = jax.random.split(key, 7)
    x = jax.random.normal(ks[0], (B, N, inc), jnp.float32)
    w1 = jax.random.normal(ks[1], (inc, ouc), jnp.float32) / math.sqrt(inc)
    b1 = jax.random.normal(ks[2], (ouc,), jnp.float32) * 0.02
    w2 = jax.random.normal(ks[3], (ouc, ouc), jnp.float32) / math.sqrt(ouc)
    b2 = jax.random.normal(ks[4], (ouc,), jnp.float32) * 0.02
    conv_w = jax.random.normal(ks[5], (3, 3, ouc), jnp.float32) / 3.0   # (ky, kx, C)
    conv_b = jax.random.normal(ks[6], (ouc,), jnp.float32) * 0.02

    projector = make_ldpnet_v2_projector(w1, b1, w2, b2, conv_w, conv_b,
                                         num_tokens=N)
    out = jax.block_until_ready(projector(x))
    assert out.shape == (B, 144, ouc), out.shape
    assert bool(jnp.all(jnp.isfinite(out)))

    # Pure-JAX f32 reference in the ORIGINAL op order (Linear-GELU-Linear,
    # adaptive pool, depthwise 3x3 conv + residual).  Same tanh GELU, so the
    # only deviation is bf16 rounding inside the kernel.
    def reference(x, w1, b1, w2, b2, conv_w, conv_b):
        Bb, Nn, _ = x.shape
        hs = int(math.sqrt(Nn))
        h = _gelu(x @ w1 + b1)
        z = h @ w2 + b2                                               # (B, N, C)
        p1 = _adaptive_avg_pool_matrix(hs, 12)
        pool = jnp.asarray(np.kron(p1, p1), jnp.float32)              # (144, N)
        p = jnp.einsum("tn,bnc->btc", pool, z)                        # (B, 144, C)
        img = p.reshape(Bb, 12, 12, -1)
        pad = jnp.pad(img, ((0, 0), (1, 1), (1, 1), (0, 0)))
        o = img + conv_b
        for dy in (-1, 0, 1):
            for dx in (-1, 0, 1):
                o = o + pad[:, 1 + dy:13 + dy, 1 + dx:13 + dx, :] * conv_w[dy + 1, dx + 1, :]
        return o.reshape(Bb, 144, -1)

    ref = reference(x, w1, b1, w2, b2, conv_w, conv_b)
    err = float(jnp.max(jnp.abs(out.astype(jnp.float32) - ref)))
    scale = float(jnp.max(jnp.abs(ref)))
    assert err <= 0.05 * scale + 0.02, (err, scale)

    print("KERNEL_OK")
</pallas_src>

<mosaic_0001>
module attributes {stable_mosaic.version = 11 : i64} {
  func.func @_projector_kernel(%arg0: i32, %arg1: i32, %arg2: memref<1x576x128xbf16, #tpu.memory_space<vmem>>, %arg3: memref<128x128xbf16, #tpu.memory_space<vmem>>, %arg4: memref<1x128xf32, #tpu.memory_space<vmem>>, %arg5: memref<144x576xbf16, #tpu.memory_space<vmem>>, %arg6: memref<128x128xbf16, #tpu.memory_space<vmem>>, %arg7: memref<1x128xf32, #tpu.memory_space<vmem>>, %arg8: memref<9x144x144xbf16, #tpu.memory_space<vmem>>, %arg9: memref<9x128xf32, #tpu.memory_space<vmem>>, %arg10: memref<1x128xf32, #tpu.memory_space<vmem>>, %arg11: memref<1x144x128xbf16, #tpu.memory_space<vmem>>, %arg12: memref<144x128xf32, #tpu.memory_space<vmem>>) attributes {dimension_semantics = [#tpu.dimension_semantics<parallel>, #tpu.dimension_semantics<arbitrary>], iteration_bounds = array<i64: 2, 1>, scalar_prefetch = 0 : i64, scratch_operands = 1 : i64, tpu.core_type = #tpu.core_type<tc>, window_params = [{transform_indices = @transform_0, window_bounds = array<i64: 1, 576, 128>}, {transform_indices = @transform_1, window_bounds = array<i64: 128, 128>}, {transform_indices = @transform_2, window_bounds = array<i64: 1, 128>}, {pipeline_mode = #tpu.pipeline_mode<synchronous>, transform_indices = @transform_3, window_bounds = array<i64: 144, 576>}, {transform_indices = @transform_4, window_bounds = array<i64: 128, 128>}, {pipeline_mode = #tpu.pipeline_mode<synchronous>, transform_indices = @transform_5, window_bounds = array<i64: 1, 128>}, {pipeline_mode = #tpu.pipeline_mode<synchronous>, transform_indices = @transform_6, window_bounds = array<i64: 9, 144, 144>}, {pipeline_mode = #tpu.pipeline_mode<synchronous>, transform_indices = @transform_7, window_bounds = array<i64: 9, 128>}, {pipeline_mode = #tpu.pipeline_mode<synchronous>, transform_indices = @transform_8, window_bounds = array<i64: 1, 128>}, {transform_indices = @transform_9, window_bounds = array<i64: 1, 144, 128>}]} {
    %c0_i32 = arith.constant 0 : i32
    %0 = arith.cmpi eq, %arg1, %c0_i32 : i32
    %1 = arith.extui %0 : i1 to i32
    %c0_i32_0 = arith.constant 0 : i32
    %2 = arith.cmpi ne, %1, %c0_i32_0 : i32
    scf.if %2 {
      %cst_23 = arith.constant 0.000000e+00 : f32
      %35 = vector.broadcast %cst_23 : f32 to vector<144x128xf32>
      %c0_24 = arith.constant 0 : index
      %c0_25 = arith.constant 0 : index
      %36 = vector.load %arg12[%c0_24, %c0_25] : memref<144x128xf32, #tpu.memory_space<vmem>>, vector<144x128xf32>
      tpu.vector_store %arg12[%c0_24, %c0_25], %35 {strides = array<i32>} : memref<144x128xf32, #tpu.memory_space<vmem>>, vector<144x128xf32>,
    } else {
    }
    %c0 = arith.constant 0 : index
    %c0_1 = arith.constant 0 : index
    %c0_2 = arith.constant 0 : index
    %3 = vector.load %arg2[%c0, %c0_1, %c0_2] : memref<1x576x128xbf16, #tpu.memory_space<vmem>>, vector<1x576x128xbf16>
    %4 = vector.shape_cast %3 : vector<1x576x128xbf16> to vector<576x128xbf16>
    %c0_3 = arith.constant 0 : index
    %c0_4 = arith.constant 0 : index
    %5 = vector.load %arg3[%c0_3, %c0_4] : memref<128x128xbf16, #tpu.memory_space<vmem>>, vector<128x128xbf16>
    %cst = arith.constant dense<0.000000e+00> : vector<576x128xf32>
    %6 = tpu.matmul %4, %5, %cst {dimension_numbers = #tpu.dot_dimension_numbers<[1], [0], [0], [1], [0, 0, 1, 1], [], []>} : vector<576x128xbf16>, vector<128x128xbf16>, vector<576x128xf32> -> vector<576x128xf32>
    %c0_5 = arith.constant 0 : index
    %c0_6 = arith.constant 0 : index
    %7 = vector.load %arg4[%c0_5, %c0_6] : memref<1x128xf32, #tpu.memory_space<vmem>>, vector<1x128xf32>
    %8 = vector.broadcast %7 : vector<1x128xf32> to vector<576x128xf32>
    %9 = arith.addf %6, %8 : vector<576x128xf32>
    %cst_7 = arith.constant 5.000000e-01 : f32
    %10 = vector.broadcast %cst_7 : f32 to vector<576x128xf32>
    %11 = arith.mulf %10, %9 : vector<576x128xf32>
    %cst_8 = arith.constant 4.471500e-02 : f32
    %12 = vector.broadcast %cst_8 : f32 to vector<576x128xf32>
    %13 = arith.mulf %12, %9 : vector<576x128xf32>
    %14 = arith.mulf %13, %9 : vector<576x128xf32>
    %15 = arith.mulf %14, %9 : vector<576x128xf32>
    %16 = arith.addf %9, %15 : vector<576x128xf32>
    %cst_9 = arith.constant 0.797884583 : f32
    %17 = vector.broadcast %cst_9 : f32 to vector<576x128xf32>
    %18 = arith.mulf %17, %16 : vector<576x128xf32>
    %19 = math.tanh %18 : vector<576x128xf32>
    %cst_10 = arith.constant 1.000000e+00 : f32
    %20 = vector.broadcast %cst_10 : f32 to vector<576x128xf32>
    %21 = arith.addf %20, %19 : vector<576x128xf32>
    %22 = arith.mulf %11, %21 : vector<576x128xf32>
    %23 = arith.truncf %22 : vector<576x128xf32> to vector<576x128xbf16>
    %c0_11 = arith.constant 0 : index
    %c0_12 = arith.constant 0 : index
    %24 = vector.load %arg5[%c0_11, %c0_12] : memref<144x576xbf16, #tpu.memory_space<vmem>>, vector<144x576xbf16>
    %cst_13 = arith.constant dense<0.000000e+00> : vector<144x128xf32>
    %25 = tpu.matmul %24, %23, %cst_13 {dimension_numbers = #tpu.dot_dimension_numbers<[1], [0], [0], [1], [0, 0, 1, 1], [], []>} : vector<144x576xbf16>, vector<576x128xbf16>, vector<144x128xf32> -> vector<144x128xf32>
    %c0_14 = arith.constant 0 : index
    %c0_15 = arith.constant 0 : index
    %26 = vector.load %arg12[%c0_14, %c0_15] : memref<144x128xf32, #tpu.memory_space<vmem>>, vector<144x128xf32>
    %27 = arith.truncf %25 : vector<144x128xf32> to vector<144x128xbf16>
    %c0_16 = arith.constant 0 : index
    %c0_17 = arith.constant 0 : index
    %28 = vector.load %arg6[%c0_16, %c0_17] : memref<128x128xbf16, #tpu.memory_space<vmem>>, vector<128x128xbf16>
    %cst_18 = arith.constant dense<0.000000e+00> : vector<144x128xf32>
    %29 = tpu.matmul %27, %28, %cst_18 {dimension_numbers = #tpu.dot_dimension_numbers<[1], [0], [0], [1], [0, 0, 1, 1], [], []>} : vector<144x128xbf16>, vector<128x128xbf16>, vector<144x128xf32> -> vector<144x128xf32>
    %30 = arith.addf %26, %29 : vector<144x128xf32>
    %c0_19 = arith.constant 0 : index
    %c0_20 = arith.constant 0 : index
    %31 = vector.load %arg12[%c0_19, %c0_20] : memref<144x128xf32, #tpu.memory_space<vmem>>, vector<144x128xf32>
    tpu.vector_store %arg12[%c0_19, %c0_20], %30 {strides = array<i32>} : memref<144x128xf32, #tpu.memory_space<vmem>>, vector<144x128xf32>,
    %c0_i32_21 = arith.constant 0 : i32
    %32 = arith.cmpi eq, %arg1, %c0_i32_21 : i32
    %33 = arith.extui %32 : i1 to i32
    %c0_i32_22 = arith.constant 0 : i32
    %34 = arith.cmpi ne, %33, %c0_i32_22 : i32
    scf.if %34 {
      %c0_23 = arith.constant 0 : index
      %c0_24 = arith.constant 0 : index
      %35 = vector.load %arg12[%c0_23, %c0_24] : memref<144x128xf32, #tpu.memory_space<vmem>>, vector<144x128xf32>
      %c0_25 = arith.constant 0 : index
      %c0_26 = arith.constant 0 : index
      %36 = vector.load %arg7[%c0_25, %c0_26] : memref<1x128xf32, #tpu.memory_space<vmem>>, vector<1x128xf32>
      %37 = vector.broadcast %36 : vector<1x128xf32> to vector<144x128xf32>
      %38 = arith.addf %35, %37 : vector<144x128xf32>
      %39 = arith.truncf %38 : vector<144x128xf32> to vector<144x128xbf16>
      %c0_27 = arith.constant 0 : index
      %c0_28 = arith.constant 0 : index
      %40 = vector.load %arg10[%c0_27, %c0_28] : memref<1x128xf32, #tpu.memory_space<vmem>>, vector<1x128xf32>
      %41 = vector.broadcast %40 : vector<1x128xf32> to vector<144x128xf32>
      %42 = arith.addf %38, %41 : vector<144x128xf32>
      %c0_29 = arith.constant 0 : index
      %c0_30 = arith.constant 0 : index
      %c0_31 = arith.constant 0 : index
      %43 = vector.load %arg8[%c0_29, %c0_30, %c0_31] : memref<9x144x144xbf16, #tpu.memory_space<vmem>>, vector<1x144x144xbf16>
      %44 = vector.shape_cast %43 : vector<1x144x144xbf16> to vector<144x144xbf16>
      %cst_32 = arith.constant dense<0.000000e+00> : vector<144x128xf32>
      %45 = tpu.matmul %44, %39, %cst_32 {dimension_numbers = #tpu.dot_dimension_numbers<[1], [0], [0], [1], [0, 0, 1, 1], [], []>} : vector<144x144xbf16>, vector<144x128xbf16>, vector<144x128xf32> -> vector<144x128xf32>
      %c0_33 = arith.constant 0 : index
      %c0_34 = arith.constant 0 : index
      %46 = vector.load %arg9[%c0_33, %c0_34] : memref<9x128xf32, #tpu.memory_space<vmem>>, vector<1x128xf32>
      %47 = vector.broadcast %46 : vector<1x128xf32> to vector<144x128xf32>
      %48 = arith.mulf %45, %47 : vector<144x128xf32>
      %49 = arith.addf %42, %48 : vector<144x128xf32>
      %c1 = arith.constant 1 : index
      %c0_35 = arith.constant 0 : index
      %c0_36 = arith.constant 0 : index
      %50 = vector.load %arg8[%c1, %c0_35, %c0_36] : memref<9x144x144xbf16, #tpu.memory_space<vmem>>, vector<1x144x144xbf16>
      %51 = vector.shape_cast %50 : vector<1x144x144xbf16> to vector<144x144xbf16>
      %cst_37 = arith.constant dense<0.000000e+00> : vector<144x128xf32>
      %52 = tpu.matmul %51, %39, %cst_37 {dimension_numbers = #tpu.dot_dimension_numbers<[1], [0], [0], [1], [0, 0, 1, 1], [], []>} : vector<144x144xbf16>, vector<144x128xbf16>, vector<144x128xf32> -> vector<144x128xf32>
      %c1_38 = arith.constant 1 : index
      %c0_39 = arith.constant 0 : index
      %53 = vector.load %arg9[%c1_38, %c0_39] : memref<9x128xf32, #tpu.memory_space<vmem>>, vector<1x128xf32>
      %54 = vector.broadcast %53 : vector<1x128xf32> to vector<144x128xf32>
      %55 = arith.mulf %52, %54 : vector<144x128xf32>
      %56 = arith.addf %49, %55 : vector<144x128xf32>
      %c2 = arith.constant 2 : index
      %c0_40 = arith.constant 0 : index
      %c0_41 = arith.constant 0 : index
      %57 = vector.load %arg8[%c2, %c0_40, %c0_41] : memref<9x144x144xbf16, #tpu.memory_space<vmem>>, vector<1x144x144xbf16>
      %58 = vector.shape_cast %57 : vector<1x144x144xbf16> to vector<144x144xbf16>
      %cst_42 = arith.constant dense<0.000000e+00> : vector<144x128xf32>
      %59 = tpu.matmul %58, %39, %cst_42 {dimension_numbers = #tpu.dot_dimension_numbers<[1], [0], [0], [1], [0, 0, 1, 1], [], []>} : vector<144x144xbf16>, vector<144x128xbf16>, vector<144x128xf32> -> vector<144x128xf32>
      %c2_43 = arith.constant 2 : index
      %c0_44 = arith.constant 0 : index
      %60 = vector.load %arg9[%c2_43, %c0_44] : memref<9x128xf32, #tpu.memory_space<vmem>>, vector<1x128xf32>
      %61 = vector.broadcast %60 : vector<1x128xf32> to vector<144x128xf32>
      %62 = arith.mulf %59, %61 : vector<144x128xf32>
      %63 = arith.addf %56, %62 : vector<144x128xf32>
      %c3 = arith.constant 3 : index
      %c0_45 = arith.constant 0 : index
      %c0_46 = arith.constant 0 : index
      %64 = vector.load %arg8[%c3, %c0_45, %c0_46] : memref<9x144x144xbf16, #tpu.memory_space<vmem>>, vector<1x144x144xbf16>
      %65 = vector.shape_cast %64 : vector<1x144x144xbf16> to vector<144x144xbf16>
      %cst_47 = arith.constant dense<0.000000e+00> : vector<144x128xf32>
      %66 = tpu.matmul %65, %39, %cst_47 {dimension_numbers = #tpu.dot_dimension_numbers<[1], [0], [0], [1], [0, 0, 1, 1], [], []>} : vector<144x144xbf16>, vector<144x128xbf16>, vector<144x128xf32> -> vector<144x128xf32>
      %c3_48 = arith.constant 3 : index
      %c0_49 = arith.constant 0 : index
      %67 = vector.load %arg9[%c3_48, %c0_49] : memref<9x128xf32, #tpu.memory_space<vmem>>, vector<1x128xf32>
      %68 = vector.broadcast %67 : vector<1x128xf32> to vector<144x128xf32>
      %69 = arith.mulf %66, %68 : vector<144x128xf32>
      %70 = arith.addf %63, %69 : vector<144x128xf32>
      %c4 = arith.constant 4 : index
      %c0_50 = arith.constant 0 : index
      %c0_51 = arith.constant 0 : index
      %71 = vector.load %arg8[%c4, %c0_50, %c0_51] : memref<9x144x144xbf16, #tpu.memory_space<vmem>>, vector<1x144x144xbf16>
      %72 = vector.shape_cast %71 : vector<1x144x144xbf16> to vector<144x144xbf16>
      %cst_52 = arith.constant dense<0.000000e+00> : vector<144x128xf32>
      %73 = tpu.matmul %72, %39, %cst_52 {dimension_numbers = #tpu.dot_dimension_numbers<[1], [0], [0], [1], [0, 0, 1, 1], [], []>} : vector<144x144xbf16>, vector<144x128xbf16>, vector<144x128xf32> -> vector<144x128xf32>
      %c4_53 = arith.constant 4 : index
      %c0_54 = arith.constant 0 : index
      %74 = vector.load %arg9[%c4_53, %c0_54] : memref<9x128xf32, #tpu.memory_space<vmem>>, vector<1x128xf32>
      %75 = vector.broadcast %74 : vector<1x128xf32> to vector<144x128xf32>
      %76 = arith.mulf %73, %75 : vector<144x128xf32>
      %77 = arith.addf %70, %76 : vector<144x128xf32>
      %c5 = arith.constant 5 : index
      %c0_55 = arith.constant 0 : index
      %c0_56 = arith.constant 0 : index
      %78 = vector.load %arg8[%c5, %c0_55, %c0_56] : memref<9x144x144xbf16, #tpu.memory_space<vmem>>, vector<1x144x144xbf16>
      %79 = vector.shape_cast %78 : vector<1x144x144xbf16> to vector<144x144xbf16>
      %cst_57 = arith.constant dense<0.000000e+00> : vector<144x128xf32>
      %80 = tpu.matmul %79, %39, %cst_57 {dimension_numbers = #tpu.dot_dimension_numbers<[1], [0], [0], [1], [0, 0, 1, 1], [], []>} : vector<144x144xbf16>, vector<144x128xbf16>, vector<144x128xf32> -> vector<144x128xf32>
      %c5_58 = arith.constant 5 : index
      %c0_59 = arith.constant 0 : index
      %81 = vector.load %arg9[%c5_58, %c0_59] : memref<9x128xf32, #tpu.memory_space<vmem>>, vector<1x128xf32>
      %82 = vector.broadcast %81 : vector<1x128xf32> to vector<144x128xf32>
      %83 = arith.mulf %80, %82 : vector<144x128xf32>
      %84 = arith.addf %77, %83 : vector<144x128xf32>
      %c6 = arith.constant 6 : index
      %c0_60 = arith.constant 0 : index
      %c0_61 = arith.constant 0 : index
      %85 = vector.load %arg8[%c6, %c0_60, %c0_61] : memref<9x144x144xbf16, #tpu.memory_space<vmem>>, vector<1x144x144xbf16>
      %86 = vector.shape_cast %85 : vector<1x144x144xbf16> to vector<144x144xbf16>
      %cst_62 = arith.constant dense<0.000000e+00> : vector<144x128xf32>
      %87 = tpu.matmul %86, %39, %cst_62 {dimension_numbers = #tpu.dot_dimension_numbers<[1], [0], [0], [1], [0, 0, 1, 1], [], []>} : vector<144x144xbf16>, vector<144x128xbf16>, vector<144x128xf32> -> vector<144x128xf32>
      %c6_63 = arith.constant 6 : index
      %c0_64 = arith.constant 0 : index
      %88 = vector.load %arg9[%c6_63, %c0_64] : memref<9x128xf32, #tpu.memory_space<vmem>>, vector<1x128xf32>
      %89 = vector.broadcast %88 : vector<1x128xf32> to vector<144x128xf32>
      %90 = arith.mulf %87, %89 : vector<144x128xf32>
      %91 = arith.addf %84, %90 : vector<144x128xf32>
      %c7 = arith.constant 7 : index
      %c0_65 = arith.constant 0 : index
      %c0_66 = arith.constant 0 : index
      %92 = vector.load %arg8[%c7, %c0_65, %c0_66] : memref<9x144x144xbf16, #tpu.memory_space<vmem>>, vector<1x144x144xbf16>
      %93 = vector.shape_cast %92 : vector<1x144x144xbf16> to vector<144x144xbf16>
      %cst_67 = arith.constant dense<0.000000e+00> : vector<144x128xf32>
      %94 = tpu.matmul %93, %39, %cst_67 {dimension_numbers = #tpu.dot_dimension_numbers<[1], [0], [0], [1], [0, 0, 1, 1], [], []>} : vector<144x144xbf16>, vector<144x128xbf16>, vector<144x128xf32> -> vector<144x128xf32>
      %c7_68 = arith.constant 7 : index
      %c0_69 = arith.constant 0 : index
      %95 = vector.load %arg9[%c7_68, %c0_69] : memref<9x128xf32, #tpu.memory_space<vmem>>, vector<1x128xf32>
      %96 = vector.broadcast %95 : vector<1x128xf32> to vector<144x128xf32>
      %97 = arith.mulf %94, %96 : vector<144x128xf32>
      %98 = arith.addf %91, %97 : vector<144x128xf32>
      %c8 = arith.constant 8 : index
      %c0_70 = arith.constant 0 : index
      %c0_71 = arith.constant 0 : index
      %99 = vector.load %arg8[%c8, %c0_70, %c0_71] : memref<9x144x144xbf16, #tpu.memory_space<vmem>>, vector<1x144x144xbf16>
      %100 = vector.shape_cast %99 : vector<1x144x144xbf16> to vector<144x144xbf16>
      %cst_72 = arith.constant dense<0.000000e+00> : vector<144x128xf32>
      %101 = tpu.matmul %100, %39, %cst_72 {dimension_numbers = #tpu.dot_dimension_numbers<[1], [0], [0], [1], [0, 0, 1, 1], [], []>} : vector<144x144xbf16>, vector<144x128xbf16>, vector<144x128xf32> -> vector<144x128xf32>
      %c8_73 = arith.constant 8 : index
      %c0_74 = arith.constant 0 : index
      %102 = vector.load %arg9[%c8_73, %c0_74] : memref<9x128xf32, #tpu.memory_space<vmem>>, vector<1x128xf32>
      %103 = vector.broadcast %102 : vector<1x128xf32> to vector<144x128xf32>
      %104 = arith.mulf %101, %103 : vector<144x128xf32>
      %105 = arith.addf %98, %104 : vector<144x128xf32>
      %106 = arith.truncf %105 : vector<144x128xf32> to vector<144x128xbf16>
      %c0_75 = arith.constant 0 : index
      %c0_76 = arith.constant 0 : index
      %c0_77 = arith.constant 0 : index
      %107 = vector.load %arg11[%c0_75, %c0_76, %c0_77] : memref<1x144x128xbf16, #tpu.memory_space<vmem>>, vector<1x144x128xbf16>
      %108 = vector.shape_cast %107 : vector<1x144x128xbf16> to vector<144x128xbf16>
      %109 = vector.shape_cast %106 : vector<144x128xbf16> to vector<1x144x128xbf16>
      tpu.vector_store %arg11[%c0_75, %c0_76, %c0_77], %109 {strides = array<i32>} : memref<1x144x128xbf16, #tpu.memory_space<vmem>>, vector<1x144x128xbf16>,
    } else {
    }
    return
  }
  func.func @transform_0(%arg0: i32, %arg1: i32) -> (i32, i32, i32) {
    %c0_i32 = arith.constant 0 : i32
    %c0_i32_0 = arith.constant 0 : i32
    %c0_i32_1 = arith.constant 0 : i32
    return %arg0, %c0_i32, %c0_i32_0 : i32, i32, i32
  }
  func.func @transform_1(%arg0: i32, %arg1: i32) -> (i32, i32) {
    %c0_i32 = arith.constant 0 : i32
    %c0_i32_0 = arith.constant 0 : i32
    return %c0_i32, %arg1 : i32, i32
  }
  func.func @transform_2(%arg0: i32, %arg1: i32) -> (i32, i32) {
    %c0_i32 = arith.constant 0 : i32
    %c0_i32_0 = arith.constant 0 : i32
    return %c0_i32, %arg1 : i32, i32
  }
  func.func @transform_3(%arg0: i32, %arg1: i32) -> (i32, i32) {
    %c0_i32 = arith.constant 0 : i32
    %c0_i32_0 = arith.constant 0 : i32
    %c0_i32_1 = arith.constant 0 : i32
    return %c0_i32, %c0_i32_0 : i32, i32
  }
  func.func @transform_4(%arg0: i32, %arg1: i32) -> (i32, i32) {
    %c0_i32 = arith.constant 0 : i32
    %c0_i32_0 = arith.constant 0 : i32
    return %arg1, %c0_i32 : i32, i32
  }
  func.func @transform_5(%arg0: i32, %arg1: i32) -> (i32, i32) {
    %c0_i32 = arith.constant 0 : i32
    %c0_i32_0 = arith.constant 0 : i32
    %c0_i32_1 = arith.constant 0 : i32
    return %c0_i32, %c0_i32_0 : i32, i32
  }
  func.func @transform_6(%arg0: i32, %arg1: i32) -> (i32, i32, i32) {
    %c0_i32 = arith.constant 0 : i32
    %c0_i32_0 = arith.constant 0 : i32
    %c0_i32_1 = arith.constant 0 : i32
    %c0_i32_2 = arith.constant 0 : i32
    return %c0_i32, %c0_i32_0, %c0_i32_1 : i32, i32, i32
  }
  func.func @transform_7(%arg0: i32, %arg1: i32) -> (i32, i32) {
    %c0_i32 = arith.constant 0 : i32
    %c0_i32_0 = arith.constant 0 : i32
    %c0_i32_1 = arith.constant 0 : i32
    return %c0_i32, %c0_i32_0 : i32, i32
  }
  func.func @transform_8(%arg0: i32, %arg1: i32) -> (i32, i32) {
    %c0_i32 = arith.constant 0 : i32
    %c0_i32_0 = arith.constant 0 : i32
    %c0_i32_1 = arith.constant 0 : i32
    return %c0_i32, %c0_i32_0 : i32, i32
  }
  func.func @transform_9(%arg0: i32, %arg1: i32) -> (i32, i32, i32) {
    %c0_i32 = arith.constant 0 : i32
    %c0_i32_0 = arith.constant 0 : i32
    %c0_i32_1 = arith.constant 0 : i32
    return %arg0, %c0_i32, %c0_i32_0 : i32, i32, i32
  }
}

</mosaic_0001>

<bundles_post_ra>
// kernel: apply.1
= control target key start
LH: loop header
LB: loop body
LE: loop exit
PB: predicated region body
PF: predicated region fallthrough
CT: control target
= control target key end

     0   :  { %s6933_s30 = smov 0   ;;  %s6935_s10 = smov 0   ;;  %s9858_s0 = inlined_call_operand.vmem [shape: bf16[2,576,128], index: 0, kind: input, shape index: {}]   ;;  %s9859_s1 = inlined_call_operand.vmem [shape: bf16[128,128], index: 1, kind: input, shape index: {}]   ;;  %s9860_s2 = inlined_call_operand.vmem [shape: f32[1,128], index: 2, kind: input, shape index: {}]   ;;  %s9861_s3 = inlined_call_operand.vmem [shape: bf16[144,576], index: 3, kind: input, shape index: {}]   ;;  %s9862_s4 = inlined_call_operand.vmem [shape: bf16[128,128], index: 4, kind: input, shape index: {}]   ;;  %s9863_s5 = inlined_call_operand.vmem [shape: f32[1,128], index: 5, kind: input, shape index: {}]   ;;  %s9864_s6 = inlined_call_operand.vmem [shape: bf16[9,144,144], index: 6, kind: input, shape index: {}]   ;;  %s9865_s7 = inlined_call_operand.vmem [shape: f32[9,128], index: 7, kind: input, shape index: {}]   ;;  %s9866_s8 = inlined_call_operand.vmem [shape: f32[1,128], index: 8, kind: input, shape index: {}]   ;;  %s9867_s9 = inlined_call_operand.vmem [shape: bf16[2,144,128], index: 9, kind: output, shape index: {}]  }
   0x1   :  { %s6937_s11 = smov 0  }
   0x2 LB: > { %s31_s12 = sadd.s32 1, %s6877_s10  ;;  %p5088_p0 = scmp.ge.s32.totalorder %s6881_s11, 1  ;;  %s6881_s11 = sphi %s6937_s11, %s19_s11   ;;  %s6877_s10 = sphi %s6935_s10, %s9869_s10   ;;  %s6873_s30 = sphi %s6933_s30, %s9868_s30  }
   0x3   : > { %p33_p1 = scmp.ge.s32.totalorder %s31_s12, 2  ;;  %p327_p2 = scmp.lt.s32.totalorder %s6881_s11, 3 }
   0x5   : > { %s9871_s12 = smov (%p33_p1, %s31_s12), 0  ;;  %p328_p3 = pnand %p5088_p0, %p327_p2 }
   0x6   : > { %p375_p4 = scmp.lt.s32.totalorder (!%p328_p3), %s6873_s30, 1 }
   0x7   : > { %331 = sbr.rel (%p328_p3) target bundleno = 2065 (0x811), region = 56 }
   0xc   : > { %v6406_v0 = vld [vmem:[%s9859_s1 + $0x38] sm:$0xff]  ;;  %v6405_v1 = vld [vmem:[%s9859_s1 + $0x30] sm:$0xff]  ;;  %v6404_v2 = vld [vmem:[%s9859_s1 + $0x28] sm:$0xff]  ;;  %s9873_s30 = smov (!%p375_p4, %s6873_s30), 1  ;;  %vm1929_vm0 = vcmask 523264   ;;  %vm2581_vm1 = vcmask 130048  }
   0xd   : > { %777 = vmatpush.bf16.msra.mxu0 %v6406_v0  ;;  %v6403_v3 = vld [vmem:[%s9859_s1 + $0x20] sm:$0xff]  ;;  %v6402_v4 = vld [vmem:[%s9859_s1 + $0x18] sm:$0xff]  ;;  %v6401_v5 = vld [vmem:[%s9859_s1 + $0x10] sm:$0xff]  ;;  %s6675_s27 = smul.u32 288, %s9873_s30 }
   0xe   : > { %v6400_v6 = vld [vmem:[%s9859_s1 + $0x8] sm:$0xff]  ;;  %v6399_v7 = vld [vmem:[%s9859_s1] sm:$0xff]  ;;  %s6676_s22 = smul.u32 72, %s9873_s30 }
   0xf   : > { %s6981_s15 = scalar_lea.vmem %s9858_s0, %s6675_s27  ;;  %v6994_v16 = vld [vmem:[%s9860_s2] ss:$0 sm:$0xff] }
  0x10   : > { %v6363_v8 = vld [vmem:[%s6981_s15] sm:$0xff]  ;;  %v6364_v9 = vld [vmem:[%s6981_s15 + $0x8] sm:$0xff]  ;;  %v6365_v10 = vld [vmem:[%s6981_s15 + $0x10] sm:$0xff]  ;;  %s9790_s25 = scalar_lea.vmem %s9867_s9, %s6676_s22 }
  0x11   : > { %778 = vmatpush.bf16.msra.mxu0 %v6405_v1  ;;  %v6366_v11 = vld [vmem:[%s6981_s15 + $0x18] sm:$0xff]  ;;  %v6367_v12 = vld [vmem:[%s6981_s15 + $0x20] sm:$0xff]  ;;  %v6368_v13 = vld [vmem:[%s6981_s15 + $0x28] sm:$0xff] }
  0x12   : > { %v6369_v14 = vld [vmem:[%s6981_s15 + $0x30] sm:$0xff]  ;;  %v6370_v15 = vld [vmem:[%s6981_s15 + $0x38] sm:$0xff]  ;;  %v6371_v17 = vld [vmem:[%s6981_s15 + $0x40] sm:$0xff] }
  0x13   : > { %v6372_v29 = vld [vmem:[%s6981_s15 + $0x48] sm:$0xff]  ;;  %v6373_v52 = vld [vmem:[%s6981_s15 + $0x50] sm:$0xff] }
  0x15   : > { %779 = vmatpush.bf16.msra.mxu0 %v6404_v2 }
  0x19   : > { %780 = vmatpush.bf16.msra.mxu0 %v6403_v3 }
  0x1d   : > { %781 = vmatpush.bf16.msra.mxu0 %v6402_v4 }
  0x21   : > { %782 = vmatpush.bf16.msra.mxu0 %v6401_v5 }
  0x25   : > { %783 = vmatpush.bf16.msra.mxu0 %v6400_v6 }
  0x29   : > { %784 = vmatpush.bf16.msra.mxu0 %v6399_v7 }
  0x2c   : > { %785 = vmatmul.bf16.vlgmr.msra.gmra.mxu0 %v6363_v8 }
  0x3c   : > { %790 = vmatmul.bf16.gmra.mxu0 %v6364_v9 }
  0x4c   : > { %795 = vmatmul.bf16.gmra.mxu0 %v6365_v10 }
  0x5c   : > { %800 = vmatmul.bf16.gmra.mxu0 %v6366_v11 }
  0x6c   : > { %805 = vmatmul.bf16.gmra.mxu0 %v6367_v12  ;;  %v6374_v12 = vld [vmem:[%s6981_s15 + $0x58] sm:$0xff] }
  0x7c   : > { %810 = vmatmul.bf16.gmra.mxu0 %v6368_v13 }
  0x8c   : > { %815 = vmatmul.bf16.gmra.mxu0 %v6369_v14 }
  0x9c   : > { %820 = vmatmul.bf16.gmra.mxu0 %v6370_v15 }
  0xa9   : > { %v786_v18 = vpop.f32.mrf.mxu0 }
  0xaa   : > { %v787_v19 = vadd.f32 %v6994_v16, %v786_v18 }
  0xac   : > { %v1038_v20 = vmul.f32 0.044715, %v787_v19  ;;  %825 = vmatmul.bf16.gmra.mxu0 %v6371_v17  ;;  %v966_v45 = vmul.f32 0.5, %v787_v19 }
  0xae   : > { %v1110_v21 = vmul.f32 %v1038_v20, %v787_v19 }
  0xb0   : > { %v1182_v22 = vmul.f32 %v1110_v21, %v787_v19 }
  0xb1   : > { %v788_v23 = vpop.f32.mrf.mxu0 }
  0xb2   : > { %v789_v24 = vadd.f32 %v6994_v16, %v788_v23  ;;  %v1254_v25 = vadd.f32 %v1182_v22, %v787_v19 }
  0xb4   : > { %v1039_v26 = vmul.f32 0.044715, %v789_v24  ;;  %v1326_v28 = vmul.f32 0.7978846, %v1254_v25  ;;  %v967_v46 = vmul.f32 0.5, %v789_v24 }
  0xb6   : > { %v1111_v27 = vmul.f32 %v1039_v26, %v789_v24  ;;  %6713 = vtanh.f32 %v1326_v28 }
  0xb8   : > { %v1183_v30 = vmul.f32 %v1111_v27, %v789_v24 }
  0xb9   : > { %v791_v31 = vpop.f32.mrf.mxu0 }
  0xba   : > { %v792_v32 = vadd.f32 %v6994_v16, %v791_v31  ;;  %v1255_v33 = vadd.f32 %v1183_v30, %v789_v24 }
  0xbc   : > { %v1040_v34 = vmul.f32 0.044715, %v792_v32  ;;  %830 = vmatmul.bf16.gmra.mxu0 %v6372_v29  ;;  %v1327_v35 = vmul.f32 0.7978846, %v1255_v33  ;;  %v6714_v37 = vpop.eup %6713  ;;  %v968_v5 = vmul.f32 0.5, %v792_v32 }
  0xbd   : > { %v1470_v42 = vadd.f32 1.0, %v6714_v37  ;;  %v6375_v37 = vld [vmem:[%s6981_s15 + $0x60] sm:$0xff] }
  0xbe   : > { %v1112_v36 = vmul.f32 %v1040_v34, %v792_v32  ;;  %6715 = vtanh.f32 %v1327_v35 }
  0xbf   : > { %v7002_v50 = vmul.f32 %v1470_v42, %v966_v45 }
  0xc0   : > { %v1184_v38 = vmul.f32 %v1112_v36, %v792_v32 }
  0xc1   : > { %v793_v39 = vpop.f32.mrf.mxu0 }
  0xc2   : > { %v794_v40 = vadd.f32 %v6994_v16, %v793_v39  ;;  %v1256_v41 = vadd.f32 %v1184_v38, %v792_v32 }
  0xc4   : > { %v6716_v43 = vpop.eup %6715  ;;  %v1041_v44 = vmul.f32 0.044715, %v794_v40  ;;  %v1328_v49 = vmul.f32 0.7978846, %v1256_v41  ;;  %v969_v6 = vmul.f32 0.5, %v794_v40 }
  0xc5   : > { %v1471_v47 = vadd.f32 1.0, %v6716_v43 }
  0xc6   : > { %v1113_v48 = vmul.f32 %v1041_v44, %v794_v40  ;;  %6717 = vtanh.f32 %v1328_v49 }
  0xc7   : > { %v7004_v51 = vmul.f32 %v1471_v47, %v967_v46 }
  0xc8   : > { %v1185_v53 = vmul.f32 %v1113_v48, %v794_v40 }
  0xc9   : > { %v796_v54 = vpop.f32.mrf.mxu0  ;;  %v1614_v55 = vpack.c.bf16 %v7004_v51, %v7002_v50 }
  0xca   : > { %v797_v56 = vadd.f32 %v6994_v16, %v796_v54  ;;  %v1257_v57 = vadd.f32 %v1185_v53, %v794_v40  ;;  %v6376_v54 = vld [vmem:[%s6981_s15 + $0x68] sm:$0xff] }
  0xcc   : > { %v1042_v58 = vmul.f32 0.044715, %v797_v56  ;;  %835 = vmatmul.bf16.gmra.mxu0 %v6373_v52  ;;  %v1329_v59 = vmul.f32 0.7978846, %v1257_v57  ;;  %v6718_v61 = vpop.eup %6717  ;;  %v970_v30 = vmul.f32 0.5, %v797_v56 }
  0xcd   : > { %v1472_v2 = vadd.f32 1.0, %v6718_v61 }
  0xce   : > { %v1114_v60 = vmul.f32 %v1042_v58, %v797_v56  ;;  %6719 = vtanh.f32 %v1329_v59  ;;  %v6377_v59 = vld [vmem:[%s6981_s15 + $0x70] sm:$0xff] }
  0xcf   : > { %v7011_v10 = vmul.f32 %v1472_v2, %v968_v5 }
  0xd0   : > { %v1186_v62 = vmul.f32 %v1114_v60, %v797_v56 }
  0xd1   : > { %v798_v63 = vpop.f32.mrf.mxu0 }
  0xd2   : > { %v799_v0 = vadd.f32 %v6994_v16, %v798_v63  ;;  %v1258_v1 = vadd.f32 %v1186_v62, %v797_v56 }
  0xd4   : > { %v6720_v3 = vpop.eup %6719  ;;  %v1043_v4 = vmul.f32 0.044715, %v799_v0  ;;  %v1330_v9 = vmul.f32 0.7978846, %v1258_v1  ;;  %v971_v31 = vmul.f32 0.5, %v799_v0  ;;  %v6378_v1 = vld [vmem:[%s6981_s15 + $0x78] sm:$0xff] }
  0xd5   : > { %v1473_v7 = vadd.f32 1.0, %v6720_v3 }
  0xd6   : > { %v1115_v8 = vmul.f32 %v1043_v4, %v799_v0  ;;  %6721 = vtanh.f32 %v1330_v9 }
  0xd7   : > { %v7013_v11 = vmul.f32 %v1473_v7, %v969_v6 }
  0xd8   : > { %v1187_v13 = vmul.f32 %v1115_v8, %v799_v0 }
  0xd9   : > { %v801_v14 = vpop.f32.mrf.mxu0  ;;  %v1615_v15 = vpack.c.bf16 %v7013_v11, %v7011_v10 }
  0xda   : > { %v802_v17 = vadd.f32 %v6994_v16, %v801_v14  ;;  %v1259_v18 = vadd.f32 %v1187_v13, %v799_v0 }
  0xdc   : > { %v1044_v19 = vmul.f32 0.044715, %v802_v17  ;;  %840 = vmatmul.bf16.gmra.mxu0 %v6374_v12  ;;  %v1331_v20 = vmul.f32 0.7978846, %v1259_v18  ;;  %v6722_v22 = vpop.eup %6721  ;;  %v972_v47 = vmul.f32 0.5, %v802_v17 }
  0xdd   : > { %v1474_v27 = vadd.f32 1.0, %v6722_v22 }
  0xde   : > { %v1116_v21 = vmul.f32 %v1044_v19, %v802_v17  ;;  %6723 = vtanh.f32 %v1331_v20 }
  0xdf   : > { %v7020_v35 = vmul.f32 %v1474_v27, %v970_v30 }
  0xe0   : > { %v1188_v23 = vmul.f32 %v1116_v21, %v802_v17 }
  0xe1   : > { %v803_v24 = vpop.f32.mrf.mxu0 }
  0xe2   : > { %v804_v25 = vadd.f32 %v6994_v16, %v803_v24  ;;  %v1260_v26 = vadd.f32 %v1188_v23, %v802_v17 }
  0xe4   : > { %v6724_v28 = vpop.eup %6723  ;;  %v1045_v29 = vmul.f32 0.044715, %v804_v25  ;;  %v1332_v34 = vmul.f32 0.7978846, %v1260_v26  ;;  %v973_v48 = vmul.f32 0.5, %v804_v25 }
  0xe5   : > { %v1475_v32 = vadd.f32 1.0, %v6724_v28 }
  0xe6   : > { %v1117_v33 = vmul.f32 %v1045_v29, %v804_v25  ;;  %6725 = vtanh.f32 %v1332_v34 }
  0xe7   : > { %v7022_v36 = vmul.f32 %v1475_v32, %v971_v31 }
  0xe8   : > { %v1189_v38 = vmul.f32 %v1117_v33, %v804_v25 }
  0xe9   : > { %v806_v39 = vpop.f32.mrf.mxu0  ;;  %v1616_v40 = vpack.c.bf16 %v7022_v36, %v7020_v35 }
  0xea   : > { %v1261_v41 = vadd.f32 %v1189_v38, %v804_v25  ;;  %v7060_v13 = vadd.f32 %v6994_v16, %v806_v39 }
  0xec   : > { %845 = vmatmul.bf16.gmra.mxu0 %v6375_v37  ;;  %v1333_v42 = vmul.f32 0.7978846, %v1261_v41  ;;  %v6726_v43 = vpop.eup %6725  ;;  %v1046_v23 = vmul.f32 0.044715, %v7060_v13 }
  0xed   : > { %v1476_v45 = vadd.f32 1.0, %v6726_v43 }
  0xee   : > { %6727 = vtanh.f32 %v1333_v42  ;;  %v1118_v34 = vmul.f32 %v1046_v23, %v7060_v13  ;;  %v6379_v42 = vld [vmem:[%s6981_s15 + $0x80] sm:$0xff] }
  0xef   : > { %v7027_v52 = vmul.f32 %v1476_v45, %v972_v47 }
  0xf1   : > { %v808_v44 = vpop.f32.mrf.mxu0 }
  0xf2   : > { %v7054_v7 = vadd.f32 %v6994_v16, %v808_v44 }
  0xf4   : > { %v6728_v46 = vpop.eup %6727  ;;  %v1047_v19 = vmul.f32 0.044715, %v7054_v7 }
  0xf5   : > { %v1477_v49 = vadd.f32 1.0, %v6728_v46 }
  0xf6   : > { %v1119_v29 = vmul.f32 %v1047_v19, %v7054_v7 }
  0xf7   : > { %v7029_v53 = vmul.f32 %v1477_v49, %v973_v48  ;;  %v1190_v48 = vmul.f32 %v1118_v34, %v7060_v13 }
  0xf8   : > { %v1191_v41 = vmul.f32 %v1119_v29, %v7054_v7 }
  0xf9   : > { %v811_v56 = vpop.f32.mrf.mxu0  ;;  %v1617_v57 = vpack.c.bf16 %v7029_v53, %v7027_v52 }
  0xfa   : > { %v7048_v5 = vadd.f32 %v6994_v16, %v811_v56 }
  0xfc   : > { %850 = vmatmul.bf16.gmra.mxu0 %v6376_v54  ;;  %v1048_v17 = vmul.f32 0.044715, %v7048_v5 }
  0xfe   : > { %v1120_v28 = vmul.f32 %v1048_v17, %v7048_v5 }
 0x100   : > { %v1192_v39 = vmul.f32 %v1120_v28, %v7048_v5 }
 0x101   : > { %v813_v58 = vpop.f32.mrf.mxu0 }
 0x102   : > { %v7042_v0 = vadd.f32 %v6994_v16, %v813_v58  ;;  %v1264_v56 = vadd.f32 %v1192_v39, %v7048_v5  ;;  %v1263_v58 = vadd.f32 %v1191_v41, %v7054_v7  ;;  %v6380_v39 = vld [vmem:[%s6981_s15 + $0x88] sm:$0xff] }
 0x104   : > { %v1049_v12 = vmul.f32 0.044715, %v7042_v0 }
 0x106   : > { %v1121_v22 = vmul.f32 %v1049_v12, %v7042_v0 }
 0x108   : > { %v1193_v32 = vmul.f32 %v1121_v22, %v7042_v0 }
 0x109   : > { %v816_v60 = vpop.f32.mrf.mxu0 }
 0x10a   : > { %v7039_v63 = vadd.f32 %v6994_v16, %v816_v60  ;;  %v1265_v45 = vadd.f32 %v1193_v32, %v7042_v0 }
 0x10c   : > { %855 = vmatmul.bf16.gmra.mxu0 %v6377_v59  ;;  %v1050_v3 = vmul.f32 0.044715, %v7039_v63 }
 0x10e   : > { %v1122_v14 = vmul.f32 %v1050_v3, %v7039_v63 }
 0x110   : > { %v1194_v25 = vmul.f32 %v1122_v14, %v7039_v63 }
 0x111   : > { %v818_v61 = vpop.f32.mrf.mxu0 }
 0x112   : > { %v7036_v62 = vadd.f32 %v6994_v16, %v818_v61  ;;  %v1266_v33 = vadd.f32 %v1194_v25, %v7039_v63  ;;  %v1337_v61 = vmul.f32 0.7978846, %v1265_v45 }
 0x114   : > { %v1051_v2 = vmul.f32 0.044715, %v7036_v62  ;;  %v1338_v47 = vmul.f32 0.7978846, %v1266_v33  ;;  %v979_v34 = vmul.f32 0.5, %v7036_v62 }
 0x116   : > { %v1123_v9 = vmul.f32 %v1051_v2, %v7036_v62  ;;  %v1262_v2 = vadd.f32 %v1190_v48, %v7060_v13  ;;  %v977_v48 = vmul.f32 0.5, %v7042_v0 }
 0x118   : > { %v1195_v21 = vmul.f32 %v1123_v9, %v7036_v62 }
 0x119   : > { %v821_v4 = vpop.f32.mrf.mxu0 }
 0x11a   : > { %v7051_v6 = vadd.f32 %v6994_v16, %v821_v4  ;;  %v1267_v31 = vadd.f32 %v1195_v21, %v7036_v62 }
 0x11c   : > { %860 = vmatmul.bf16.gmra.mxu0 %v6378_v1  ;;  %v1052_v8 = vmul.f32 0.044715, %v7051_v6  ;;  %v1339_v44 = vmul.f32 0.7978846, %v1267_v31  ;;  %v1336_v1 = vmul.f32 0.7978846, %v1264_v56 }
 0x11e   : > { %v1124_v18 = vmul.f32 %v1052_v8, %v7051_v6  ;;  %v1335_v8 = vmul.f32 0.7978846, %v1263_v58 }
 0x120   : > { %v1196_v20 = vmul.f32 %v1124_v18, %v7051_v6  ;;  %v1334_v18 = vmul.f32 0.7978846, %v1262_v2 }
 0x121   : > { %v823_v24 = vpop.f32.mrf.mxu0 }
 0x122   : > { %v824_v26 = vadd.f32 %v6994_v16, %v823_v24  ;;  %v1268_v27 = vadd.f32 %v1196_v20, %v7051_v6  ;;  %v980_v24 = vmul.f32 0.5, %v7051_v6  ;;  %v978_v6 = vmul.f32 0.5, %v7039_v63 }
 0x124   : > { %v1053_v30 = vmul.f32 0.044715, %v824_v26  ;;  %v1340_v38 = vmul.f32 0.7978846, %v1268_v27  ;;  %v981_v25 = vmul.f32 0.5, %v824_v26 }
 0x126   : > { %v1125_v37 = vmul.f32 %v1053_v30, %v824_v26  ;;  %6729 = vtanh.f32 %v1340_v38 }
 0x127   : > { %6731 = vtanh.f32 %v1339_v44 }
 0x128   : > { %v1197_v43 = vmul.f32 %v1125_v37, %v824_v26  ;;  %6733 = vtanh.f32 %v1338_v47 }
 0x129   : > { %v826_v46 = vpop.f32.mrf.mxu0 }
 0x12a   : > { %v7085_v49 = vadd.f32 %v6994_v16, %v826_v46  ;;  %v1269_v54 = vadd.f32 %v1197_v43, %v824_v26 }
 0x12c   : > { %v1054_v59 = vmul.f32 0.044715, %v7085_v49  ;;  %865 = vmatmul.bf16.gmra.mxu0 %v6379_v42  ;;  %v1341_v60 = vmul.f32 0.7978846, %v1269_v54  ;;  %v6730_v4 = vpop.eup %6729 }
 0x12d   : > { %v6732_v14 = vpop.eup %6731  ;;  %v1484_v21 = vadd.f32 1.0, %v6730_v4  ;;  %v975_v4 = vmul.f32 0.5, %v7054_v7 }
 0x12e   : > { %6735 = vtanh.f32 %v1341_v60  ;;  %v1126_v3 = vmul.f32 %v1054_v59, %v7085_v49  ;;  %v6734_v20 = vpop.eup %6733  ;;  %v1483_v28 = vadd.f32 1.0, %v6732_v14  ;;  %v976_v60 = vmul.f32 0.5, %v7048_v5 }
 0x12f   : > { %6737 = vtanh.f32 %v1337_v61  ;;  %v1556_v32 = vmul.f32 %v1484_v21, %v980_v24  ;;  %v1482_v37 = vadd.f32 1.0, %v6734_v20 }
 0x130   : > { %v1198_v9 = vmul.f32 %v1126_v3, %v7085_v49  ;;  %6739 = vtanh.f32 %v1336_v1  ;;  %v1555_v26 = vmul.f32 %v1483_v28, %v979_v34 }
 0x131   : > { %v828_v12 = vpop.f32.mrf.mxu0  ;;  %6741 = vtanh.f32 %v1335_v8  ;;  %v1554_v62 = vmul.f32 %v1482_v37, %v978_v6 }
 0x132   : > { %v7094_v17 = vadd.f32 %v6994_v16, %v828_v12  ;;  %v1270_v19 = vadd.f32 %v1198_v9, %v7085_v49  ;;  %6743 = vtanh.f32 %v1334_v18  ;;  %v974_v18 = vmul.f32 0.5, %v7060_v13 }
 0x133   : > { %v1620_v63 = vpack.c.bf16 %v1555_v26, %v1554_v62 }
 0x134   : > { %v6736_v22 = vpop.eup %6735  ;;  %v1055_v23 = vmul.f32 0.044715, %v7094_v17  ;;  %v1342_v31 = vmul.f32 0.7978846, %v1270_v19 }
 0x135   : > { %v1485_v27 = vadd.f32 1.0, %v6736_v22  ;;  %v6738_v29 = vpop.eup %6737 }
 0x136   : > { %v1127_v30 = vmul.f32 %v1055_v23, %v7094_v17  ;;  %v6740_v38 = vpop.eup %6739  ;;  %v1481_v44 = vadd.f32 1.0, %v6738_v29  ;;  %6745 = vtanh.f32 %v1342_v31 }
 0x137   : > { %v1557_v33 = vmul.f32 %v1485_v27, %v981_v25  ;;  %v6742_v45 = vpop.eup %6741  ;;  %v1480_v54 = vadd.f32 1.0, %v6740_v38  ;;  %v982_v25 = vmul.f32 0.5, %v7085_v49  ;;  %v983_v27 = vmul.f32 0.5, %v7094_v17 }
 0x138   : > { %v1199_v41 = vmul.f32 %v1127_v30, %v7094_v17  ;;  %v6744_v56 = vpop.eup %6743  ;;  %v1553_v61 = vmul.f32 %v1481_v44, %v977_v48  ;;  %v1479_v1 = vadd.f32 1.0, %v6742_v45 }
 0x139   : > { %v831_v42 = vpop.f32.mrf.mxu0  ;;  %v1621_v43 = vpack.c.bf16 %v1557_v33, %v1556_v32  ;;  %v1552_v3 = vmul.f32 %v1480_v54, %v976_v60  ;;  %v1478_v8 = vadd.f32 1.0, %v6744_v56  ;;  %v6381_v32 = vld [vmem:[%s6981_s15 + $0x90] sm:$0xff]  ;;  %v6382_v54 = vld [vmem:[%s6981_s15 + $0x98] sm:$0xff] }
 0x13a   : > { %v7105_v46 = vadd.f32 %v6994_v16, %v831_v42  ;;  %v1271_v47 = vadd.f32 %v1199_v41, %v7094_v17  ;;  %v1551_v19 = vmul.f32 %v1479_v1, %v975_v4 }
 0x13b   : > { %1957 = vmatpush.bf16.msra.mxu1 %v1621_v43  ;;  %v1619_v14 = vpack.c.bf16 %v1553_v61, %v1552_v3  ;;  %v1550_v21 = vmul.f32 %v1478_v8, %v974_v18 }
 0x13c   : > { %v1056_v58 = vmul.f32 0.044715, %v7105_v46  ;;  %870 = vmatmul.bf16.gmra.mxu0 %v6380_v39  ;;  %v1343_v59 = vmul.f32 0.7978846, %v1271_v47  ;;  %v6746_v0 = vpop.eup %6745  ;;  %v984_v45 = vmul.f32 0.5, %v7105_v46 }
 0x13d   : > { %v1486_v22 = vadd.f32 1.0, %v6746_v0  ;;  %v1618_v7 = vpack.c.bf16 %v1551_v19, %v1550_v21  ;;  %v6383_v19 = vld [vmem:[%s6981_s15 + $0xa0] sm:$0xff] }
 0x13e   : > { %v1128_v2 = vmul.f32 %v1056_v58, %v7105_v46  ;;  %6747 = vtanh.f32 %v1343_v59 }
 0x13f   : > { %1958 = vmatpush.bf16.msra.mxu1 %v1620_v63  ;;  %v7119_v13 = vmul.f32 %v1486_v22, %v982_v25 }
 0x140   : > { %v1200_v9 = vmul.f32 %v1128_v2, %v7105_v46 }
 0x141   : > { %v833_v12 = vpop.f32.mrf.mxu0 }
 0x142   : > { %v834_v5 = vadd.f32 %v6994_v16, %v833_v12  ;;  %v1272_v20 = vadd.f32 %v1200_v9, %v7105_v46 }
 0x143   : > { %1959 = vmatpush.bf16.msra.mxu1 %v1619_v14 }
 0x144   : > { %v6748_v23 = vpop.eup %6747  ;;  %v1057_v24 = vmul.f32 0.044715, %v834_v5  ;;  %v1344_v30 = vmul.f32 0.7978846, %v1272_v20  ;;  %v985_v47 = vmul.f32 0.5, %v834_v5 }
 0x145   : > { %v1487_v28 = vadd.f32 1.0, %v6748_v23 }
 0x146   : > { %v1129_v29 = vmul.f32 %v1057_v24, %v834_v5  ;;  %6749 = vtanh.f32 %v1344_v30 }
 0x147   : > { %1960 = vmatpush.bf16.msra.mxu1 %v1618_v7  ;;  %v7121_v31 = vmul.f32 %v1487_v28, %v983_v27 }
 0x148   : > { %v1201_v33 = vmul.f32 %v1129_v29, %v834_v5 }
 0x149   : > { %v836_v34 = vpop.f32.mrf.mxu0  ;;  %v1622_v37 = vpack.c.bf16 %v7121_v31, %v7119_v13 }
 0x14a   : > { %v837_v38 = vadd.f32 %v6994_v16, %v836_v34  ;;  %v1273_v39 = vadd.f32 %v1201_v33, %v834_v5  ;;  %v6384_v34 = vld [vmem:[%s6981_s15 + $0xa8] sm:$0xff] }
 0x14b   : > { %1961 = vmatpush.bf16.msra.mxu1 %v1617_v57 }
 0x14c   : > { %v1058_v49 = vmul.f32 0.044715, %v837_v38  ;;  %875 = vmatmul.bf16.gmra.mxu0 %v6381_v32  ;;  %v1345_v17 = vmul.f32 0.7978846, %v1273_v39  ;;  %v6750_v42 = vpop.eup %6749  ;;  %v986_v4 = vmul.f32 0.5, %v837_v38 }
 0x14d   : > { %v1488_v52 = vadd.f32 1.0, %v6750_v42 }
 0x14e   : > { %v1130_v41 = vmul.f32 %v1058_v49, %v837_v38  ;;  %6751 = vtanh.f32 %v1345_v17  ;;  %v6385_v17 = vld [vmem:[%s6981_s15 + $0xb0] sm:$0xff] }
 0x14f   : > { %1962 = vmatpush.bf16.msra.mxu1 %v1616_v40  ;;  %v7141_v40 = vmul.f32 %v1488_v52, %v984_v45 }
 0x150   : > { %v1202_v43 = vmul.f32 %v1130_v41, %v837_v38 }
 0x151   : > { %v838_v6 = vpop.f32.mrf.mxu0 }
 0x152   : > { %v839_v26 = vadd.f32 %v6994_v16, %v838_v6  ;;  %v1274_v44 = vadd.f32 %v1202_v43, %v837_v38 }
 0x153   : > { %1963 = vmatpush.bf16.msra.mxu1 %v1615_v15 }
 0x154   : > { %v6752_v53 = vpop.eup %6751  ;;  %v1059_v57 = vmul.f32 0.044715, %v839_v26  ;;  %v1346_v36 = vmul.f32 0.7978846, %v1274_v44  ;;  %v987_v8 = vmul.f32 0.5, %v839_v26  ;;  %v6386_v44 = vld [vmem:[%s6981_s15 + $0xb8] sm:$0xff] }
 0x155   : > { %v1489_v62 = vadd.f32 1.0, %v6752_v53 }
 0x156   : > { %v1131_v35 = vmul.f32 %v1059_v57, %v839_v26  ;;  %6753 = vtanh.f32 %v1346_v36 }
 0x157   : > { %1964 = vmatpush.bf16.msra.mxu1 %v1614_v55  ;;  %v7143_v48 = vmul.f32 %v1489_v62, %v985_v47 }
 0x158   : > { %v1203_v10 = vmul.f32 %v1131_v35, %v839_v26 }
 0x159   : > { %v841_v11 = vpop.f32.mrf.mxu0  ;;  %v1623_v15 = vpack.c.bf16 %v7143_v48, %v7141_v40 }
 0x15a   : > { %v842_v46 = vadd.f32 %v6994_v16, %v841_v11  ;;  %v1275_v56 = vadd.f32 %v1203_v10, %v839_v26 }
 0x15c   : > { %v1060_v58 = vmul.f32 0.044715, %v842_v46  ;;  %880 = vmatmul.bf16.gmra.mxu0 %v6382_v54  ;;  %v1347_v59 = vmul.f32 0.7978846, %v1275_v56  ;;  %v6754_v50 = vpop.eup %6753  ;;  %v988_v28 = vmul.f32 0.5, %v842_v46 }
 0x15d   : > { %v1490_v1 = vadd.f32 1.0, %v6754_v50 }
 0x15e   : > { %v1132_v63 = vmul.f32 %v1060_v58, %v842_v46  ;;  %6755 = vtanh.f32 %v1347_v59 }
 0x15f   : > { %v7150_v14 = vmul.f32 %v1490_v1, %v986_v4 }
 0x160   : > { %v1204_v51 = vmul.f32 %v1132_v63, %v842_v46 }
 0x161   : > { %v843_v55 = vpop.f32.mrf.mxu0 }
 0x162   : > { %v844_v60 = vadd.f32 %v6994_v16, %v843_v55  ;;  %v1276_v61 = vadd.f32 %v1204_v51, %v842_v46 }
 0x164   : > { %v6756_v2 = vpop.eup %6755  ;;  %v1061_v3 = vmul.f32 0.044715, %v844_v60  ;;  %v1348_v12 = vmul.f32 0.7978846, %v1276_v61  ;;  %v989_v29 = vmul.f32 0.5, %v844_v60 }
 0x165   : > { %v1491_v0 = vadd.f32 1.0, %v6756_v2 }
 0x166   : > { %v1133_v9 = vmul.f32 %v1061_v3, %v844_v60  ;;  %6757 = vtanh.f32 %v1348_v12 }
 0x167   : > { %v7152_v18 = vmul.f32 %v1491_v0, %v987_v8 }
 0x168   : > { %v1205_v5 = vmul.f32 %v1133_v9, %v844_v60 }
 0x169   : > { %v846_v20 = vpop.f32.mrf.mxu0  ;;  %v1624_v21 = vpack.c.bf16 %v7152_v18, %v7150_v14 }
 0x16a   : > { %v1277_v22 = vadd.f32 %v1205_v5, %v844_v60  ;;  %v7190_v10 = vadd.f32 %v6994_v16, %v846_v20 }
 0x16c   : > { %885 = vmatmul.bf16.gmra.mxu0 %v6383_v19  ;;  %v1349_v23 = vmul.f32 0.7978846, %v1277_v22  ;;  %v6758_v24 = vpop.eup %6757  ;;  %v1062_v51 = vmul.f32 0.044715, %v7190_v10 }
 0x16d   : > { %v1492_v25 = vadd.f32 1.0, %v6758_v24 }
 0x16e   : > { %6759 = vtanh.f32 %v1349_v23  ;;  %v1134_v12 = vmul.f32 %v1062_v51, %v7190_v10  ;;  %v6387_v23 = vld [vmem:[%s6981_s15 + $0xc0] sm:$0xff] }
 0x16f   : > { %v7157_v32 = vmul.f32 %v1492_v25, %v988_v28 }
 0x171   : > { %v848_v7 = vpop.f32.mrf.mxu0 }
 0x172   : > { %v7184_v62 = vadd.f32 %v6994_v16, %v848_v7 }
 0x174   : > { %v6760_v27 = vpop.eup %6759  ;;  %v1063_v58 = vmul.f32 0.044715, %v7184_v62 }
 0x175   : > { %v1493_v30 = vadd.f32 1.0, %v6760_v27 }
 0x176   : > { %v1135_v3 = vmul.f32 %v1063_v58, %v7184_v62 }
 0x177   : > { %v7159_v33 = vmul.f32 %v1493_v30, %v989_v29  ;;  %v1206_v29 = vmul.f32 %v1134_v12, %v7190_v10 }
 0x178   : > { %v1207_v22 = vmul.f32 %v1135_v3, %v7184_v62 }
 0x179   : > { %v851_v38 = vpop.f32.mrf.mxu0  ;;  %v1625_v39 = vpack.c.bf16 %v7159_v33, %v7157_v32 }
 0x17a   : > { %v7178_v45 = vadd.f32 %v6994_v16, %v851_v38 }
 0x17c   : > { %890 = vmatmul.bf16.gmra.mxu0 %v6384_v34  ;;  %v1064_v46 = vmul.f32 0.044715, %v7178_v45 }
 0x17e   : > { %v1136_v2 = vmul.f32 %v1064_v46, %v7178_v45 }
 0x180   : > { %v1208_v20 = vmul.f32 %v1136_v2, %v7178_v45 }
 0x181   : > { %v853_v49 = vpop.f32.mrf.mxu0 }
 0x182   : > { %v7172_v26 = vadd.f32 %v6994_v16, %v853_v49  ;;  %v1280_v38 = vadd.f32 %v1208_v20, %v7178_v45  ;;  %v1279_v49 = vadd.f32 %v1207_v22, %v7184_v62  ;;  %v6388_v20 = vld [vmem:[%s6981_s15 + $0xc8] sm:$0xff] }
 0x184   : > { %v1065_v54 = vmul.f32 0.044715, %v7172_v26 }
 0x186   : > { %v1137_v50 = vmul.f32 %v1065_v54, %v7172_v26 }
 0x188   : > { %v1209_v0 = vmul.f32 %v1137_v50, %v7172_v26 }
 0x189   : > { %v856_v41 = vpop.f32.mrf.mxu0 }
 0x18a   : > { %v7169_v6 = vadd.f32 %v6994_v16, %v856_v41  ;;  %v1281_v25 = vadd.f32 %v1209_v0, %v7172_v26 }
 0x18c   : > { %895 = vmatmul.bf16.gmra.mxu0 %v6385_v17  ;;  %v1066_v53 = vmul.f32 0.044715, %v7169_v6 }
 0x18e   : > { %v1138_v11 = vmul.f32 %v1066_v53, %v7169_v6 }
 0x190   : > { %v1210_v60 = vmul.f32 %v1138_v11, %v7169_v6 }
 0x191   : > { %v858_v42 = vpop.f32.mrf.mxu0 }
 0x192   : > { %v7166_v43 = vadd.f32 %v6994_v16, %v858_v42  ;;  %v1282_v9 = vadd.f32 %v1210_v60, %v7169_v6  ;;  %v1353_v42 = vmul.f32 0.7978846, %v1281_v25 }
 0x194   : > { %v1067_v52 = vmul.f32 0.044715, %v7166_v43  ;;  %v1354_v28 = vmul.f32 0.7978846, %v1282_v9  ;;  %v995_v12 = vmul.f32 0.5, %v7166_v43 }
 0x196   : > { %v1139_v36 = vmul.f32 %v1067_v52, %v7166_v43  ;;  %v1278_v52 = vadd.f32 %v1206_v29, %v7190_v10  ;;  %v993_v29 = vmul.f32 0.5, %v7172_v26 }
 0x198   : > { %v1211_v63 = vmul.f32 %v1139_v36, %v7166_v43 }
 0x199   : > { %v861_v57 = vpop.f32.mrf.mxu0 }
 0x19a   : > { %v7181_v47 = vadd.f32 %v6994_v16, %v861_v57  ;;  %v1283_v8 = vadd.f32 %v1211_v63, %v7166_v43 }
 0x19c   : > { %900 = vmatmul.bf16.gmra.mxu0 %v6386_v44  ;;  %v1068_v35 = vmul.f32 0.044715, %v7181_v47  ;;  %v1355_v7 = vmul.f32 0.7978846, %v1283_v8  ;;  %v1352_v44 = vmul.f32 0.7978846, %v1280_v38 }
 0x19e   : > { %v1140_v56 = vmul.f32 %v1068_v35, %v7181_v47  ;;  %v1351_v35 = vmul.f32 0.7978846, %v1279_v49 }
 0x1a0   : > { %v1212_v59 = vmul.f32 %v1140_v56, %v7181_v47  ;;  %v1350_v56 = vmul.f32 0.7978846, %v1278_v52 }
 0x1a1   : > { %v863_v55 = vpop.f32.mrf.mxu0 }
 0x1a2   : > { %v864_v61 = vadd.f32 %v6994_v16, %v863_v55  ;;  %v1284_v1 = vadd.f32 %v1212_v59, %v7181_v47  ;;  %v996_v55 = vmul.f32 0.5, %v7181_v47  ;;  %v994_v47 = vmul.f32 0.5, %v7169_v6 }
 0x1a4   : > { %v1069_v4 = vmul.f32 0.044715, %v864_v61  ;;  %v1356_v5 = vmul.f32 0.7978846, %v1284_v1  ;;  %v997_v60 = vmul.f32 0.5, %v864_v61 }
 0x1a6   : > { %v1141_v19 = vmul.f32 %v1069_v4, %v864_v61  ;;  %6761 = vtanh.f32 %v1356_v5 }
 0x1a7   : > { %6763 = vtanh.f32 %v1355_v7 }
 0x1a8   : > { %v1213_v24 = vmul.f32 %v1141_v19, %v864_v61  ;;  %6765 = vtanh.f32 %v1354_v28 }
 0x1a9   : > { %v866_v27 = vpop.f32.mrf.mxu0 }
 0x1aa   : > { %v7215_v30 = vadd.f32 %v6994_v16, %v866_v27  ;;  %v1285_v34 = vadd.f32 %v1213_v24, %v864_v61 }
 0x1ac   : > { %v1070_v17 = vmul.f32 0.044715, %v7215_v30  ;;  %905 = vmatmul.bf16.gmra.mxu0 %v6387_v23  ;;  %v1357_v41 = vmul.f32 0.7978846, %v1285_v34  ;;  %v6762_v57 = vpop.eup %6761 }
 0x1ad   : > { %v6764_v11 = vpop.eup %6763  ;;  %v1500_v63 = vadd.f32 1.0, %v6762_v57  ;;  %v991_v57 = vmul.f32 0.5, %v7184_v62 }
 0x1ae   : > { %6767 = vtanh.f32 %v1357_v41  ;;  %v1142_v53 = vmul.f32 %v1070_v17, %v7215_v30  ;;  %v6766_v59 = vpop.eup %6765  ;;  %v1499_v2 = vadd.f32 1.0, %v6764_v11  ;;  %v992_v41 = vmul.f32 0.5, %v7178_v45 }
 0x1af   : > { %6769 = vtanh.f32 %v1353_v42  ;;  %v1572_v0 = vmul.f32 %v1500_v63, %v996_v55  ;;  %v1498_v19 = vadd.f32 1.0, %v6766_v59 }
 0x1b0   : > { %v1214_v36 = vmul.f32 %v1142_v53, %v7215_v30  ;;  %6771 = vtanh.f32 %v1352_v44  ;;  %v1571_v61 = vmul.f32 %v1499_v2, %v995_v12 }
 0x1b1   : > { %v868_v54 = vpop.f32.mrf.mxu0  ;;  %6773 = vtanh.f32 %v1351_v35  ;;  %v1570_v43 = vmul.f32 %v1498_v19, %v994_v47 }
 0x1b2   : > { %v7224_v46 = vadd.f32 %v6994_v16, %v868_v54  ;;  %v1286_v58 = vadd.f32 %v1214_v36, %v7215_v30  ;;  %6775 = vtanh.f32 %v1350_v56  ;;  %v990_v56 = vmul.f32 0.5, %v7190_v10 }
 0x1b3   : > { %v1628_v6 = vpack.c.bf16 %v1571_v61, %v1570_v43 }
 0x1b4   : > { %v6768_v50 = vpop.eup %6767  ;;  %v1071_v51 = vmul.f32 0.044715, %v7224_v46  ;;  %v1358_v8 = vmul.f32 0.7978846, %v1286_v58 }
 0x1b5   : > { %v1501_v1 = vadd.f32 1.0, %v6768_v50  ;;  %v6770_v3 = vpop.eup %6769 }
 0x1b6   : > { %v1143_v4 = vmul.f32 %v1071_v51, %v7224_v46  ;;  %v6772_v5 = vpop.eup %6771  ;;  %v1497_v7 = vadd.f32 1.0, %v6770_v3  ;;  %6777 = vtanh.f32 %v1358_v8 }
 0x1b7   : > { %v1573_v9 = vmul.f32 %v1501_v1, %v997_v60  ;;  %v6774_v25 = vpop.eup %6773  ;;  %v1496_v34 = vadd.f32 1.0, %v6772_v5  ;;  %v998_v60 = vmul.f32 0.5, %v7215_v30  ;;  %v999_v1 = vmul.f32 0.5, %v7224_v46 }
 0x1b8   : > { %v1215_v22 = vmul.f32 %v1143_v4, %v7224_v46  ;;  %v6776_v38 = vpop.eup %6775  ;;  %v1569_v42 = vmul.f32 %v1497_v7, %v993_v29  ;;  %v1495_v44 = vadd.f32 1.0, %v6774_v25  ;;  %v6390_v29 = vld [vmem:[%s6981_s15 + $0xd8] sm:$0xff] }
 0x1b9   : > { %v871_v23 = vpop.f32.mrf.mxu0  ;;  %v1629_v24 = vpack.c.bf16 %v1573_v9, %v1572_v0  ;;  %v1568_v53 = vmul.f32 %v1496_v34, %v992_v41  ;;  %v1494_v35 = vadd.f32 1.0, %v6776_v38  ;;  %v6389_v0 = vld [vmem:[%s6981_s15 + $0xd0] sm:$0xff] }
 0x1ba   : > { %v7235_v27 = vadd.f32 %v6994_v16, %v871_v23  ;;  %v1287_v28 = vadd.f32 %v1215_v22, %v7224_v46  ;;  %v1567_v58 = vmul.f32 %v1495_v44, %v991_v57 }
 0x1bb   : > { %2011 = vmatpush.bf16.msra.mxu2 %v1629_v24  ;;  %v1627_v11 = vpack.c.bf16 %v1569_v42, %v1568_v53  ;;  %v1566_v63 = vmul.f32 %v1494_v35, %v990_v56 }
 0x1bc   : > { %v1072_v49 = vmul.f32 0.044715, %v7235_v27  ;;  %910 = vmatmul.bf16.gmra.mxu0 %v6388_v20  ;;  %v1359_v17 = vmul.f32 0.7978846, %v1287_v28  ;;  %v6778_v26 = vpop.eup %6777  ;;  %v1000_v25 = vmul.f32 0.5, %v7235_v27 }
 0x1bd   : > { %v1502_v50 = vadd.f32 1.0, %v6778_v26  ;;  %v1626_v62 = vpack.c.bf16 %v1567_v58, %v1566_v63  ;;  %v6391_v58 = vld [vmem:[%s6981_s15 + $0xe0] sm:$0xff] }
 0x1be   : > { %v1144_v52 = vmul.f32 %v1072_v49, %v7235_v27  ;;  %6779 = vtanh.f32 %v1359_v17 }
 0x1bf   : > { %2012 = vmatpush.bf16.msra.mxu2 %v1628_v6  ;;  %v7249_v10 = vmul.f32 %v1502_v50, %v998_v60 }
 0x1c0   : > { %v1216_v36 = vmul.f32 %v1144_v52, %v7235_v27 }
 0x1c1   : > { %v873_v54 = vpop.f32.mrf.mxu0 }
 0x1c2   : > { %v874_v45 = vadd.f32 %v6994_v16, %v873_v54  ;;  %v1288_v59 = vadd.f32 %v1216_v36, %v7235_v27  ;;  %v7281_v27 = vld [vmem:[%s9860_s2] ss:$0 sm:$0xff] }
 0x1c3   : > { %2013 = vmatpush.bf16.msra.mxu2 %v1627_v11 }
 0x1c4   : > { %v6780_v51 = vpop.eup %6779  ;;  %v1073_v55 = vmul.f32 0.044715, %v874_v45  ;;  %v1360_v4 = vmul.f32 0.7978846, %v1288_v59  ;;  %v1001_v28 = vmul.f32 0.5, %v874_v45 }
 0x1c5   : > { %v1503_v2 = vadd.f32 1.0, %v6780_v51 }
 0x1c6   : > { %v1145_v3 = vmul.f32 %v1073_v55, %v874_v45  ;;  %6781 = vtanh.f32 %v1360_v4 }
 0x1c7   : > { %2014 = vmatpush.bf16.msra.mxu2 %v1626_v62  ;;  %v7251_v8 = vmul.f32 %v1503_v2, %v999_v1 }
 0x1c8   : > { %v1217_v9 = vmul.f32 %v1145_v3, %v874_v45 }
 0x1c9   : > { %v876_v12 = vpop.f32.mrf.mxu0  ;;  %v1630_v19 = vpack.c.bf16 %v7251_v8, %v7249_v10  ;;  %v6412_v10 = vld [vmem:[%s9861_s3 + $0x2c] sm:$0xf]  ;;  %v5291_v8 = vld [vmem:[%s9861_s3 + $0x3c] sm:$0xf0] }
 0x1ca   : > { %v877_v5 = vadd.f32 %v6994_v16, %v876_v12  ;;  %v1289_v20 = vadd.f32 %v1217_v9, %v874_v45  ;;  %v6392_v12 = vld [vmem:[%s6981_s15 + $0xe8] sm:$0xff] }
 0x1cb   : > { %2015 = vmatpush.bf16.msra.mxu2 %v1625_v39 }
 0x1cc   : > { %v1074_v30 = vmul.f32 0.044715, %v877_v5  ;;  %915 = vmatmul.bf16.gmra.mxu0 %v6389_v0  ;;  %v1361_v46 = vmul.f32 0.7978846, %v1289_v20  ;;  %v6782_v23 = vpop.eup %6781  ;;  %v1002_v57 = vmul.f32 0.5, %v877_v5 }
 0x1cd   : > { %v1504_v32 = vadd.f32 1.0, %v6782_v23 }
 0x1ce   : > { %v1146_v22 = vmul.f32 %v1074_v30, %v877_v5  ;;  %6783 = vtanh.f32 %v1361_v46  ;;  %v6393_v46 = vld [vmem:[%s6981_s15 + $0xf0] sm:$0xff] }
 0x1cf   : > { %2016 = vmatpush.bf16.msra.mxu2 %v1624_v21  ;;  %v7271_v21 = vmul.f32 %v1504_v32, %v1000_v25 }
 0x1d0   : > { %v1218_v24 = vmul.f32 %v1146_v22, %v877_v5 }
 0x1d1   : > { %v878_v47 = vpop.f32.mrf.mxu0 }
 0x1d2   : > { %v879_v61 = vadd.f32 %v6994_v16, %v878_v47  ;;  %v1290_v7 = vadd.f32 %v1218_v24, %v877_v5 }
 0x1d3   : > { %2017 = vmatpush.bf16.msra.mxu2 %v1623_v15 }
 0x1d4   : > { %v6784_v33 = vpop.eup %6783  ;;  %v1075_v39 = vmul.f32 0.044715, %v879_v61  ;;  %v1362_v18 = vmul.f32 0.7978846, %v1290_v7  ;;  %v1003_v35 = vmul.f32 0.5, %v879_v61  ;;  %v6394_v7 = vld [vmem:[%s6981_s15 + $0xf8] sm:$0xff] }
 0x1d5   : > { %v1505_v43 = vadd.f32 1.0, %v6784_v33 }
 0x1d6   : > { %v1147_v14 = vmul.f32 %v1075_v39, %v879_v61  ;;  %6785 = vtanh.f32 %v1362_v18 }
 0x1d7   : > { %2018 = vmatpush.bf16.msra.mxu2 %v1622_v37  ;;  %v7273_v16 = vmul.f32 %v1505_v43, %v1001_v28 }
 0x1d8   : > { %v1219_v40 = vmul.f32 %v1147_v14, %v879_v61 }
 0x1d9   : > { %v881_v48 = vpop.f32.mrf.mxu0  ;;  %v1631_v15 = vpack.c.bf16 %v7273_v16, %v7271_v21  ;;  %v6424_v21 = vld [vmem:[%s9861_s3 + $0x88] sm:$0xf0]  ;;  %v6398_v16 = vld [vmem:[%s6981_s15 + $0x118] sm:$0xff] }
 0x1da   : > { %v882_v34 = vadd.f32 %v7281_v27, %v881_v48  ;;  %v1291_v38 = vadd.f32 %v1219_v40, %v879_v61 }
 0x1dc   : > { %v1076_v13 = vmul.f32 0.044715, %v882_v34  ;;  %920 = vmatmul.bf16.gmra.mxu0 %v6390_v29  ;;  %v1363_v31 = vmul.f32 0.7978846, %v1291_v38  ;;  %v6786_v49 = vpop.eup %6785  ;;  %v1004_v2 = vmul.f32 0.5, %v882_v34 }
 0x1dd   : > { %v1506_v44 = vadd.f32 1.0, %v6786_v49 }
 0x1de   : > { %v1148_v37 = vmul.f32 %v1076_v13, %v882_v34  ;;  %6787 = vtanh.f32 %v1363_v31 }
 0x1df   : > { %v7285_v11 = vmul.f32 %v1506_v44, %v1002_v57 }
 0x1e0   : > { %v1220_v17 = vmul.f32 %v1148_v37, %v882_v34 }
 0x1e1   : > { %v883_v6 = vpop.f32.mrf.mxu0 }
 0x1e2   : > { %v884_v41 = vadd.f32 %v7281_v27, %v883_v6  ;;  %v1292_v42 = vadd.f32 %v1220_v17, %v882_v34 }
 0x1e4   : > { %v6788_v52 = vpop.eup %6787  ;;  %v1077_v53 = vmul.f32 0.044715, %v884_v41  ;;  %v1364_v54 = vmul.f32 0.7978846, %v1292_v42  ;;  %v1005_v3 = vmul.f32 0.5, %v884_v41 }
 0x1e5   : > { %v1507_v26 = vadd.f32 1.0, %v6788_v52 }
 0x1e6   : > { %v1149_v36 = vmul.f32 %v1077_v53, %v884_v41  ;;  %6789 = vtanh.f32 %v1364_v54 }
 0x1e7   : > { %v7287_v56 = vmul.f32 %v1507_v26, %v1003_v35 }
 0x1e8   : > { %v1221_v45 = vmul.f32 %v1149_v36, %v884_v41 }
 0x1e9   : > { %v886_v59 = vpop.f32.mrf.mxu0  ;;  %v1632_v63 = vpack.c.bf16 %v7287_v56, %v7285_v11  ;;  %v5329_v11 = vld [vmem:[%s9861_s3 + $0x78] sm:$0xf] }
 0x1ea   : > { %v1293_v50 = vadd.f32 %v1221_v45, %v884_v41  ;;  %v7326_v48 = vadd.f32 %v7281_v27, %v886_v59 }
 0x1ec   : > { %925 = vmatmul.bf16.gmra.mxu0 %v6391_v58  ;;  %v1365_v51 = vmul.f32 0.7978846, %v1293_v50  ;;  %v6790_v55 = vpop.eup %6789  ;;  %v1078_v41 = vmul.f32 0.044715, %v7326_v48 }
 0x1ed   : > { %v1508_v60 = vadd.f32 1.0, %v6790_v55  ;;  %v6409_v55 = vld [vmem:[%s9861_s3 + $0x10] sm:$0xf0] }
 0x1ee   : > { %6791 = vtanh.f32 %v1365_v51  ;;  %v1150_v59 = vmul.f32 %v1078_v41, %v7326_v48  ;;  %v5269_v51 = vld [vmem:[%s9861_s3] sm:$0xf] }
 0x1ef   : > { %v7292_v0 = vmul.f32 %v1508_v60, %v1004_v2 }
 0x1f1   : > { %v888_v62 = vpop.f32.mrf.mxu0 }
 0x1f2   : > { %v7319_v43 = vadd.f32 %v7281_v27, %v888_v62  ;;  %v6395_v62 = vld [vmem:[%s6981_s15 + $0x100] sm:$0xff] }
 0x1f4   : > { %v6792_v1 = vpop.eup %6791  ;;  %v1079_v13 = vmul.f32 0.044715, %v7319_v43 }
 0x1f5   : > { %v1509_v4 = vadd.f32 1.0, %v6792_v1 }
 0x1f6   : > { %v1151_v53 = vmul.f32 %v1079_v13, %v7319_v43 }
 0x1f7   : > { %v7294_v9 = vmul.f32 %v1509_v4, %v1005_v3  ;;  %v5270_v3 = vor.u32 %v6409_v55, %v5269_v51 }
 0x1f8   : > { %v1223_v50 = vmul.f32 %v1151_v53, %v7319_v43 }
 0x1f9   : > { %v891_v5 = vpop.f32.mrf.mxu0  ;;  %v1633_v20 = vpack.c.bf16 %v7294_v9, %v7292_v0  ;;  %1965 = vmatmul.bf16.vlgmr.msra.gmra.mxu1 %v5270_v3  ;;  %v5277_v0 = vld [vmem:[%s9861_s3 + $0x8] sm:$0xf]  ;;  %v6410_v9 = vld [vmem:[%s9861_s3 + $0x18] sm:$0xf0] }
 0x1fa   : > { %v7313_v25 = vadd.f32 %v7281_v27, %v891_v5 }
 0x1fc   : > { %930 = vmatmul.bf16.gmra.mxu0 %v6392_v12  ;;  %v1080_v34 = vmul.f32 0.044715, %v7313_v25 }
 0x1fe   : > { %v1152_v52 = vmul.f32 %v1080_v34, %v7313_v25 }
 0x200   : > { %v1224_v45 = vmul.f32 %v1152_v52, %v7313_v25 }
 0x201   : > { %v893_v30 = vpop.f32.mrf.mxu0 }
 0x202   : > { %v7307_v61 = vadd.f32 %v7281_v27, %v893_v30  ;;  %v1296_v30 = vadd.f32 %v1224_v45, %v7313_v25 }
 0x204   : > { %v1081_v29 = vmul.f32 0.044715, %v7307_v61  ;;  %v1009_v51 = vmul.f32 0.5, %v7307_v61 }
 0x206   : > { %v1153_v49 = vmul.f32 %v1081_v29, %v7307_v61 }
 0x208   : > { %v1225_v26 = vmul.f32 %v1153_v49, %v7307_v61 }
 0x209   : > { %v896_v22 = vpop.f32.mrf.mxu0 }
 0x20a   : > { %v7304_v47 = vadd.f32 %v7281_v27, %v896_v22  ;;  %v1297_v2 = vadd.f32 %v1225_v26, %v7307_v61 }
 0x20c   : > { %935 = vmatmul.bf16.gmra.mxu0 %v6393_v46  ;;  %v1082_v33 = vmul.f32 0.044715, %v7304_v47  ;;  %v1222_v46 = vmul.f32 %v1150_v59, %v7326_v48 }
 0x20e   : > { %v1154_v40 = vmul.f32 %v1082_v33, %v7304_v47  ;;  %v1294_v33 = vadd.f32 %v1222_v46, %v7326_v48 }
 0x210   : > { %v1226_v6 = vmul.f32 %v1154_v40, %v7304_v47  ;;  %v1366_v40 = vmul.f32 0.7978846, %v1294_v33 }
 0x211   : > { %v898_v23 = vpop.f32.mrf.mxu0 }
 0x212   : > { %v7301_v24 = vadd.f32 %v7281_v27, %v898_v23  ;;  %v1298_v36 = vadd.f32 %v1226_v6, %v7304_v47  ;;  %v1369_v23 = vmul.f32 0.7978846, %v1297_v2 }
 0x214   : > { %v1083_v32 = vmul.f32 0.044715, %v7301_v24  ;;  %v1370_v12 = vmul.f32 0.7978846, %v1298_v36  ;;  %v1011_v52 = vmul.f32 0.5, %v7301_v24 }
 0x216   : > { %v1155_v18 = vmul.f32 %v1083_v32, %v7301_v24  ;;  %v1368_v32 = vmul.f32 0.7978846, %v1296_v30 }
 0x218   : > { %v1227_v37 = vmul.f32 %v1155_v18, %v7301_v24 }
 0x219   : > { %v901_v39 = vpop.f32.mrf.mxu0 }
 0x21a   : > { %v7316_v28 = vadd.f32 %v7281_v27, %v901_v39  ;;  %v1299_v35 = vadd.f32 %v1227_v37, %v7301_v24 }
 0x21c   : > { %940 = vmatmul.bf16.gmra.mxu0 %v6394_v7  ;;  %v1084_v14 = vmul.f32 0.044715, %v7316_v28  ;;  %v1371_v1 = vmul.f32 0.7978846, %v1299_v35  ;;  %v1295_v7 = vadd.f32 %v1223_v50, %v7319_v43  ;;  %v6414_v35 = vld [vmem:[%s9861_s3 + $0x38] sm:$0xf0] }
 0x21e   : > { %v1156_v38 = vmul.f32 %v1084_v14, %v7316_v28  ;;  %v1367_v14 = vmul.f32 0.7978846, %v1295_v7 }
 0x220   : > { %v1228_v31 = vmul.f32 %v1156_v38, %v7316_v28 }
 0x221   : > { %v903_v17 = vpop.f32.mrf.mxu0 }
 0x222   : > { %v904_v42 = vadd.f32 %v7281_v27, %v903_v17  ;;  %v1300_v44 = vadd.f32 %v1228_v31, %v7316_v28  ;;  %v1012_v31 = vmul.f32 0.5, %v7316_v28  ;;  %v6396_v28 = vld [vmem:[%s6981_s15 + $0x108] sm:$0xff] }
 0x224   : > { %v1085_v57 = vmul.f32 0.044715, %v904_v42  ;;  %v1372_v58 = vmul.f32 0.7978846, %v1300_v44  ;;  %v1013_v37 = vmul.f32 0.5, %v904_v42 }
 0x226   : > { %v1157_v54 = vmul.f32 %v1085_v57, %v904_v42  ;;  %6793 = vtanh.f32 %v1372_v58  ;;  %v5289_v57 = vld [vmem:[%s9861_s3 + $0x28] sm:$0xf]  ;;  %v1010_v58 = vmul.f32 0.5, %v7304_v47  ;;  %v1007_v47 = vmul.f32 0.5, %v7319_v43  ;;  %v6397_v43 = vld [vmem:[%s6981_s15 + $0x110] sm:$0xff] }
 0x227   : > { %6795 = vtanh.f32 %v1371_v1  ;;  %v1008_v1 = vmul.f32 0.5, %v7313_v25  ;;  %v5309_v25 = vld [vmem:[%s9861_s3 + $0x50] sm:$0xf] }
 0x228   : > { %v1229_v60 = vmul.f32 %v1157_v54, %v904_v42  ;;  %6797 = vtanh.f32 %v1370_v12 }
 0x229   : > { %v7354_v4 = vpop.f32.mrf.mxu0 }
 0x22a   : > { %v1301_v5 = vadd.f32 %v1229_v60, %v904_v42  ;;  %v5290_v42 = vor.u32 %v6414_v35, %v5289_v57  ;;  %v6420_v57 = vld [vmem:[%s9861_s3 + $0x68] sm:$0xf0] }
 0x22c   : > { %945 = vmatmul.bf16.gmra.mxu0 %v6395_v62  ;;  %v1373_v22 = vmul.f32 0.7978846, %v1301_v5  ;;  %v6794_v39 = vpop.eup %6793  ;;  %1970 = vmatmul.bf16.gmra.mxu1 %v5290_v42 }
 0x22d   : > { %v6796_v29 = vpop.eup %6795  ;;  %v1516_v38 = vadd.f32 1.0, %v6794_v39 }
 0x22e   : > { %6799 = vtanh.f32 %v1373_v22  ;;  %v6798_v34 = vpop.eup %6797  ;;  %v1515_v17 = vadd.f32 1.0, %v6796_v29  ;;  %v1006_v22 = vmul.f32 0.5, %v7326_v48  ;;  %v6407_v48 = vld [vmem:[%s9861_s3 + $0x4] sm:$0xf] }
 0x22f   : > { %6801 = vtanh.f32 %v1369_v23  ;;  %v1588_v41 = vmul.f32 %v1516_v38, %v1012_v31  ;;  %v1514_v53 = vadd.f32 1.0, %v6798_v34  ;;  %v5297_v34 = vld [vmem:[%s9861_s3 + $0x30] sm:$0xf]  ;;  %v6415_v38 = vld [vmem:[%s9861_s3 + $0x40] sm:$0xf0] }
 0x230   : > { %6803 = vtanh.f32 %v1368_v32  ;;  %v1587_v45 = vmul.f32 %v1515_v17, %v1011_v52  ;;  %v6419_v32 = vld [vmem:[%s9861_s3 + $0x60] sm:$0xf0]  ;;  %v5349_v31 = vld [vmem:[%s9861_s3 + $0xa0] sm:$0xf] }
 0x231   : > { %v7360_v18 = vpop.f32.mrf.mxu0  ;;  %6805 = vtanh.f32 %v1367_v14  ;;  %v1586_v50 = vmul.f32 %v1514_v53, %v1010_v58  ;;  %v5310_v33 = vor.u32 %v6419_v32, %v5309_v25  ;;  %v5271_v14 = vld [vmem:[%s9861_s3 + $0x14] sm:$0xf0]  ;;  %v6422_v58 = vld [vmem:[%s9861_s3 + $0x7c] sm:$0xf]  ;;  %v6444_v32 = vld [vmem:[%s9861_s3 + $0x128] sm:$0xf0] }
 0x232   : > { %6807 = vtanh.f32 %v1366_v40  ;;  %v5274_v29 = vor.u32 %v6407_v48, %v5271_v14  ;;  %v5317_v53 = vld [vmem:[%s9861_s3 + $0x58] sm:$0xf] }
 0x233   : > { %v1636_v60 = vpack.c.bf16 %v1587_v45, %v1586_v50  ;;  %v5318_v35 = vor.u32 %v6420_v57, %v5317_v53  ;;  %v5331_v45 = vld [vmem:[%s9861_s3 + $0x8c] sm:$0xf0]  ;;  %v5337_v50 = vld [vmem:[%s9861_s3 + $0x80] sm:$0xf]  ;;  %v5409_v25 = vld [vmem:[%s9861_s3 + $0x118] sm:$0xf] }
 0x234   : > { %v6800_v13 = vpop.eup %6799  ;;  %2019 = vmatmul.bf16.vlgmr.msra.gmra.mxu2 %v5274_v29 }
 0x235   : > { %v1517_v49 = vadd.f32 1.0, %v6800_v13  ;;  %v6802_v6 = vpop.eup %6801  ;;  %v5298_v13 = vor.u32 %v6415_v38, %v5297_v34  ;;  %v6432_v34 = vld [vmem:[%s9861_s3 + $0xcc] sm:$0xf]  ;;  %v5371_v38 = vld [vmem:[%s9861_s3 + $0xdc] sm:$0xf0] }
 0x236   : > { %v6804_v26 = vpop.eup %6803  ;;  %v1513_v59 = vadd.f32 1.0, %v6802_v6  ;;  %v6417_v6 = vld [vmem:[%s9861_s3 + $0x54] sm:$0xf] }
 0x237   : > { %v1589_v44 = vmul.f32 %v1517_v49, %v1013_v37  ;;  %v6806_v24 = vpop.eup %6805  ;;  %v1512_v55 = vadd.f32 1.0, %v6804_v26  ;;  %v6429_v37 = vld [vmem:[%s9861_s3 + $0xb0] sm:$0xf0]  ;;  %v5369_v26 = vld [vmem:[%s9861_s3 + $0xc8] sm:$0xf] }
 0x238   : > { %v6808_v62 = vpop.eup %6807  ;;  %v1585_v2 = vmul.f32 %v1513_v59, %v1009_v51  ;;  %v1511_v3 = vadd.f32 1.0, %v6806_v24  ;;  %v5350_v49 = vor.u32 %v6429_v37, %v5349_v31  ;;  %v5334_v59 = vor.u32 %v6422_v58, %v5331_v45  ;;  %v6425_v51 = vld [vmem:[%s9861_s3 + $0x90] sm:$0xf0] }
 0x239   : > { %v7371_v36 = vpop.f32.mrf.mxu0  ;;  %v1637_v54 = vpack.c.bf16 %v1589_v44, %v1588_v41  ;;  %v1584_v12 = vmul.f32 %v1512_v55, %v1008_v1  ;;  %v1510_v5 = vadd.f32 1.0, %v6808_v62  ;;  %v5311_v41 = vld [vmem:[%s9861_s3 + $0x64] sm:$0xf0]  ;;  %v5338_v55 = vor.u32 %v6425_v51, %v5337_v50  ;;  %v5389_v62 = vld [vmem:[%s9861_s3 + $0xf0] sm:$0xf] }
 0x23a   : > { %v1583_v61 = vmul.f32 %v1511_v3, %v1007_v47  ;;  %v5314_v44 = vor.u32 %v6417_v6, %v5311_v41  ;;  %v6427_v3 = vld [vmem:[%s9861_s3 + $0xa4] sm:$0xf]  ;;  %v5374_v31 = vor.u32 %v6432_v34, %v5371_v38 }
 0x23b   : > { %2065 = vmatpush.bf16.msra.mxu3 %v1637_v54  ;;  %v1635_v46 = vpack.c.bf16 %v1585_v2, %v1584_v12  ;;  %v1582_v23 = vmul.f32 %v1510_v5, %v1006_v22  ;;  %v5351_v12 = vld [vmem:[%s9861_s3 + $0xb4] sm:$0xf0]  ;;  %v6430_v22 = vld [vmem:[%s9861_s3 + $0xb8] sm:$0xf0] }
 0x23c   : > { %950 = vmatmul.bf16.gmra.mxu0 %v6396_v28  ;;  %1975 = vmatmul.bf16.gmra.mxu1 %v5310_v33  ;;  %v6434_v28 = vld [vmem:[%s9861_s3 + $0xd8] sm:$0xf0]  ;;  %v5354_v47 = vor.u32 %v6427_v3, %v5351_v12  ;;  %v5410_v33 = vor.u32 %v6444_v32, %v5409_v25 }
 0x23d   : > { %v1634_v7 = vpack.c.bf16 %v1583_v61, %v1582_v23  ;;  %v5370_v42 = vor.u32 %v6434_v28, %v5369_v26 }
 0x23f   : > { %2066 = vmatpush.bf16.msra.mxu3 %v1636_v60  ;;  %v6439_v60 = vld [vmem:[%s9861_s3 + $0x100] sm:$0xf0] }
 0x240   : > { %v5390_v1 = vor.u32 %v6439_v60, %v5389_v62 }
 0x241   : > { %v7377_v30 = vpop.f32.mrf.mxu0 }
 0x242   : > { %v7562_v28 = vadd.f32 %v7281_v27, %v7377_v30 }
 0x243   : > { %2067 = vmatpush.bf16.msra.mxu3 %v1635_v46  ;;  %v5357_v46 = vld [vmem:[%s9861_s3 + $0xa8] sm:$0xf] }
 0x244   : > { %v1089_v12 = vmul.f32 0.044715, %v7562_v28 }
 0x247   : > { %2068 = vmatpush.bf16.msra.mxu3 %v1634_v7  ;;  %v5358_v7 = vor.u32 %v6430_v22, %v5357_v46 }
 0x249   : > { %v7387_v39 = vpop.f32.mrf.mxu0 }
 0x24b   : > { %2069 = vmatpush.bf16.msra.mxu3 %v1633_v20  ;;  %v5278_v20 = vor.u32 %v6410_v9, %v5277_v0 }
 0x24c   : > { %955 = vmatmul.bf16.gmra.mxu0 %v6397_v43 }
 0x24f   : > { %2070 = vmatpush.bf16.msra.mxu3 %v1632_v63 }
 0x251   : > { %v7401_v40 = vpop.f32.mrf.mxu0 }
 0x253   : > { %2071 = vmatpush.bf16.msra.mxu3 %v1631_v15  ;;  %v5330_v15 = vor.u32 %v6424_v21, %v5329_v11 }
 0x255   : > { %1980 = vmatmul.bf16.gmra.mxu1 %v5330_v15 }
 0x257   : > { %2072 = vmatpush.bf16.msra.mxu3 %v1630_v19  ;;  %v5294_v19 = vor.u32 %v6412_v10, %v5291_v8 }
 0x259   : > { %v7422_v56 = vpop.f32.mrf.mxu0  ;;  %2024 = vmatmul.bf16.gmra.mxu2 %v5294_v19 }
 0x25a   : > { %2073 = vmatmul.bf16.vlgmr.msra.gmra.mxu3 %v5278_v20  ;;  %v7543_v41 = vadd.f32 %v7281_v27, %v7422_v56  ;;  %v7558_v56 = vadd.f32 %v7281_v27, %v7360_v18 }
 0x25c   : > { %960 = vmatmul.bf16.gmra.mxu0 %v6398_v16 }
 0x261   : > { %v7430_v63 = vpop.f32.mrf.mxu0 }
 0x265   : > { %1985 = vmatmul.bf16.gmra.mxu1 %v5350_v49 }
 0x269   : > { %v926_v17 = vpop.f32.mrf.mxu0  ;;  %2029 = vmatmul.bf16.gmra.mxu2 %v5314_v44 }
 0x26a   : > { %2078 = vmatmul.bf16.gmra.mxu3 %v5298_v13  ;;  %v7522_v15 = vadd.f32 %v7281_v27, %v926_v17  ;;  %v7535_v13 = vadd.f32 %v7281_v27, %v7430_v63  ;;  %v7549_v63 = vadd.f32 %v7281_v27, %v7354_v4  ;;  %v5377_v4 = vld [vmem:[%s9861_s3 + $0xd0] sm:$0xf] }
 0x26c   : > { %v1094_v44 = vmul.f32 0.044715, %v7522_v15  ;;  %v1093_v58 = vmul.f32 0.044715, %v7535_v13 }
 0x26e   : > { %v1166_v51 = vmul.f32 %v1094_v44, %v7522_v15  ;;  %v1165_v3 = vmul.f32 %v1093_v58, %v7535_v13 }
 0x271   : > { %v928_v52 = vpop.f32.mrf.mxu0 }
 0x272   : > { %v7516_v20 = vadd.f32 %v7281_v27, %v928_v52 }
 0x274   : > { %v1095_v6 = vmul.f32 0.044715, %v7516_v20 }
 0x275   : > { %1990 = vmatmul.bf16.gmra.mxu1 %v5370_v42  ;;  %v7566_v42 = vadd.f32 %v7281_v27, %v7401_v40  ;;  %v7581_v40 = vadd.f32 %v7281_v27, %v7387_v39 }
 0x277   : > { %v1091_v39 = vmul.f32 0.044715, %v7566_v42  ;;  %v1090_v25 = vmul.f32 0.044715, %v7581_v40 }
 0x279   : > { %v931_v54 = vpop.f32.mrf.mxu0  ;;  %2034 = vmatmul.bf16.gmra.mxu2 %v5334_v59  ;;  %v1167_v59 = vmul.f32 %v1095_v6, %v7516_v20 }
 0x27a   : > { %2083 = vmatmul.bf16.gmra.mxu3 %v5318_v35  ;;  %v7510_v0 = vadd.f32 %v7281_v27, %v931_v54  ;;  %v6435_v54 = vld [vmem:[%s9861_s3 + $0xe0] sm:$0xf0] }
 0x27b   : > { %v5378_v60 = vor.u32 %v6435_v54, %v5377_v4  ;;  %v1239_v22 = vmul.f32 %v1167_v59, %v7516_v20  ;;  %v1087_v54 = vmul.f32 0.044715, %v7558_v56 }
 0x27c   : > { %v1096_v8 = vmul.f32 0.044715, %v7510_v0 }
 0x27e   : > { %v1168_v26 = vmul.f32 %v1096_v8, %v7510_v0  ;;  %v1163_v8 = vmul.f32 %v1091_v39, %v7566_v42  ;;  %v6440_v39 = vld [vmem:[%s9861_s3 + $0x108] sm:$0xf0] }
 0x281   : > { %v933_v24 = vpop.f32.mrf.mxu0 }
 0x282   : > { %v7505_v43 = vadd.f32 %v7281_v27, %v933_v24  ;;  %v1092_v24 = vmul.f32 0.044715, %v7543_v41 }
 0x284   : > { %v1097_v16 = vmul.f32 0.044715, %v7505_v43 }
 0x285   : > { %1995 = vmatmul.bf16.gmra.mxu1 %v5390_v1  ;;  %v1240_v1 = vmul.f32 %v1168_v26, %v7510_v0 }
 0x286   : > { %v1169_v17 = vmul.f32 %v1097_v16, %v7505_v43 }
 0x288   : > { %v1241_v30 = vmul.f32 %v1169_v17, %v7505_v43 }
 0x289   : > { %v936_v2 = vpop.f32.mrf.mxu0  ;;  %2039 = vmatmul.bf16.gmra.mxu2 %v5354_v47 }
 0x28a   : > { %2088 = vmatmul.bf16.gmra.mxu3 %v5338_v55  ;;  %v7496_v23 = vadd.f32 %v7281_v27, %v936_v2  ;;  %v7590_v2 = vadd.f32 %v7281_v27, %v7371_v36  ;;  %v1313_v46 = vadd.f32 %v1241_v30, %v7505_v43  ;;  %v6449_v36 = vld [vmem:[%s9861_s3 + $0x150] sm:$0xf0]  ;;  %v1235_v30 = vmul.f32 %v1163_v8, %v7566_v42 }
 0x28c   : > { %v1098_v14 = vmul.f32 0.044715, %v7496_v23  ;;  %v1088_v16 = vmul.f32 0.044715, %v7590_v2  ;;  %v1385_v38 = vmul.f32 0.7978846, %v1313_v46 }
 0x28e   : > { %v1170_v10 = vmul.f32 %v1098_v14, %v7496_v23  ;;  %v1164_v14 = vmul.f32 %v1092_v24, %v7543_v41  ;;  %v1160_v26 = vmul.f32 %v1088_v16, %v7590_v2 }
 0x290   : > { %v1242_v53 = vmul.f32 %v1170_v10, %v7496_v23  ;;  %v1237_v10 = vmul.f32 %v1165_v3, %v7535_v13  ;;  %v1236_v44 = vmul.f32 %v1164_v14, %v7543_v41  ;;  %v5397_v3 = vld [vmem:[%s9861_s3 + $0xf8] sm:$0xf] }
 0x291   : > { %v938_v5 = vpop.f32.mrf.mxu0  ;;  %v5398_v16 = vor.u32 %v6440_v39, %v5397_v3  ;;  %v1023_v39 = vmul.f32 0.5, %v7516_v20 }
 0x292   : > { %v7493_v61 = vadd.f32 %v7281_v27, %v938_v5  ;;  %v1314_v50 = vadd.f32 %v1242_v53, %v7496_v23  ;;  %v5391_v53 = vld [vmem:[%s9861_s3 + $0x104] sm:$0xf0] }
 0x294   : > { %v1099_v48 = vmul.f32 0.044715, %v7493_v61 }
 0x295   : > { %2000 = vmatmul.bf16.gmra.mxu1 %v5410_v33  ;;  %v1386_v33 = vmul.f32 0.7978846, %v1314_v50 }
 0x296   : > { %v1171_v21 = vmul.f32 %v1099_v48, %v7493_v61 }
 0x298   : > { %v1243_v49 = vmul.f32 %v1171_v21, %v7493_v61  ;;  %v1238_v21 = vmul.f32 %v1166_v51, %v7522_v15  ;;  %v1308_v51 = vadd.f32 %v1236_v44, %v7543_v41 }
 0x299   : > { %v941_v29 = vpop.f32.mrf.mxu0  ;;  %2044 = vmatmul.bf16.gmra.mxu2 %v5374_v31  ;;  %v1311_v31 = vadd.f32 %v1239_v22, %v7516_v20 }
 0x29a   : > { %v7513_v9 = vadd.f32 %v7281_v27, %v941_v29  ;;  %2093 = vmatmul.bf16.gmra.mxu3 %v5358_v7  ;;  %v1315_v45 = vadd.f32 %v1243_v49, %v7493_v61  ;;  %v5429_v7 = vld [vmem:[%s9861_s3 + $0x140] sm:$0xf]  ;;  %v1162_v49 = vmul.f32 %v1090_v25, %v7581_v40  ;;  %v1310_v6 = vadd.f32 %v1238_v21, %v7522_v15 }
 0x29b   : > { %v5430_v48 = vor.u32 %v6449_v36, %v5429_v7  ;;  %v1307_v7 = vadd.f32 %v1235_v30, %v7566_v42  ;;  %v5411_v30 = vld [vmem:[%s9861_s3 + $0x12c] sm:$0xf0] }
 0x29c   : > { %v1100_v11 = vmul.f32 0.044715, %v7513_v9  ;;  %v1387_v5 = vmul.f32 0.7978846, %v1315_v45  ;;  %v1309_v45 = vadd.f32 %v1237_v10, %v7535_v13  ;;  %v1382_v50 = vmul.f32 0.7978846, %v1310_v6 }
 0x29d   : > { %v1028_v25 = vmul.f32 0.5, %v7513_v9 }
 0x29e   : > { %v1172_v19 = vmul.f32 %v1100_v11, %v7513_v9  ;;  %v1312_v11 = vadd.f32 %v1240_v1, %v7510_v0  ;;  %v7635_v1 = vpop.f32.mrf.mxu1  ;;  %v1381_v22 = vmul.f32 0.7978846, %v1309_v45  ;;  %v6442_v45 = vld [vmem:[%s9861_s3 + $0x11c] sm:$0xf] }
 0x2a0   : > { %v1244_v37 = vmul.f32 %v1172_v19, %v7513_v9  ;;  %v1161_v19 = vmul.f32 %v1089_v12, %v7562_v28  ;;  %v1384_v17 = vmul.f32 0.7978846, %v1312_v11  ;;  %v1232_v12 = vmul.f32 %v1160_v26, %v7590_v2 }
 0x2a1   : > { %v943_v52 = vpop.f32.mrf.mxu0  ;;  %v1380_v11 = vmul.f32 0.7978846, %v1308_v51  ;;  %v1025_v26 = vmul.f32 0.5, %v7505_v43 }
 0x2a2   : > { %v7552_v57 = vadd.f32 %v7281_v27, %v943_v52  ;;  %v1316_v35 = vadd.f32 %v1244_v37, %v7513_v9  ;;  %v1086_v37 = vmul.f32 0.044715, %v7549_v63  ;;  %v6437_v52 = vld [vmem:[%s9861_s3 + $0xf4] sm:$0xf]  ;;  %v1233_v4 = vmul.f32 %v1161_v19, %v7562_v28 }
 0x2a3   : > { %v1027_v19 = vmul.f32 0.5, %v7493_v61 }
 0x2a4   : > { %v1101_v18 = vmul.f32 0.044715, %v7552_v57  ;;  %v1388_v62 = vmul.f32 0.7978846, %v1316_v35  ;;  %v5394_v35 = vor.u32 %v6437_v52, %v5391_v53  ;;  %v1305_v36 = vadd.f32 %v1233_v4, %v7562_v28 }
 0x2a5   : > { %2005 = vmatmul.bf16.gmra.mxu1 %v5430_v48  ;;  %v1304_v53 = vadd.f32 %v1232_v12, %v7590_v2 }
 0x2a6   : > { %v1173_v55 = vmul.f32 %v1101_v18, %v7552_v57  ;;  %6809 = vtanh.f32 %v1388_v62  ;;  %v1383_v18 = vmul.f32 0.7978846, %v1311_v31  ;;  %v1379_v31 = vmul.f32 0.7978846, %v1307_v7  ;;  %v7667_v43 = vpop.f32.mrf.mxu1 }
 0x2a7   : > { %6811 = vtanh.f32 %v1387_v5  ;;  %v1159_v5 = vmul.f32 %v1087_v54, %v7558_v56  ;;  %v1377_v54 = vmul.f32 0.7978846, %v1305_v36  ;;  %v1022_v7 = vmul.f32 0.5, %v7522_v15 }
 0x2a8   : > { %v1245_v47 = vmul.f32 %v1173_v55, %v7552_v57  ;;  %6813 = vtanh.f32 %v1386_v33  ;;  %v1234_v55 = vmul.f32 %v1162_v49, %v7581_v40  ;;  %v1029_v33 = vmul.f32 0.5, %v7552_v57 }
 0x2a9   : > { %v7605_v32 = vpop.f32.mrf.mxu0  ;;  %2049 = vmatmul.bf16.gmra.mxu2 %v5394_v35  ;;  %v1231_v9 = vmul.f32 %v1159_v5, %v7558_v56  ;;  %v1026_v49 = vmul.f32 0.5, %v7496_v23 }
 0x2aa   : > { %v1317_v29 = vadd.f32 %v1245_v47, %v7552_v57  ;;  %2098 = vmatmul.bf16.gmra.mxu3 %v5378_v60  ;;  %v1158_v47 = vmul.f32 %v1086_v37, %v7549_v63  ;;  %v1306_v21 = vadd.f32 %v1234_v55, %v7581_v40  ;;  %v5414_v55 = vor.u32 %v6442_v45, %v5411_v30 }
 0x2ab   : > { %v1303_v23 = vadd.f32 %v1231_v9, %v7558_v56 }
 0x2ac   : > { %v1389_v34 = vmul.f32 0.7978846, %v1317_v29  ;;  %v6810_v58 = vpop.eup %6809  ;;  %v1378_v52 = vmul.f32 0.7978846, %v1306_v21  ;;  %v1230_v61 = vmul.f32 %v1158_v47, %v7549_v63  ;;  %v6445_v21 = vld [vmem:[%s9861_s3 + $0x130] sm:$0xf0] }
 0x2ad   : > { %v6812_v24 = vpop.eup %6811  ;;  %v1532_v60 = vadd.f32 1.0, %v6810_v58  ;;  %v1375_v5 = vmul.f32 0.7978846, %v1303_v23 }
 0x2ae   : > { %6815 = vtanh.f32 %v1389_v34  ;;  %v6814_v62 = vpop.eup %6813  ;;  %v1531_v14 = vadd.f32 1.0, %v6812_v24 }
 0x2af   : > { %6817 = vtanh.f32 %v1385_v38  ;;  %v1604_v10 = vmul.f32 %v1532_v60, %v1028_v25  ;;  %v1530_v34 = vadd.f32 1.0, %v6814_v62  ;;  %v1302_v60 = vadd.f32 %v1230_v61, %v7549_v63  ;;  %v6447_v61 = vld [vmem:[%s9861_s3 + $0x144] sm:$0xf] }
 0x2b0   : > { %6819 = vtanh.f32 %v1384_v17  ;;  %v1603_v17 = vmul.f32 %v1531_v14, %v1027_v19 }
 0x2b1   : > { %v7631_v59 = vpop.f32.mrf.mxu0  ;;  %6821 = vtanh.f32 %v1383_v18  ;;  %v1602_v35 = vmul.f32 %v1530_v34, %v1026_v49  ;;  %v1024_v18 = vmul.f32 0.5, %v7510_v0  ;;  %v1376_v0 = vmul.f32 0.7978846, %v1304_v53 }
 0x2b2   : > { %6823 = vtanh.f32 %v1382_v50 }
 0x2b3   : > { %6825 = vtanh.f32 %v1381_v22  ;;  %v1644_v24 = vpack.c.bf16 %v1603_v17, %v1602_v35 }
 0x2b4   : > { %v6816_v46 = vpop.eup %6815  ;;  %6827 = vtanh.f32 %v1380_v11  ;;  %v5417_v11 = vld [vmem:[%s9861_s3 + $0x120] sm:$0xf] }
 0x2b5   : > { %v1533_v48 = vadd.f32 1.0, %v6816_v46  ;;  %v6818_v29 = vpop.eup %6817  ;;  %6829 = vtanh.f32 %v1379_v31  ;;  %v1019_v31 = vmul.f32 0.5, %v7566_v42  ;;  %v5431_v42 = vld [vmem:[%s9861_s3 + $0x154] sm:$0xf0] }
 0x2b6   : > { %v6820_v38 = vpop.eup %6819  ;;  %v1529_v6 = vadd.f32 1.0, %v6818_v29  ;;  %6831 = vtanh.f32 %v1378_v52  ;;  %v1021_v29 = vmul.f32 0.5, %v7535_v13  ;;  %v5434_v45 = vor.u32 %v6447_v61, %v5431_v42 }
 0x2b7   : > { %v1605_v8 = vmul.f32 %v1533_v48, %v1029_v33  ;;  %v6822_v44 = vpop.eup %6821  ;;  %v1528_v4 = vadd.f32 1.0, %v6820_v38  ;;  %6833 = vtanh.f32 %v1377_v54  ;;  %v1374_v48 = vmul.f32 0.7978846, %v1302_v60 }
 0x2b8   : > { %v6824_v58 = vpop.eup %6823  ;;  %v1601_v50 = vmul.f32 %v1529_v6, %v1025_v26  ;;  %v1527_v51 = vadd.f32 1.0, %v6822_v44  ;;  %6835 = vtanh.f32 %v1376_v0  ;;  %v5418_v38 = vor.u32 %v6445_v21, %v5417_v11 }
 0x2b9   : > { %v7653_v37 = vpop.f32.mrf.mxu0  ;;  %v1645_v57 = vpack.c.bf16 %v1605_v8, %v1604_v10  ;;  %v6826_v62 = vpop.eup %6825  ;;  %v1600_v3 = vmul.f32 %v1528_v4, %v1024_v18  ;;  %v1526_v12 = vadd.f32 1.0, %v6824_v58  ;;  %2054 = vmatmul.bf16.gmra.mxu2 %v5414_v55  ;;  %6837 = vtanh.f32 %v1375_v5 }
 0x2ba   : > { %2103 = vmatmul.bf16.gmra.mxu3 %v5398_v16  ;;  %v6828_v47 = vpop.eup %6827  ;;  %v1599_v36 = vmul.f32 %v1527_v51, %v1023_v39  ;;  %v1525_v25 = vadd.f32 1.0, %v6826_v62  ;;  %v1020_v10 = vmul.f32 0.5, %v7543_v41  ;;  %6839 = vtanh.f32 %v1374_v48  ;;  %v5437_v39 = vld [vmem:[%s9861_s3 + $0x148] sm:$0xf] }
 0x2bb   : > { %2119 = vmatpush.bf16.msrb.mxu1 %v1645_v57  ;;  %v1643_v22 = vpack.c.bf16 %v1601_v50, %v1600_v3  ;;  %v6830_v33 = vpop.eup %6829  ;;  %v1598_v14 = vmul.f32 %v1526_v12, %v1022_v7  ;;  %v1524_v20 = vadd.f32 1.0, %v6828_v47  ;;  %v7683_v57 = vpop.f32.mrf.mxu1  ;;  %v1018_v44 = vmul.f32 0.5, %v7581_v40 }
 0x2bc   : > { %v6832_v15 = vpop.eup %6831  ;;  %v1597_v8 = vmul.f32 %v1525_v25, %v1021_v29  ;;  %v1523_v19 = vadd.f32 1.0, %v6830_v33  ;;  %v1017_v26 = vmul.f32 0.5, %v7562_v28  ;;  %v1016_v40 = vmul.f32 0.5, %v7590_v2  ;;  %v6408_v28 = vld [vmem:[%s9861_s3 + $0xc] sm:$0xf]  ;;  %v2020_v2 = vpop.f32.mrf.mxu2 }
 0x2bd   : > { %v1642_v16 = vpack.c.bf16 %v1599_v36, %v1598_v14  ;;  %v6834_v34 = vpop.eup %6833  ;;  %v1596_v13 = vmul.f32 %v1524_v20, %v1020_v10  ;;  %v1522_v9 = vadd.f32 1.0, %v6832_v15  ;;  %v1014_v62 = vmul.f32 0.5, %v7549_v63  ;;  %v6450_v63 = vld [vmem:[%s9861_s3 + $0x158] sm:$0xf0] }
 0x2be   : > { %v6836_v49 = vpop.eup %6835  ;;  %v1595_v52 = vmul.f32 %v1523_v19, %v1019_v31  ;;  %v1521_v53 = vadd.f32 1.0, %v6834_v34  ;;  %v7711_v12 = vadd.f32 %v2020_v2, %v7635_v1  ;;  %v5438_v36 = vor.u32 %v6450_v63, %v5437_v39 }
 0x2bf   : > { %2120 = vmatpush.bf16.msrb.mxu1 %v1644_v24  ;;  %v1641_v6 = vpack.c.bf16 %v1597_v8, %v1596_v13  ;;  %v6838_v41 = vpop.eup %6837  ;;  %v1594_v35 = vmul.f32 %v1522_v9, %v1018_v44  ;;  %v1520_v4 = vadd.f32 1.0, %v6836_v49  ;;  %v1015_v24 = vmul.f32 0.5, %v7558_v56  ;;  %v5279_v56 = vld [vmem:[%s9861_s3 + $0x1c] sm:$0xf0] }
 0x2c0   : > { %v6840_v54 = vpop.eup %6839  ;;  %v1593_v18 = vmul.f32 %v1521_v53, %v1017_v26  ;;  %v1519_v23 = vadd.f32 1.0, %v6838_v41  ;;  %v5282_v7 = vor.u32 %v6408_v28, %v5279_v56  ;;  %v7727_v14 = vadd.f32 %v7281_v27, %v7653_v37  ;;  %v5299_v53 = vld [vmem:[%s9861_s3 + $0x44] sm:$0xf0] }
 0x2c1   : > { %v7671_v46 = vpop.f32.mrf.mxu0  ;;  %v1640_v58 = vpack.c.bf16 %v1595_v52, %v1594_v35  ;;  %v1592_v30 = vmul.f32 %v1520_v4, %v1016_v40  ;;  %v1518_v50 = vadd.f32 1.0, %v6840_v54  ;;  %v6413_v52 = vld [vmem:[%s9861_s3 + $0x34] sm:$0xf] }
 0x2c2   : > { %v1591_v0 = vmul.f32 %v1519_v23, %v1015_v24  ;;  %v7721_v25 = vadd.f32 %v7281_v27, %v7671_v46  ;;  %v7738_v46 = vadd.f32 %v7281_v27, %v7631_v59  ;;  %v1104_v8 = vmul.f32 0.044715, %v7727_v14 }
 0x2c3   : > { %2121 = vmatpush.bf16.msrb.mxu1 %v1643_v22  ;;  %v1639_v55 = vpack.c.bf16 %v1593_v18, %v1592_v30  ;;  %v7696_v60 = vpop.f32.mrf.mxu1  ;;  %v1590_v3 = vmul.f32 %v1518_v50, %v1014_v62 }
 0x2c4   : > { %v7732_v20 = vpop.f32.mrf.mxu2  ;;  %v1105_v37 = vmul.f32 0.044715, %v7721_v25  ;;  %v1103_v13 = vmul.f32 0.044715, %v7738_v46  ;;  %v1176_v44 = vmul.f32 %v1104_v8, %v7727_v14 }
 0x2c5   : > { %v1638_v22 = vpack.c.bf16 %v1591_v0, %v1590_v3 }
 0x2c6   : > { %v1175_v26 = vmul.f32 %v1103_v13, %v7738_v46 }
 0x2c7   : > { %2122 = vmatpush.bf16.msrb.mxu1 %v1642_v16  ;;  %v7745_v16 = vadd.f32 %v7281_v27, %v7605_v32  ;;  %v6858_v32 = vld [vmem:[%s9860_s2] ss:$0 sm:$0xff] }
 0x2c8   : > { %v1247_v50 = vmul.f32 %v1175_v26, %v7738_v46  ;;  %v1033_v26 = vmul.f32 0.5, %v7721_v25 }
 0x2c9   : > { %v956_v17 = vpop.f32.mrf.mxu0  ;;  %2059 = vmatmul.bf16.gmra.mxu2 %v5434_v45  ;;  %v1102_v31 = vmul.f32 0.044715, %v7745_v16  ;;  %v1248_v45 = vmul.f32 %v1176_v44, %v7727_v14 }
 0x2ca   : > { %2108 = vmatmul.bf16.gmra.mxu3 %v5418_v38  ;;  %v7717_v5 = vadd.f32 %v7281_v27, %v956_v17  ;;  %v1177_v38 = vmul.f32 %v1105_v37, %v7721_v25  ;;  %v1319_v56 = vadd.f32 %v1247_v50, %v7738_v46  ;;  %v5319_v37 = vld [vmem:[%s9861_s3 + $0x6c] sm:$0xf0] }
 0x2cb   : > { %2123 = vmatpush.bf16.msrb.mxu1 %v1641_v6  ;;  %v7734_v11 = vpop.f32.mrf.mxu1  ;;  %v1174_v40 = vmul.f32 %v1102_v31, %v7745_v16  ;;  %v1320_v62 = vadd.f32 %v1248_v45, %v7727_v14 }
 0x2cc   : > { %v1106_v48 = vmul.f32 0.044715, %v7717_v5  ;;  %v1249_v35 = vmul.f32 %v1177_v38, %v7721_v25 }
 0x2cd   : > { %v1246_v0 = vmul.f32 %v1174_v40, %v7745_v16  ;;  %v1392_v39 = vmul.f32 0.7978846, %v1320_v62 }
 0x2ce   : > { %v1178_v10 = vmul.f32 %v1106_v48, %v7717_v5  ;;  %v1321_v24 = vadd.f32 %v1249_v35, %v7721_v25  ;;  %v6423_v25 = vld [vmem:[%s9861_s3 + $0x84] sm:$0xf] }
 0x2cf   : > { %2124 = vmatpush.bf16.msrb.mxu1 %v1640_v58  ;;  %v5302_v58 = vor.u32 %v6413_v52, %v5299_v53  ;;  %v1318_v63 = vadd.f32 %v1246_v0, %v7745_v16 }
 0x2d0   : > { %v1393_v3 = vmul.f32 0.7978846, %v1321_v24  ;;  %v1030_v24 = vmul.f32 0.5, %v7745_v16  ;;  %v6411_v16 = vld [vmem:[%s9861_s3 + $0x20] sm:$0xf0] }
 0x2d1   : > { %v958_v51 = vpop.f32.mrf.mxu0  ;;  %v1390_v48 = vmul.f32 0.7978846, %v1318_v63 }
 0x2d2   : > { %v7714_v47 = vadd.f32 %v7281_v27, %v958_v51 }
 0x2d3   : > { %2125 = vmatpush.bf16.msrb.mxu1 %v1639_v55  ;;  %v7773_v4 = vpop.f32.mrf.mxu1 }
 0x2d4   : > { %v1107_v33 = vmul.f32 0.044715, %v7714_v47 }
 0x2d6   : > { %v1179_v15 = vmul.f32 %v1107_v33, %v7714_v47 }
 0x2d7   : > { %2126 = vmatpush.bf16.msrb.mxu1 %v1638_v22 }
 0x2d8   : > { %v1251_v59 = vmul.f32 %v1179_v15, %v7714_v47  ;;  %v6418_v15 = vld [vmem:[%s9861_s3 + $0x5c] sm:$0xf] }
 0x2d9   : > { %v961_v1 = vpop.f32.mrf.mxu0 }
 0x2da   : > { %v7730_v29 = vadd.f32 %v7281_v27, %v961_v1  ;;  %2127 = vmatmul.bf16.vlgmr.msrb.gmra.mxu1 %v5282_v7  ;;  %2113 = vmatmul.bf16.gmra.mxu3 %v5438_v36  ;;  %v1250_v27 = vmul.f32 %v1178_v10, %v7717_v5  ;;  %v1323_v42 = vadd.f32 %v1251_v59, %v7714_v47  ;;  %v1391_v36 = vmul.f32 0.7978846, %v1319_v56 }
 0x2db   : > { %v1981_v22 = vpop.f32.mrf.mxu1 }
 0x2dc   : > { %v1108_v21 = vmul.f32 0.044715, %v7730_v29  ;;  %v2025_v6 = vpop.f32.mrf.mxu2  ;;  %v1322_v54 = vadd.f32 %v1250_v27, %v7717_v5  ;;  %v1395_v30 = vmul.f32 0.7978846, %v1323_v42 }
 0x2dd   : > { %v7768_v41 = vadd.f32 %v2025_v6, %v7683_v57 }
 0x2de   : > { %v1180_v19 = vmul.f32 %v1108_v21, %v7730_v29  ;;  %v1394_v51 = vmul.f32 0.7978846, %v1322_v54 }
 0x2e0   : > { %v1252_v34 = vmul.f32 %v1180_v19, %v7730_v29 }
 0x2e1   : > { %v963_v9 = vpop.f32.mrf.mxu0 }
 0x2e2   : > { %v964_v49 = vadd.f32 %v6858_v32, %v963_v9  ;;  %v1324_v17 = vadd.f32 %v1252_v34, %v7730_v29  ;;  %v1036_v34 = vmul.f32 0.5, %v7730_v29  ;;  %v5322_v9 = vor.u32 %v6418_v15, %v5319_v37 }
 0x2e3   : > { %v7797_v53 = vpop.f32.mrf.mxu1 }
 0x2e4   : > { %v1109_v61 = vmul.f32 0.044715, %v964_v49  ;;  %v1396_v23 = vmul.f32 0.7978846, %v1324_v17  ;;  %v7782_v28 = vpop.f32.mrf.mxu2  ;;  %v1037_v59 = vmul.f32 0.5, %v964_v49  ;;  %v1035_v17 = vmul.f32 0.5, %v7714_v47 }
 0x2e6   : > { %v1181_v18 = vmul.f32 %v1109_v61, %v964_v49  ;;  %6841 = vtanh.f32 %v1396_v23 }
 0x2e7   : > { %6843 = vtanh.f32 %v1395_v30 }
 0x2e8   : > { %v1253_v57 = vmul.f32 %v1181_v18, %v964_v49  ;;  %6845 = vtanh.f32 %v1394_v51 }
 0x2ea   : > { %2132 = vmatmul.bf16.gmra.mxu1 %v5302_v58  ;;  %v1325_v55 = vadd.f32 %v1253_v57, %v964_v49  ;;  %v1032_v58 = vmul.f32 0.5, %v7727_v14  ;;  %v5339_v14 = vld [vmem:[%s9861_s3 + $0x94] sm:$0xf0] }
 0x2ec   : > { %v1397_v2 = vmul.f32 0.7978846, %v1325_v55  ;;  %v6842_v7 = vpop.eup %6841  ;;  %v2030_v1 = vpop.f32.mrf.mxu2 }
 0x2ed   : > { %v6844_v33 = vpop.eup %6843  ;;  %v1540_v10 = vadd.f32 1.0, %v6842_v7  ;;  %v7793_v8 = vadd.f32 %v2030_v1, %v7734_v11  ;;  %v1034_v11 = vmul.f32 0.5, %v7717_v5  ;;  %v1031_v5 = vmul.f32 0.5, %v7738_v46  ;;  %v1986_v55 = vpop.f32.mrf.mxu1  ;;  %v5285_v46 = vld [vmem:[%s9861_s3 + $0x10] sm:$0xf] }
 0x2ee   : > { %6847 = vtanh.f32 %v1397_v2  ;;  %v6846_v21 = vpop.eup %6845  ;;  %v1539_v13 = vadd.f32 1.0, %v6844_v33  ;;  %v5286_v56 = vor.u32 %v6411_v16, %v5285_v46  ;;  %v6428_v7 = vld [vmem:[%s9861_s3 + $0xac] sm:$0xf]  ;;  %v5305_v33 = vld [vmem:[%s9861_s3 + $0x38] sm:$0xf] }
 0x2ef   : > { %6849 = vtanh.f32 %v1393_v3  ;;  %v1612_v27 = vmul.f32 %v1540_v10, %v1036_v34  ;;  %v1538_v6 = vadd.f32 1.0, %v6846_v21  ;;  %v5342_v3 = vor.u32 %v6423_v25, %v5339_v14  ;;  %v6433_v34 = vld [vmem:[%s9861_s3 + $0xd4] sm:$0xf]  ;;  %v5385_v14 = vld [vmem:[%s9861_s3 + $0xd8] sm:$0xf] }
 0x2f0   : > { %6851 = vtanh.f32 %v1392_v39  ;;  %v1611_v61 = vmul.f32 %v1539_v13, %v1035_v17  ;;  %v6421_v13 = vld [vmem:[%s9861_s3 + $0x70] sm:$0xf0]  ;;  %v6436_v46 = vld [vmem:[%s9861_s3 + $0xe8] sm:$0xf0] }
 0x2f1   : > { %6853 = vtanh.f32 %v1391_v36  ;;  %v1610_v35 = vmul.f32 %v1538_v6, %v1034_v11  ;;  %v5345_v11 = vld [vmem:[%s9861_s3 + $0x88] sm:$0xf] }
 0x2f2   : > { %6855 = vtanh.f32 %v1390_v48  ;;  %v6416_v48 = vld [vmem:[%s9861_s3 + $0x48] sm:$0xf0] }
 0x2f3   : > { %v1648_v47 = vpack.c.bf16 %v1611_v61, %v1610_v35  ;;  %v5306_v15 = vor.u32 %v6416_v48, %v5305_v33  ;;  %v6426_v61 = vld [vmem:[%s9861_s3 + $0x98] sm:$0xf0]  ;;  %v6457_v33 = vld [vmem:[%s9862_s4 + $0x28] sm:$0xff]  ;;  %v5405_v48 = vld [vmem:[%s9861_s3 + $0x100] sm:$0xf] }
 0x2f4   : > { %v6848_v19 = vpop.eup %6847  ;;  %v7800_v49 = vpop.f32.mrf.mxu2 }
 0x2f5   : > { %v1541_v38 = vadd.f32 1.0, %v6848_v19  ;;  %v6850_v31 = vpop.eup %6849  ;;  %v7823_v63 = vpop.f32.mrf.mxu1 }
 0x2f6   : > { %v6852_v44 = vpop.eup %6851  ;;  %v1537_v42 = vadd.f32 1.0, %v6850_v31 }
 0x2f7   : > { %v1613_v32 = vmul.f32 %v1541_v38, %v1037_v59  ;;  %v6854_v29 = vpop.eup %6853  ;;  %v1536_v54 = vadd.f32 1.0, %v6852_v44  ;;  %v5379_v59 = vld [vmem:[%s9861_s3 + $0xe4] sm:$0xf0]  ;;  %v5325_v38 = vld [vmem:[%s9861_s3 + $0x60] sm:$0xf] }
 0x2f8   : > { %v6856_v40 = vpop.eup %6855  ;;  %v1609_v18 = vmul.f32 %v1537_v42, %v1033_v26  ;;  %v1535_v23 = vadd.f32 1.0, %v6854_v29  ;;  %v6438_v44 = vld [vmem:[%s9861_s3 + $0xfc] sm:$0xf] }
 0x2f9   : > { %v1649_v52 = vpack.c.bf16 %v1613_v32, %v1612_v27  ;;  %v1608_v45 = vmul.f32 %v1536_v54, %v1032_v58  ;;  %v1534_v57 = vadd.f32 1.0, %v6856_v40  ;;  %v5382_v27 = vor.u32 %v6433_v34, %v5379_v59  ;;  %v6443_v58 = vld [vmem:[%s9861_s3 + $0x124] sm:$0xf] }
 0x2fa   : > { %2137 = vmatmul.bf16.gmra.mxu1 %v5322_v9  ;;  %v1607_v50 = vmul.f32 %v1535_v23, %v1031_v5  ;;  %v5326_v32 = vor.u32 %v6421_v13, %v5325_v38  ;;  %v5346_v54 = vor.u32 %v6426_v61, %v5345_v11  ;;  %v5365_v23 = vld [vmem:[%s9861_s3 + $0xb0] sm:$0xf]  ;;  %v6456_v34 = vld [vmem:[%s9862_s4 + $0x20] sm:$0xff]  ;;  %v6455_v38 = vld [vmem:[%s9862_s4 + $0x18] sm:$0xff] }
 0x2fb   : > { %2177 = vmatpush.bf16.msrb.mxu2 %v1649_v52  ;;  %v1647_v30 = vpack.c.bf16 %v1609_v18, %v1608_v45  ;;  %v1606_v62 = vmul.f32 %v1534_v57, %v1030_v24  ;;  %v5399_v52 = vld [vmem:[%s9861_s3 + $0x10c] sm:$0xf0]  ;;  %v5419_v18 = vld [vmem:[%s9861_s3 + $0x134] sm:$0xf0]  ;;  %v6431_v45 = vld [vmem:[%s9861_s3 + $0xc0] sm:$0xf0] }
 0x2fc   : > { %v2035_v51 = vpop.f32.mrf.mxu2  ;;  %v5402_v26 = vor.u32 %v6438_v44, %v5399_v52  ;;  %v5366_v24 = vor.u32 %v6431_v45, %v5365_v23  ;;  %v6454_v13 = vld [vmem:[%s9862_s4 + $0x10] sm:$0xff]  ;;  %v6446_v44 = vld [vmem:[%s9861_s3 + $0x138] sm:$0xf0]  ;;  %v6452_v11 = vld [vmem:[%s9862_s4] sm:$0xff] }
 0x2fd   : > { %v7818_v0 = vadd.f32 %v2035_v51, %v1981_v22  ;;  %v1646_v2 = vpack.c.bf16 %v1607_v50, %v1606_v62  ;;  %v5359_v22 = vld [vmem:[%s9861_s3 + $0xbc] sm:$0xf0]  ;;  %v1991_v37 = vpop.f32.mrf.mxu1  ;;  %v6448_v51 = vld [vmem:[%s9861_s3 + $0x14c] sm:$0xf] }
 0x2fe   : > { %v5362_v21 = vor.u32 %v6428_v7, %v5359_v22  ;;  %v5439_v62 = vld [vmem:[%s9861_s3 + $0x15c] sm:$0xf0]  ;;  %v6459_v7 = vld [vmem:[%s9862_s4 + $0x38] sm:$0xff]  ;;  %v6458_v22 = vld [vmem:[%s9862_s4 + $0x30] sm:$0xff] }
 0x2ff   : > { %2178 = vmatpush.bf16.msrb.mxu2 %v1648_v47  ;;  %2318 = vmatpush.bf16.msrb.mxu3 %v6459_v7 }
 0x303   : > { %2179 = vmatpush.bf16.msrb.mxu2 %v1647_v30  ;;  %v5422_v30 = vor.u32 %v6443_v58, %v5419_v18  ;;  %2319 = vmatpush.bf16.msrb.mxu3 %v6458_v22 }
 0x304   : > { %v7821_v39 = vpop.f32.mrf.mxu2 }
 0x305   : > { %v7842_v19 = vpop.f32.mrf.mxu1 }
 0x307   : > { %2180 = vmatpush.bf16.msrb.mxu2 %v1646_v2  ;;  %2320 = vmatpush.bf16.msrb.mxu3 %v6457_v33 }
 0x30a   : > { %2142 = vmatmul.bf16.gmra.mxu1 %v5342_v3  ;;  %5447 = vmatmul.msk.bf16.vlgmr.msrb.gmra.mxu2 %vm1929_vm0, %v5286_v56  ;;  %v5442_v3 = vor.u32 %v6448_v51, %v5439_v62  ;;  %v5386_v56 = vor.u32 %v6436_v46, %v5385_v14 }
 0x30b   : > { %2321 = vmatpush.bf16.msrb.mxu3 %v6456_v34 }
 0x30c   : > { %v2040_v36 = vpop.f32.mrf.mxu2 }
 0x30d   : > { %v7837_v1 = vadd.f32 %v2040_v36, %v1986_v55  ;;  %v1996_v17 = vpop.f32.mrf.mxu1 }
 0x30f   : > { %2322 = vmatpush.bf16.msrb.mxu3 %v6455_v38 }
 0x313   : > { %2323 = vmatpush.bf16.msrb.mxu3 %v6454_v13 }
 0x314   : > { %v7840_v10 = vpop.f32.mrf.mxu2 }
 0x315   : > { %v7873_v29 = vpop.f32.mrf.mxu1 }
 0x31a   : > { %2147 = vmatmul.bf16.gmra.mxu1 %v5362_v21  ;;  %5448 = vmatmul.msk.bf16.gmra.mxu2 %vm1929_vm0, %v5306_v15  ;;  %v6441_v21 = vld [vmem:[%s9861_s3 + $0x110] sm:$0xf0]  ;;  %v2074_v15 = vpop.f32.mrf.mxu3 }
 0x31b   : > { %v2075_v51 = vadd.f32 %v2074_v15, %v7711_v12 }
 0x31c   : > { %v2045_v31 = vpop.f32.mrf.mxu2 }
 0x31d   : > { %v7856_v9 = vadd.f32 %v2045_v31, %v1991_v37  ;;  %v2001_v47 = vpop.f32.mrf.mxu1  ;;  %v5406_v37 = vor.u32 %v6441_v21, %v5405_v48  ;;  %v2028_v48 = vadd.f32 %v7782_v28, %v7696_v60 }
 0x322   : > { %v2076_v31 = vpop.f32.mrf.mxu3 }
 0x324   : > { %v7859_v6 = vpop.f32.mrf.mxu2 }
 0x325   : > { %v7894_v50 = vpop.f32.mrf.mxu1 }
 0x32a   : > { %2152 = vmatmul.bf16.gmra.mxu1 %v5382_v27  ;;  %5449 = vmatmul.msk.bf16.gmra.mxu2 %vm1929_vm0, %v5326_v32  ;;  %v6453_v27 = vld [vmem:[%s9862_s4 + $0x8] sm:$0xff]  ;;  %v2079_v61 = vpop.f32.mrf.mxu3 }
 0x32b   : > { %2324 = vmatpush.bf16.msrb.mxu3 %v6453_v27 }
 0x32c   : > { %v2050_v42 = vpop.f32.mrf.mxu2 }
 0x32d   : > { %v7875_v35 = vadd.f32 %v2050_v42, %v1996_v17  ;;  %v2006_v55 = vpop.f32.mrf.mxu1  ;;  %v5425_v17 = vld [vmem:[%s9861_s3 + $0x128] sm:$0xf] }
 0x32e   : > { %v5426_v52 = vor.u32 %v6446_v44, %v5425_v17  ;;  %v2033_v17 = vadd.f32 %v7800_v49, %v7773_v4 }
 0x32f   : > { %2325 = vmatpush.bf16.msrb.mxu3 %v6452_v11 }
 0x334   : > { %v7878_v40 = vpop.f32.mrf.mxu2 }
 0x335   : > { %v7917_v36 = vpop.f32.mrf.mxu1 }
 0x33a   : > { %2157 = vmatmul.bf16.gmra.mxu1 %v5402_v26  ;;  %5450 = vmatmul.msk.bf16.gmra.mxu2 %vm1929_vm0, %v5346_v54  ;;  %v2081_v26 = vpop.f32.mrf.mxu3  ;;  %v5445_v54 = vld [vmem:[%s9861_s3 + $0x150] sm:$0xf] }
 0x33c   : > { %v2055_v5 = vpop.f32.mrf.mxu2 }
 0x33d   : > { %v7892_v57 = vadd.f32 %v2055_v5, %v2001_v47  ;;  %v6451_v47 = vld [vmem:[%s9861_s3 + $0x160] sm:$0xf0] }
 0x33e   : > { %v5446_v23 = vor.u32 %v6451_v47, %v5445_v54 }
 0x342   : > { %v2084_v45 = vpop.f32.mrf.mxu3 }
 0x343   : > { %v2085_v60 = vadd.f32 %v2084_v45, %v7793_v8 }
 0x344   : > { %v7897_v25 = vpop.f32.mrf.mxu2 }
 0x34a   : > { %2162 = vmatmul.bf16.gmra.mxu1 %v5422_v30  ;;  %5451 = vmatmul.msk.bf16.gmra.mxu2 %vm1929_vm0, %v5366_v24  ;;  %v2023_v30 = vadd.f32 %v7732_v20, %v7667_v43  ;;  %v2080_v43 = vadd.f32 %v2079_v61, %v7768_v41  ;;  %v2082_v20 = vadd.f32 %v2081_v26, %v2028_v48 }
 0x34c   : > { %v2060_v16 = vpop.f32.mrf.mxu2 }
 0x34d   : > { %v7911_v2 = vadd.f32 %v2060_v16, %v2006_v55  ;;  %v2077_v55 = vadd.f32 %v2076_v31, %v2023_v30 }
 0x354   : > { %v7960_v18 = vpop.f32.mrf.mxu2 }
 0x357   : > { %v2128_v59 = vpop.f32.mrf.mxu1 }
 0x358   : > { %v2129_v62 = vadd.f32 %v2128_v59, %v2075_v51 }
 0x35a   : > { %2167 = vmatmul.bf16.gmra.mxu1 %v5442_v3  ;;  %5452 = vmatmul.msk.bf16.gmra.mxu2 %vm1929_vm0, %v5386_v56  ;;  %v2086_v56 = vpop.f32.mrf.mxu3 }
 0x35b   : > { %v2087_v28 = vadd.f32 %v2086_v56, %v2033_v17  ;;  %v2053_v17 = vadd.f32 %v7878_v40, %v7873_v29 }
 0x35f   : > { %v2130_v32 = vpop.f32.mrf.mxu1 }
 0x360   : > { %v2131_v14 = vadd.f32 %v2130_v32, %v2077_v55 }
 0x362   : > { %v2089_v21 = vpop.f32.mrf.mxu3 }
 0x363   : > { %v2090_v4 = vadd.f32 %v2089_v21, %v7818_v0 }
 0x367   : > { %v2133_v42 = vpop.f32.mrf.mxu1 }
 0x368   : > { %v2134_v12 = vadd.f32 %v2133_v42, %v2080_v43 }
 0x36a   : > { %5453 = vmatmul.msk.bf16.gmra.mxu2 %vm1929_vm0, %v5406_v37  ;;  %v2091_v31 = vpop.f32.mrf.mxu3 }
 0x36f   : > { %v2135_v58 = vpop.f32.mrf.mxu1 }
 0x370   : > { %v2136_v15 = vadd.f32 %v2135_v58, %v2082_v20  ;;  %v2038_v58 = vadd.f32 %v7821_v39, %v7797_v53 }
 0x372   : > { %v2092_v49 = vadd.f32 %v2091_v31, %v2038_v58 }
 0x377   : > { %v2138_v24 = vpop.f32.mrf.mxu1 }
 0x378   : > { %v2139_v44 = vadd.f32 %v2138_v24, %v2085_v60 }
 0x37a   : > { %5454 = vmatmul.msk.bf16.gmra.mxu2 %vm1929_vm0, %v5426_v52  ;;  %v2094_v52 = vpop.f32.mrf.mxu3 }
 0x37b   : > { %v2095_v53 = vadd.f32 %v2094_v52, %v7837_v1 }
 0x37f   : > { %v2140_v22 = vpop.f32.mrf.mxu1 }
 0x380   : > { %v2141_v41 = vadd.f32 %v2140_v22, %v2087_v28 }
 0x387   : > { %v2143_v37 = vpop.f32.mrf.mxu1 }
 0x388   : > { %v2144_v8 = vadd.f32 %v2143_v37, %v2090_v4  ;;  %v2048_v37 = vadd.f32 %v7859_v6, %v7842_v19 }
 0x38a   : > { %5455 = vmatmul.msk.bf16.gmra.mxu2 %vm1929_vm0, %v5446_v23  ;;  %v2096_v23 = vpop.f32.mrf.mxu3 }
 0x38d   : > { %v2182_v5 = vpop.f32.mrf.mxu2 }
 0x38e   : > { %v2183_v16 = vadd.f32 %v2182_v5, %v2129_v62 }
 0x38f   : > { %v2145_v27 = vpop.f32.mrf.mxu1 }
 0x390   : > { %v2146_v45 = vadd.f32 %v2145_v27, %v2092_v49 }
 0x392   : > { %v2099_v62 = vpop.f32.mrf.mxu3 }
 0x395   : > { %v2184_v46 = vpop.f32.mrf.mxu2 }
 0x396   : > { %v2185_v3 = vadd.f32 %v2184_v46, %v2131_v14 }
 0x397   : > { %v2148_v26 = vpop.f32.mrf.mxu1 }
 0x398   : > { %v2245_v7 = vpack.c.bf16 %v2185_v3, %v2183_v16  ;;  %v2043_v16 = vadd.f32 %v7840_v10, %v7823_v63  ;;  %v2149_v56 = vadd.f32 %v2148_v26, %v2095_v53  ;;  %v2100_v63 = vadd.f32 %v2099_v62, %v7856_v9 }
 0x39a   : > { %2326 = vmatmul.bf16.vlgmr.msrb.gmra.mxu3 %v2245_v7  ;;  %v2097_v39 = vadd.f32 %v2096_v23, %v2043_v16  ;;  %v2101_v3 = vpop.f32.mrf.mxu3 }
 0x39b   : > { %v2102_v10 = vadd.f32 %v2101_v3, %v2048_v37 }
 0x39d   : > { %v2187_v33 = vpop.f32.mrf.mxu2 }
 0x39e   : > { %v2188_v59 = vadd.f32 %v2187_v33, %v2134_v12 }
 0x39f   : > { %v2150_v5 = vpop.f32.mrf.mxu1 }
 0x3a0   : > { %v2151_v0 = vadd.f32 %v2150_v5, %v2097_v39 }
 0x3a2   : > { %v2104_v43 = vpop.f32.mrf.mxu3 }
 0x3a3   : > { %v2105_v19 = vadd.f32 %v2104_v43, %v7875_v35 }
 0x3a5   : > { %v2189_v34 = vpop.f32.mrf.mxu2 }
 0x3a6   : > { %v2190_v38 = vadd.f32 %v2189_v34, %v2136_v15 }
 0x3a7   : > { %v2153_v14 = vpop.f32.mrf.mxu1 }
 0x3a8   : > { %v2246_v13 = vpack.c.bf16 %v2190_v38, %v2188_v59  ;;  %v2154_v1 = vadd.f32 %v2153_v14, %v2100_v63 }
 0x3aa   : > { %2331 = vmatmul.bf16.gmra.mxu3 %v2246_v13  ;;  %v2106_v13 = vpop.f32.mrf.mxu3 }
 0x3ab   : > { %v2107_v6 = vadd.f32 %v2106_v13, %v2053_v17 }
 0x3ad   : > { %v2192_v32 = vpop.f32.mrf.mxu2 }
 0x3ae   : > { %v2193_v61 = vadd.f32 %v2192_v32, %v2139_v44 }
 0x3af   : > { %v2155_v7 = vpop.f32.mrf.mxu1 }
 0x3b0   : > { %v2156_v15 = vadd.f32 %v2155_v7, %v2102_v10 }
 0x3b2   : > { %v2109_v60 = vpop.f32.mrf.mxu3 }
 0x3b3   : > { %v2110_v29 = vadd.f32 %v2109_v60, %v7892_v57 }
 0x3b5   : > { %v2194_v11 = vpop.f32.mrf.mxu2 }
 0x3b6   : > { %v2195_v42 = vadd.f32 %v2194_v11, %v2141_v41 }
 0x3b7   : > { %v2158_v12 = vpop.f32.mrf.mxu1 }
 0x3b8   : > { %v2247_v54 = vpack.c.bf16 %v2195_v42, %v2193_v61  ;;  %v2159_v9 = vadd.f32 %v2158_v12, %v2105_v19  ;;  %v6702_v12 = vld [vmem:[%s9863_s5] ss:$0 sm:$0xff] }
 0x3ba   : > { %2336 = vmatmul.bf16.gmra.mxu3 %v2247_v54  ;;  %v2111_v42 = vpop.f32.mrf.mxu3 }
 0x3bd   : > { %v2197_v47 = vpop.f32.mrf.mxu2 }
 0x3be   : > { %v2198_v24 = vadd.f32 %v2197_v47, %v2144_v8  ;;  %v2058_v47 = vadd.f32 %v7897_v25, %v7894_v50 }
 0x3bf   : > { %v2160_v27 = vpop.f32.mrf.mxu1 }
 0x3c0   : > { %v2161_v44 = vadd.f32 %v2160_v27, %v2107_v6  ;;  %v2112_v40 = vadd.f32 %v2111_v42, %v2058_v47 }
 0x3c2   : > { %v2114_v23 = vpop.f32.mrf.mxu3 }
 0x3c3   : > { %v2115_v50 = vadd.f32 %v2114_v23, %v7911_v2 }
 0x3c5   : > { %v2199_v30 = vpop.f32.mrf.mxu2 }
 0x3c6   : > { %v2200_v51 = vadd.f32 %v2199_v30, %v2146_v45 }
 0x3c7   : > { %v2163_v28 = vpop.f32.mrf.mxu1 }
 0x3c8   : > { %v2248_v55 = vpack.c.bf16 %v2200_v51, %v2198_v24  ;;  %v2164_v58 = vadd.f32 %v2163_v28, %v2110_v29  ;;  %v2063_v24 = vadd.f32 %v7960_v18, %v7917_v36 }
 0x3ca   : > { %2341 = vmatmul.bf16.gmra.mxu3 %v2248_v55  ;;  %v2116_v51 = vpop.f32.mrf.mxu3 }
 0x3cb   : > { %v2117_v25 = vadd.f32 %v2116_v51, %v2063_v24  ;;  %v5787_v24 = vld [vmem:[%s9864_s6 + $0x1b0] sm:$0xf]  ;;  %v6515_v51 = vld [vmem:[%s9864_s6 + $0x1b4] sm:$0xf0] }
 0x3cd   : > { %v2202_v46 = vpop.f32.mrf.mxu2 }
 0x3ce   : > { %v2203_v33 = vadd.f32 %v2202_v46, %v2149_v56 }
 0x3cf   : > { %v2165_v26 = vpop.f32.mrf.mxu1 }
 0x3d0   : > { %v2166_v35 = vadd.f32 %v2165_v26, %v2112_v40 }
 0x3d5   : > { %v2204_v22 = vpop.f32.mrf.mxu2 }
 0x3d6   : > { %v2205_v48 = vadd.f32 %v2204_v22, %v2151_v0 }
 0x3d7   : > { %v2168_v8 = vpop.f32.mrf.mxu1 }
 0x3d8   : > { %v2249_v21 = vpack.c.bf16 %v2205_v48, %v2203_v33  ;;  %v2169_v57 = vadd.f32 %v2168_v8, %v2115_v50  ;;  %v5589_v8 = vld [vmem:[%s9864_s6 + $0x90] sm:$0xf] }
 0x3da   : > { %2346 = vmatmul.bf16.gmra.mxu3 %v2249_v21 }
 0x3dd   : > { %v2207_v20 = vpop.f32.mrf.mxu2 }
 0x3de   : > { %v2208_v59 = vadd.f32 %v2207_v20, %v2154_v1 }
 0x3df   : > { %v2170_v55 = vpop.f32.mrf.mxu1 }
 0x3e0   : > { %v2171_v62 = vadd.f32 %v2170_v55, %v2117_v25  ;;  %v6462_v25 = vld [vmem:[%s9864_s6 + $0x14] sm:$0xf] }
 0x3e5   : > { %v2209_v34 = vpop.f32.mrf.mxu2 }
 0x3e6   : > { %v2210_v38 = vadd.f32 %v2209_v34, %v2156_v15 }
 0x3e8   : > { %v2250_v31 = vpack.c.bf16 %v2210_v38, %v2208_v59 }
 0x3ea   : > { %2351 = vmatmul.bf16.gmra.mxu3 %v2250_v31 }
 0x3ed   : > { %v2212_v32 = vpop.f32.mrf.mxu2 }
 0x3ee   : > { %v2213_v52 = vadd.f32 %v2212_v32, %v2159_v9 }
 0x3f5   : > { %v2214_v41 = vpop.f32.mrf.mxu2 }
 0x3f6   : > { %v2215_v11 = vadd.f32 %v2214_v41, %v2161_v44 }
 0x3f8   : > { %v2251_v61 = vpack.c.bf16 %v2215_v11, %v2213_v52  ;;  %v6460_v52 = vld [vmem:[%s9864_s6 + $0x4] sm:$0xf]  ;;  %v5492_v11 = vld [vmem:[%s9864_s6 + $0x8] sm:$0xf0] }
 0x3fa   : > { %2356 = vmatmul.bf16.gmra.mxu3 %v2251_v61 }
 0x3fd   : > { %v2217_v54 = vpop.f32.mrf.mxu2 }
 0x3fe   : > { %v2218_v4 = vadd.f32 %v2217_v54, %v2164_v58  ;;  %v5495_v54 = vor.u32 %v6460_v52, %v5492_v11 }
 0x405   : > { %v2219_v5 = vpop.f32.mrf.mxu2 }
 0x406   : > { %v2220_v49 = vadd.f32 %v2219_v5, %v2166_v35 }
 0x408   : > { %v2252_v45 = vpack.c.bf16 %v2220_v49, %v2218_v4  ;;  %v5490_v4 = vld [vmem:[%s9864_s6] sm:$0xf]  ;;  %v6461_v49 = vld [vmem:[%s9864_s6 + $0x4] sm:$0xf0] }
 0x409   : > { %v5491_v55 = vor.u32 %v6461_v49, %v5490_v4  ;;  %v5524_v4 = vld [vmem:[%s9864_s6 + $0x48] sm:$0xf0] }
 0x40a   : > { %2361 = vmatmul.bf16.gmra.mxu3 %v2252_v45  ;;  %v6479_v45 = vld [vmem:[%s9864_s6 + $0x94] sm:$0xf0] }
 0x40b   : > { %v5590_v50 = vor.u32 %v6479_v45, %v5589_v8  ;;  %v5522_v8 = vld [vmem:[%s9864_s6 + $0x40] sm:$0xf]  ;;  %v6469_v45 = vld [vmem:[%s9864_s6 + $0x44] sm:$0xf0] }
 0x40d   : > { %v2222_v30 = vpop.f32.mrf.mxu2 }
 0x40e   : > { %v2223_v46 = vadd.f32 %v2222_v30, %v2169_v57  ;;  %v5500_v57 = vld [vmem:[%s9864_s6 + $0x18] sm:$0xf0] }
 0x415   : > { %v2224_v14 = vpop.f32.mrf.mxu2 }
 0x416   : > { %v2225_v16 = vadd.f32 %v2224_v14, %v2171_v62  ;;  %v5788_v62 = vor.u32 %v6515_v51, %v5787_v24  ;;  %v5503_v14 = vor.u32 %v6462_v25, %v5500_v57  ;;  %v5621_v24 = vld [vmem:[%s9864_s6 + $0xd0] sm:$0xf]  ;;  %v6487_v51 = vld [vmem:[%s9864_s6 + $0xd4] sm:$0xf0]  ;;  %v6470_v25 = vld [vmem:[%s9864_s6 + $0x54] sm:$0xf] }
 0x417   : > { %v5532_v57 = vld [vmem:[%s9864_s6 + $0x58] sm:$0xf0] }
 0x418   : > { %v2253_v53 = vpack.c.bf16 %v2225_v16, %v2223_v46  ;;  %v5498_v46 = vld [vmem:[%s9864_s6 + $0x10] sm:$0xf]  ;;  %v6463_v16 = vld [vmem:[%s9864_s6 + $0x14] sm:$0xf0] }
 0x41a   : > { %2366 = vmatmul.bf16.gmra.mxu3 %v2253_v53  ;;  %v5597_v53 = vld [vmem:[%s9864_s6 + $0xa0] sm:$0xf] }
 0x41d   : > { %v7990_v39 = vpop.f32.mrf.mxu3 }
 0x41e   : > { %v8093_v5 = vadd.f32 %v6702_v12, %v7990_v39  ;;  %v6481_v39 = vld [vmem:[%s9864_s6 + $0xa4] sm:$0xf0] }
 0x425   : > { %v7992_v3 = vpop.f32.mrf.mxu3 }
 0x426   : > { %v8085_v35 = vadd.f32 %v6702_v12, %v7992_v3  ;;  %v5499_v3 = vor.u32 %v6463_v16, %v5498_v46  ;;  %v6471_v46 = vld [vmem:[%s9864_s6 + $0x54] sm:$0xf0]  ;;  %v5629_v16 = vld [vmem:[%s9864_s6 + $0xe0] sm:$0xf] }
 0x428   : > { %v8112_v30 = vpack.c.bf16 %v8085_v35, %v8093_v5 }
 0x42d   : > { %v2332_v56 = vpop.f32.mrf.mxu3 }
 0x42e   : > { %v8079_v58 = vadd.f32 %v6702_v12, %v2332_v56  ;;  %v5598_v56 = vor.u32 %v6481_v39, %v5597_v53  ;;  %v6489_v53 = vld [vmem:[%s9864_s6 + $0xe4] sm:$0xf0] }
 0x435   : > { %v2334_v0 = vpop.f32.mrf.mxu3 }
 0x436   : > { %v8071_v29 = vadd.f32 %v6702_v12, %v2334_v0  ;;  %v6464_v0 = vld [vmem:[%s9864_s6 + $0x24] sm:$0xf] }
 0x438   : > { %v8089_v23 = vpack.c.bf16 %v8071_v29, %v8079_v58 }
 0x43d   : > { %v2337_v7 = vpop.f32.mrf.mxu3 }
 0x43e   : > { %v8065_v47 = vadd.f32 %v6702_v12, %v2337_v7  ;;  %v5508_v7 = vld [vmem:[%s9864_s6 + $0x28] sm:$0xf0] }
 0x445   : > { %v2339_v36 = vpop.f32.mrf.mxu3 }
 0x446   : > { %v8055_v61 = vadd.f32 %v6702_v12, %v2339_v36  ;;  %v5511_v36 = vor.u32 %v6464_v0, %v5508_v7  ;;  %v5540_v0 = vld [vmem:[%s9864_s6 + $0x68] sm:$0xf0] }
 0x448   : > { %v8075_v40 = vpack.c.bf16 %v8055_v61, %v8065_v47 }
 0x44d   : > { %v2342_v18 = vpop.f32.mrf.mxu3 }
 0x44e   : > { %v8040_v9 = vadd.f32 %v6702_v12, %v2342_v18  ;;  %v5506_v18 = vld [vmem:[%s9864_s6 + $0x20] sm:$0xf] }
 0x455   : > { %v2344_v22 = vpop.f32.mrf.mxu3 }
 0x456   : > { %v8034_v19 = vadd.f32 %v6702_v12, %v2344_v22  ;;  %v6465_v22 = vld [vmem:[%s9864_s6 + $0x24] sm:$0xf0] }
 0x458   : > { %v8059_v42 = vpack.c.bf16 %v8034_v19, %v8040_v9 }
 0x45d   : > { %v2347_v33 = vpop.f32.mrf.mxu3 }
 0x45e   : > { %v8029_v60 = vadd.f32 %v6702_v12, %v2347_v33  ;;  %v5605_v33 = vld [vmem:[%s9864_s6 + $0xb0] sm:$0xf] }
 0x465   : > { %v2349_v2 = vpop.f32.mrf.mxu3 }
 0x466   : > { %v8023_v32 = vadd.f32 %v6702_v12, %v2349_v2  ;;  %v6483_v2 = vld [vmem:[%s9864_s6 + $0xb4] sm:$0xf0] }
 0x468   : > { %v8038_v6 = vpack.c.bf16 %v8023_v32, %v8029_v60 }
 0x46d   : > { %v2352_v48 = vpop.f32.mrf.mxu3 }
 0x46e   : > { %v8018_v27 = vadd.f32 %v6702_v12, %v2352_v48  ;;  %v5507_v48 = vor.u32 %v6465_v22, %v5506_v18  ;;  %v6473_v18 = vld [vmem:[%s9864_s6 + $0x64] sm:$0xf0]  ;;  %v5637_v22 = vld [vmem:[%s9864_s6 + $0xf0] sm:$0xf] }
 0x475   : > { %v2354_v21 = vpop.f32.mrf.mxu3 }
 0x476   : > { %v8012_v38 = vadd.f32 %v6702_v12, %v2354_v21  ;;  %v5606_v21 = vor.u32 %v6483_v2, %v5605_v33  ;;  %v6491_v33 = vld [vmem:[%s9864_s6 + $0xf4] sm:$0xf0] }
 0x478   : > { %v8027_v17 = vpack.c.bf16 %v8012_v38, %v8018_v27 }
 0x47d   : > { %v2357_v43 = vpop.f32.mrf.mxu3 }
 0x47e   : > { %v8007_v59 = vadd.f32 %v6702_v12, %v2357_v43  ;;  %v6466_v43 = vld [vmem:[%s9864_s6 + $0x34] sm:$0xf] }
 0x485   : > { %v2359_v20 = vpop.f32.mrf.mxu3 }
 0x486   : > { %v8001_v15 = vadd.f32 %v6702_v12, %v2359_v20  ;;  %v5516_v20 = vld [vmem:[%s9864_s6 + $0x38] sm:$0xf0] }
 0x488   : > { %v8016_v13 = vpack.c.bf16 %v8001_v15, %v8007_v59 }
 0x48d   : > { %v2362_v37 = vpop.f32.mrf.mxu3 }
 0x48e   : > { %v7997_v10 = vadd.f32 %v6702_v12, %v2362_v37  ;;  %v5519_v37 = vor.u32 %v6466_v43, %v5516_v20  ;;  %v5548_v43 = vld [vmem:[%s9864_s6 + $0x78] sm:$0xf0] }
 0x495   : > { %v2364_v63 = vpop.f32.mrf.mxu3 }
 0x496   : > { %v7999_v1 = vadd.f32 %v6702_v12, %v2364_v63  ;;  %v6467_v63 = vld [vmem:[%s9864_s6 + $0x34] sm:$0xf0] }
 0x498   : > { %v8005_v34 = vpack.c.bf16 %v7999_v1, %v7997_v10 }
 0x49a   : > { %2609 = vmatpush.bf16.msra.mxu1 %v8005_v34  ;;  %2882 = vmatpush.bf16.msra.mxu3 %v8005_v34 }
 0x49b   : > { %3428 = vmatpush.bf16.msrb.mxu0 %v8005_v34 }
 0x49d   : > { %v2367_v31 = vpop.f32.mrf.mxu3 }
 0x49e   : > { %2610 = vmatpush.bf16.msra.mxu1 %v8016_v13  ;;  %2883 = vmatpush.bf16.msra.mxu3 %v8016_v13  ;;  %v8042_v44 = vadd.f32 %v6702_v12, %v2367_v31  ;;  %v5613_v31 = vld [vmem:[%s9864_s6 + $0xc0] sm:$0xf] }
 0x49f   : > { %3429 = vmatpush.bf16.msrb.mxu0 %v8016_v13 }
 0x4a2   : > { %2611 = vmatpush.bf16.msra.mxu1 %v8027_v17  ;;  %2884 = vmatpush.bf16.msra.mxu3 %v8027_v17 }
 0x4a3   : > { %3430 = vmatpush.bf16.msrb.mxu0 %v8027_v17 }
 0x4a5   : > { %v2369_v28 = vpop.f32.mrf.mxu3 }
 0x4a6   : > { %v8044_v41 = vadd.f32 %v6702_v12, %v2369_v28  ;;  %2612 = vmatpush.bf16.msra.mxu1 %v8038_v6  ;;  %2885 = vmatpush.bf16.msra.mxu3 %v8038_v6  ;;  %v5514_v12 = vld [vmem:[%s9864_s6 + $0x30] sm:$0xf]  ;;  %v6485_v28 = vld [vmem:[%s9864_s6 + $0xc4] sm:$0xf0] }
 0x4a7   : > { %3431 = vmatpush.bf16.msrb.mxu0 %v8038_v6  ;;  %v5515_v52 = vor.u32 %v6467_v63, %v5514_v12  ;;  %v5614_v11 = vor.u32 %v6485_v28, %v5613_v31  ;;  %v6475_v12 = vld [vmem:[%s9864_s6 + $0x74] sm:$0xf0]  ;;  %v5645_v63 = vld [vmem:[%s9864_s6 + $0x100] sm:$0xf]  ;;  %v6493_v31 = vld [vmem:[%s9864_s6 + $0x104] sm:$0xf0] }
 0x4a8   : > { %v8063_v26 = vpack.c.bf16 %v8044_v41, %v8042_v44 }
 0x4aa   : > { %2613 = vmatpush.bf16.msra.mxu1 %v8059_v42  ;;  %2670 = vmatpush.bf16.msra.mxu2 %v8063_v26 }
 0x4ab   : > { %2886 = vmatpush.bf16.msra.mxu3 %v8059_v42  ;;  %3432 = vmatpush.bf16.msrb.mxu0 %v8059_v42 }
 0x4ad   : > { %5560 = vmatmul.msk.bf16.vlgmr.msra.gmra.mxu2 %vm2581_vm1, %v5495_v54  ;;  %v6468_v54 = vld [vmem:[%s9864_s6 + $0x44] sm:$0xf] }
 0x4ae   : > { %3155 = vmatpush.bf16.msrb.mxu2 %v8005_v34  ;;  %2614 = vmatpush.bf16.msra.mxu1 %v8075_v40  ;;  %v5527_v49 = vor.u32 %v6468_v54, %v5524_v4  ;;  %v5556_v54 = vld [vmem:[%s9864_s6 + $0x88] sm:$0xf0] }
 0x4af   : > { %2887 = vmatpush.bf16.msra.mxu3 %v8075_v40  ;;  %3433 = vmatpush.bf16.msrb.mxu0 %v8075_v40 }
 0x4b2   : > { %3156 = vmatpush.bf16.msrb.mxu2 %v8016_v13  ;;  %2615 = vmatpush.bf16.msra.mxu1 %v8089_v23 }
 0x4b3   : > { %2888 = vmatpush.bf16.msra.mxu3 %v8089_v23  ;;  %3434 = vmatpush.bf16.msrb.mxu0 %v8089_v23 }
 0x4b6   : > { %3157 = vmatpush.bf16.msrb.mxu2 %v8027_v17  ;;  %2616 = vmatpush.bf16.msra.mxu1 %v8112_v30 }
 0x4b7   : > { %2889 = vmatpush.bf16.msra.mxu3 %v8112_v30  ;;  %3435 = vmatpush.bf16.msrb.mxu0 %v8112_v30 }
 0x4b9   : > { %2617 = vmatmul.bf16.vlgmr.msra.gmra.mxu1 %v5491_v55  ;;  %v5523_v55 = vor.u32 %v6469_v45, %v5522_v8  ;;  %v5554_v8 = vld [vmem:[%s9864_s6 + $0x80] sm:$0xf]  ;;  %v6477_v45 = vld [vmem:[%s9864_s6 + $0x84] sm:$0xf0] }
 0x4ba   : > { %2943 = vmatpush.bf16.msrb.mxu1 %v8063_v26  ;;  %3158 = vmatpush.bf16.msrb.mxu2 %v8038_v6 }
 0x4bb   : > { %3216 = vmatpush.bf16.msrb.mxu3 %v8063_v26  ;;  %3974 = vmatpush.bf16.msra.mxu0 %v8005_v34 }
 0x4bc   : > { %2890 = vmatmul.bf16.vlgmr.msra.gmra.mxu3 %v5590_v50  ;;  %3436 = vmatmul.bf16.vlgmr.msrb.gmra.mxu0 %v5788_v62  ;;  %v5622_v50 = vor.u32 %v6487_v51, %v5621_v24  ;;  %v5535_v62 = vor.u32 %v6470_v25, %v5532_v57  ;;  %v5653_v24 = vld [vmem:[%s9864_s6 + $0x110] sm:$0xf]  ;;  %v6495_v51 = vld [vmem:[%s9864_s6 + $0x114] sm:$0xf0]  ;;  %v5555_v25 = vor.u32 %v6477_v45, %v5554_v8 }
 0x4bd   : > { %5561 = vmatmul.msk.bf16.gmra.mxu2 %vm2581_vm1, %v5503_v14  ;;  %v5530_v14 = vld [vmem:[%s9864_s6 + $0x50] sm:$0xf] }
 0x4be   : > { %3489 = vmatpush.bf16.msra.mxu1 %v8063_v26  ;;  %3159 = vmatpush.bf16.msrb.mxu2 %v8059_v42  ;;  %v5531_v39 = vor.u32 %v6471_v46, %v5530_v14  ;;  %v5688_v14 = vld [vmem:[%s9864_s6 + $0x120] sm:$0xf]  ;;  %v6497_v46 = vld [vmem:[%s9864_s6 + $0x124] sm:$0xf0] }
 0x4bf   : > { %3762 = vmatpush.bf16.msra.mxu3 %v8063_v26  ;;  %3975 = vmatpush.bf16.msra.mxu0 %v8016_v13 }
 0x4c2   : > { %3160 = vmatpush.bf16.msrb.mxu2 %v8075_v40 }
 0x4c3   : > { %3976 = vmatpush.bf16.msra.mxu0 %v8027_v17 }
 0x4c6   : > { %3161 = vmatpush.bf16.msrb.mxu2 %v8089_v23 }
 0x4c7   : > { %3977 = vmatpush.bf16.msra.mxu0 %v8038_v6 }
 0x4c9   : > { %2622 = vmatmul.bf16.gmra.mxu1 %v5499_v3  ;;  %v5630_v3 = vor.u32 %v6489_v53, %v5629_v16 }
 0x4ca   : > { %3162 = vmatpush.bf16.msrb.mxu2 %v8112_v30 }
 0x4cb   : > { %3978 = vmatpush.bf16.msra.mxu0 %v8059_v42 }
 0x4cc   : > { %2895 = vmatmul.bf16.gmra.mxu3 %v5598_v56  ;;  %v6472_v56 = vld [vmem:[%s9864_s6 + $0x64] sm:$0xf] }
 0x4cd   : > { %5562 = vmatmul.msk.bf16.gmra.mxu2 %vm2581_vm1, %v5511_v36  ;;  %v5543_v7 = vor.u32 %v6472_v56, %v5540_v0  ;;  %v5538_v36 = vld [vmem:[%s9864_s6 + $0x60] sm:$0xf]  ;;  %v5689_v56 = vor.u32 %v6497_v46, %v5688_v14  ;;  %v5599_v14 = vld [vmem:[%s9864_s6 + $0xa8] sm:$0xf0] }
 0x4ce   : > { %3701 = vmatpush.bf16.msra.mxu2 %v8005_v34  ;;  %v5539_v2 = vor.u32 %v6473_v18, %v5538_v36 }
 0x4cf   : > { %3979 = vmatpush.bf16.msra.mxu0 %v8075_v40 }
 0x4d2   : > { %3702 = vmatpush.bf16.msra.mxu2 %v8016_v13 }
 0x4d3   : > { %3980 = vmatpush.bf16.msra.mxu0 %v8089_v23 }
 0x4d6   : > { %3703 = vmatpush.bf16.msra.mxu2 %v8027_v17 }
 0x4d7   : > { %3981 = vmatpush.bf16.msra.mxu0 %v8112_v30 }
 0x4d9   : > { %2627 = vmatmul.bf16.gmra.mxu1 %v5507_v48  ;;  %v5638_v48 = vor.u32 %v6491_v33, %v5637_v22 }
 0x4da   : > { %3704 = vmatpush.bf16.msra.mxu2 %v8038_v6 }
 0x4db   : > { %4520 = vmatpush.bf16.msrb.mxu0 %v8005_v34 }
 0x4dc   : > { %2900 = vmatmul.bf16.gmra.mxu3 %v5606_v21  ;;  %v6474_v21 = vld [vmem:[%s9864_s6 + $0x74] sm:$0xf] }
 0x4dd   : > { %5563 = vmatmul.msk.bf16.gmra.mxu2 %vm2581_vm1, %v5519_v37  ;;  %v5551_v20 = vor.u32 %v6474_v21, %v5548_v43  ;;  %v5546_v37 = vld [vmem:[%s9864_s6 + $0x70] sm:$0xf]  ;;  %v6496_v43 = vld [vmem:[%s9864_s6 + $0x124] sm:$0xf] }
 0x4de   : > { %3705 = vmatpush.bf16.msra.mxu2 %v8059_v42  ;;  %v5547_v28 = vor.u32 %v6475_v12, %v5546_v37 }
 0x4df   : > { %4521 = vmatpush.bf16.msrb.mxu0 %v8016_v13 }
 0x4e2   : > { %3706 = vmatpush.bf16.msra.mxu2 %v8075_v40 }
 0x4e3   : > { %4522 = vmatpush.bf16.msrb.mxu0 %v8027_v17 }
 0x4e6   : > { %3707 = vmatpush.bf16.msra.mxu2 %v8089_v23 }
 0x4e7   : > { %4523 = vmatpush.bf16.msrb.mxu0 %v8038_v6 }
 0x4e9   : > { %2632 = vmatmul.bf16.gmra.mxu1 %v5515_v52  ;;  %v5646_v52 = vor.u32 %v6493_v31, %v5645_v63  ;;  %v5696_v31 = vld [vmem:[%s9864_s6 + $0x130] sm:$0xf] }
 0x4ea   : > { %3708 = vmatpush.bf16.msra.mxu2 %v8112_v30 }
 0x4eb   : > { %4524 = vmatpush.bf16.msrb.mxu0 %v8059_v42 }
 0x4ec   : > { %2905 = vmatmul.bf16.gmra.mxu3 %v5614_v11  ;;  %v6476_v11 = vld [vmem:[%s9864_s6 + $0x84] sm:$0xf] }
 0x4ed   : > { %5564 = vmatmul.msk.bf16.gmra.mxu2 %vm2581_vm1, %v5527_v49  ;;  %v5559_v4 = vor.u32 %v6476_v11, %v5556_v54 }
 0x4ef   : > { %4525 = vmatpush.bf16.msrb.mxu0 %v8075_v40 }
 0x4f3   : > { %4526 = vmatpush.bf16.msrb.mxu0 %v8089_v23 }
 0x4f7   : > { %4527 = vmatpush.bf16.msrb.mxu0 %v8112_v30 }
 0x4f9   : > { %2637 = vmatmul.bf16.gmra.mxu1 %v5523_v55  ;;  %v8312_v55 = vld [vmem:[%s9866_s8] ss:$0 sm:$0xff] }
 0x4fa   : > { %v2465_v33 = vadd.f32 %v8312_v55, %v8085_v35  ;;  %v5690_v35 = vld [vmem:[%s9864_s6 + $0x128] sm:$0xf0]  ;;  %v2466_v54 = vadd.f32 %v8312_v55, %v8079_v58 }
 0x4fb   : > { %v5693_v63 = vor.u32 %v6496_v43, %v5690_v35 }
 0x4fc   : > { %2910 = vmatmul.bf16.gmra.mxu3 %v5622_v50  ;;  %v8317_v50 = vld [vmem:[%s9865_s7] ss:$0 sm:$0xff] }
 0x4fd   : > { %5565 = vmatmul.msk.bf16.gmra.mxu2 %vm2581_vm1, %v5535_v62  ;;  %v5654_v62 = vor.u32 %v6495_v51, %v5653_v24 }
 0x509   : > { %2642 = vmatmul.bf16.gmra.mxu1 %v5531_v39  ;;  %v2464_v39 = vadd.f32 %v8312_v55, %v8093_v5 }
 0x50c   : > { %2915 = vmatmul.bf16.gmra.mxu3 %v5630_v3 }
 0x50d   : > { %5566 = vmatmul.msk.bf16.gmra.mxu2 %vm2581_vm1, %v5543_v7 }
 0x519   : > { %2647 = vmatmul.bf16.gmra.mxu1 %v5539_v2  ;;  %v6478_v2 = vld [vmem:[%s9864_s6 + $0x94] sm:$0xf] }
 0x51c   : > { %2920 = vmatmul.bf16.gmra.mxu3 %v5638_v48  ;;  %v5591_v48 = vld [vmem:[%s9864_s6 + $0x98] sm:$0xf0] }
 0x51d   : > { %5567 = vmatmul.msk.bf16.gmra.mxu2 %vm2581_vm1, %v5551_v20  ;;  %v5594_v37 = vor.u32 %v6478_v2, %v5591_v48 }
 0x529   : > { %2652 = vmatmul.bf16.gmra.mxu1 %v5547_v28  ;;  %v6499_v28 = vld [vmem:[%s9864_s6 + $0x134] sm:$0xf0] }
 0x52c   : > { %2925 = vmatmul.bf16.gmra.mxu3 %v5646_v52 }
 0x52d   : > { %5568 = vmatmul.msk.bf16.gmra.mxu2 %vm2581_vm1, %v5559_v4 }
 0x530   : > { %v2672_v49 = vpop.f32.mrf.mxu2 }
 0x536   : > { %v2618_v57 = vpop.f32.mrf.mxu1 }
 0x537   : > { %v2673_v16 = vadd.f32 %v2672_v49, %v2618_v57  ;;  %v5697_v49 = vor.u32 %v6499_v28, %v5696_v31  ;;  %v6482_v28 = vld [vmem:[%s9864_s6 + $0xb4] sm:$0xf] }
 0x538   : > { %v2674_v53 = vpop.f32.mrf.mxu2 }
 0x539   : > { %v2719_v3 = vmul.f32 %v8317_v50, %v2673_v16  ;;  %2657 = vmatmul.bf16.gmra.mxu1 %v5555_v25  ;;  %v2467_v25 = vadd.f32 %v8312_v55, %v8071_v29  ;;  %v6498_v16 = vld [vmem:[%s9864_s6 + $0x134] sm:$0xf]  ;;  %v5698_v29 = vld [vmem:[%s9864_s6 + $0x138] sm:$0xf0] }
 0x53b   : > { %v8328_v0 = vadd.f32 %v2719_v3, %v2464_v39 }
 0x53c   : > { %2930 = vmatmul.bf16.gmra.mxu3 %v5654_v62  ;;  %v6480_v62 = vld [vmem:[%s9864_s6 + $0xa4] sm:$0xf] }
 0x53d   : > { %3163 = vmatmul.bf16.vlgmr.msrb.gmra.mxu2 %v5689_v56  ;;  %v5602_v39 = vor.u32 %v6480_v62, %v5599_v14  ;;  %v5701_v56 = vor.u32 %v6498_v16, %v5698_v29  ;;  %v2470_v14 = vadd.f32 %v8312_v55, %v8040_v9 }
 0x53e   : > { %4247 = vmatpush.bf16.msrb.mxu2 %v8005_v34  ;;  %v2620_v36 = vpop.f32.mrf.mxu1 }
 0x53f   : > { %v8330_v7 = vpop.f32.mrf.mxu3  ;;  %v2675_v18 = vadd.f32 %v2674_v53, %v2620_v36  ;;  %v5704_v36 = vld [vmem:[%s9864_s6 + $0x140] sm:$0xf] }
 0x540   : > { %v2677_v22 = vpop.f32.mrf.mxu2 }
 0x541   : > { %v2720_v5 = vmul.f32 %v8317_v50, %v2675_v18  ;;  %v6501_v18 = vld [vmem:[%s9864_s6 + $0x144] sm:$0xf0] }
 0x542   : > { %4248 = vmatpush.bf16.msrb.mxu2 %v8016_v13  ;;  %v5705_v48 = vor.u32 %v6501_v18, %v5704_v36 }
 0x543   : > { %v8343_v21 = vadd.f32 %v2720_v5, %v2465_v33  ;;  %v2468_v5 = vadd.f32 %v8312_v55, %v8065_v47  ;;  %v2469_v47 = vadd.f32 %v8312_v55, %v8055_v61  ;;  %v5706_v61 = vld [vmem:[%s9864_s6 + $0x148] sm:$0xf0] }
 0x546   : > { %4249 = vmatpush.bf16.msrb.mxu2 %v8027_v17  ;;  %v2623_v12 = vpop.f32.mrf.mxu1 }
 0x547   : > { %v8351_v20 = vpop.f32.mrf.mxu3  ;;  %v2678_v52 = vadd.f32 %v2677_v22, %v2623_v12 }
 0x548   : > { %v2679_v11 = vpop.f32.mrf.mxu2 }
 0x549   : > { %v2721_v4 = vmul.f32 %v8317_v50, %v2678_v52  ;;  %5659 = vmatmul.msk.bf16.vlgmr.msrb.gmra.mxu1 %vm2581_vm1, %v5594_v37  ;;  %v5607_v52 = vld [vmem:[%s9864_s6 + $0xb8] sm:$0xf0] }
 0x54a   : > { %4035 = vmatpush.bf16.msrb.mxu1 %v8063_v26  ;;  %4250 = vmatpush.bf16.msrb.mxu2 %v8038_v6 }
 0x54b   : > { %v8366_v8 = vadd.f32 %v2721_v4, %v2466_v54  ;;  %v6500_v54 = vld [vmem:[%s9864_s6 + $0x144] sm:$0xf] }
 0x54c   : > { %5758 = vmatmul.msk.bf16.vlgmr.msrb.gmra.mxu3 %vm2581_vm1, %v5693_v63 }
 0x54d   : > { %4308 = vmatpush.bf16.msrb.mxu3 %v8063_v26  ;;  %3168 = vmatmul.bf16.gmra.mxu2 %v5697_v49  ;;  %v5610_v49 = vor.u32 %v6482_v28, %v5607_v52  ;;  %v6505_v28 = vld [vmem:[%s9864_s6 + $0x164] sm:$0xf0] }
 0x54e   : > { %v2625_v24 = vpop.f32.mrf.mxu1  ;;  %4251 = vmatpush.bf16.msrb.mxu2 %v8059_v42 }
 0x54f   : > { %v8370_v45 = vpop.f32.mrf.mxu3  ;;  %v2680_v58 = vadd.f32 %v2679_v11, %v2625_v24 }
 0x550   : > { %v2682_v51 = vpop.f32.mrf.mxu2 }
 0x551   : > { %v2722_v57 = vmul.f32 %v8317_v50, %v2680_v58  ;;  %v5709_v58 = vor.u32 %v6500_v54, %v5706_v61  ;;  %v2472_v61 = vadd.f32 %v8312_v55, %v8029_v60 }
 0x552   : > { %4252 = vmatpush.bf16.msrb.mxu2 %v8075_v40 }
 0x553   : > { %v8382_v46 = vadd.f32 %v2722_v57, %v2467_v25  ;;  %v6503_v25 = vld [vmem:[%s9864_s6 + $0x154] sm:$0xf0] }
 0x556   : > { %v2628_v3 = vpop.f32.mrf.mxu1  ;;  %4253 = vmatpush.bf16.msrb.mxu2 %v8089_v23 }
 0x557   : > { %v8391_v53 = vpop.f32.mrf.mxu3  ;;  %v2683_v22 = vadd.f32 %v2682_v51, %v2628_v3  ;;  %v5712_v51 = vld [vmem:[%s9864_s6 + $0x150] sm:$0xf] }
 0x558   : > { %v2684_v33 = vpop.f32.mrf.mxu2  ;;  %v5713_v29 = vor.u32 %v6503_v25, %v5712_v51 }
 0x559   : > { %v2723_v2 = vmul.f32 %v8317_v50, %v2683_v22  ;;  %5660 = vmatmul.msk.bf16.gmra.mxu1 %vm2581_vm1, %v5602_v39  ;;  %v2471_v22 = vadd.f32 %v8312_v55, %v8034_v19  ;;  %v5714_v19 = vld [vmem:[%s9864_s6 + $0x158] sm:$0xf0] }
 0x55a   : > { %4254 = vmatpush.bf16.msrb.mxu2 %v8112_v30 }
 0x55b   : > { %v8405_v43 = vadd.f32 %v2723_v2, %v2468_v5  ;;  %v5615_v5 = vld [vmem:[%s9864_s6 + $0xc8] sm:$0xf0] }
 0x55c   : > { %5759 = vmatmul.msk.bf16.gmra.mxu3 %vm2581_vm1, %v5701_v56 }
 0x55d   : > { %3173 = vmatmul.bf16.gmra.mxu2 %v5705_v48  ;;  %v6502_v48 = vld [vmem:[%s9864_s6 + $0x154] sm:$0xf] }
 0x55e   : > { %v2630_v37 = vpop.f32.mrf.mxu1 }
 0x55f   : > { %v8408_v35 = vpop.f32.mrf.mxu3  ;;  %v2685_v12 = vadd.f32 %v2684_v33, %v2630_v37  ;;  %v6484_v33 = vld [vmem:[%s9864_s6 + $0xc4] sm:$0xf] }
 0x560   : > { %v2687_v63 = vpop.f32.mrf.mxu2 }
 0x561   : > { %v2724_v31 = vmul.f32 %v8317_v50, %v2685_v12  ;;  %v5618_v12 = vor.u32 %v6484_v33, %v5615_v5  ;;  %v5728_v5 = vld [vmem:[%s9864_s6 + $0x170] sm:$0xf] }
 0x563   : > { %v8419_v11 = vadd.f32 %v2724_v31, %v2469_v47  ;;  %v5717_v47 = vor.u32 %v6502_v48, %v5714_v19  ;;  %v5720_v31 = vld [vmem:[%s9864_s6 + $0x160] sm:$0xf]  ;;  %v6507_v48 = vld [vmem:[%s9864_s6 + $0x174] sm:$0xf0] }
 0x566   : > { %v2633_v24 = vpop.f32.mrf.mxu1 }
 0x567   : > { %v8427_v4 = vpop.f32.mrf.mxu3  ;;  %v2688_v57 = vadd.f32 %v2687_v63, %v2633_v24  ;;  %v5721_v24 = vor.u32 %v6505_v28, %v5720_v31  ;;  %v5729_v31 = vor.u32 %v6507_v48, %v5728_v5  ;;  %v2476_v5 = vadd.f32 %v8312_v55, %v8007_v59 }
 0x568   : > { %v2689_v62 = vpop.f32.mrf.mxu2 }
 0x569   : > { %v2725_v16 = vmul.f32 %v8317_v50, %v2688_v57  ;;  %5661 = vmatmul.msk.bf16.gmra.mxu1 %vm2581_vm1, %v5610_v49 }
 0x56b   : > { %v8440_v39 = vadd.f32 %v2725_v16, %v2470_v14  ;;  %v2473_v14 = vadd.f32 %v8312_v55, %v8023_v32  ;;  %v6486_v16 = vld [vmem:[%s9864_s6 + $0xd4] sm:$0xf]  ;;  %v5722_v32 = vld [vmem:[%s9864_s6 + $0x168] sm:$0xf0] }
 0x56c   : > { %5760 = vmatmul.msk.bf16.gmra.mxu3 %vm2581_vm1, %v5709_v58 }
 0x56d   : > { %3178 = vmatmul.bf16.gmra.mxu2 %v5713_v29  ;;  %v5623_v29 = vld [vmem:[%s9864_s6 + $0xd8] sm:$0xf0] }
 0x56e   : > { %v2635_v56 = vpop.f32.mrf.mxu1 }
 0x56f   : > { %v8442_v3 = vpop.f32.mrf.mxu3  ;;  %v2690_v36 = vadd.f32 %v2689_v62, %v2635_v56 }
 0x570   : > { %v2692_v18 = vpop.f32.mrf.mxu2 }
 0x571   : > { %v2726_v9 = vmul.f32 %v8317_v50, %v2690_v36  ;;  %v6504_v36 = vld [vmem:[%s9864_s6 + $0x164] sm:$0xf] }
 0x572   : > { %v5725_v33 = vor.u32 %v6504_v36, %v5722_v32  ;;  %v5736_v32 = vld [vmem:[%s9864_s6 + $0x180] sm:$0xf] }
 0x573   : > { %v8453_v2 = vadd.f32 %v2726_v9, %v2471_v22  ;;  %v5626_v22 = vor.u32 %v6486_v16, %v5623_v29 }
 0x576   : > { %v2638_v63 = vpop.f32.mrf.mxu1 }
 0x577   : > { %v8461_v37 = vpop.f32.mrf.mxu3  ;;  %v2693_v52 = vadd.f32 %v2692_v18, %v2638_v63  ;;  %v2474_v63 = vadd.f32 %v8312_v55, %v8018_v27 }
 0x578   : > { %v2694_v54 = vpop.f32.mrf.mxu2 }
 0x579   : > { %v2727_v49 = vmul.f32 %v8317_v50, %v2693_v52  ;;  %5662 = vmatmul.msk.bf16.gmra.mxu1 %vm2581_vm1, %v5618_v12 }
 0x57b   : > { %v8474_v58 = vadd.f32 %v2727_v49, %v2472_v61 }
 0x57c   : > { %5761 = vmatmul.msk.bf16.gmra.mxu3 %vm2581_vm1, %v5717_v47 }
 0x57d   : > { %3183 = vmatmul.bf16.gmra.mxu2 %v5721_v24  ;;  %v2475_v24 = vadd.f32 %v8312_v55, %v8012_v38  ;;  %v5730_v38 = vld [vmem:[%s9864_s6 + $0x178] sm:$0xf0] }
 0x57e   : > { %v2640_v25 = vpop.f32.mrf.mxu1 }
 0x57f   : > { %v8476_v51 = vpop.f32.mrf.mxu3  ;;  %v2695_v57 = vadd.f32 %v2694_v54, %v2640_v25  ;;  %v6488_v25 = vld [vmem:[%s9864_s6 + $0xe4] sm:$0xf] }
 0x580   : > { %v2697_v62 = vpop.f32.mrf.mxu2 }
 0x581   : > { %v2728_v60 = vmul.f32 %v8317_v50, %v2695_v57  ;;  %v5631_v57 = vld [vmem:[%s9864_s6 + $0xe8] sm:$0xf0] }
 0x582   : > { %v5634_v16 = vor.u32 %v6488_v25, %v5631_v57  ;;  %v6508_v25 = vld [vmem:[%s9864_s6 + $0x184] sm:$0xf] }
 0x583   : > { %v8487_v56 = vadd.f32 %v2728_v60, %v2473_v14  ;;  %v6506_v14 = vld [vmem:[%s9864_s6 + $0x174] sm:$0xf] }
 0x584   : > { %v5733_v36 = vor.u32 %v6506_v14, %v5730_v38 }
 0x586   : > { %v2643_v9 = vpop.f32.mrf.mxu1 }
 0x587   : > { %v8495_v18 = vpop.f32.mrf.mxu3  ;;  %v2698_v19 = vadd.f32 %v2697_v62, %v2643_v9 }
 0x588   : > { %v2699_v12 = vpop.f32.mrf.mxu2 }
 0x589   : > { %v2729_v47 = vmul.f32 %v8317_v50, %v2698_v19  ;;  %5663 = vmatmul.msk.bf16.gmra.mxu1 %vm2581_vm1, %v5626_v22  ;;  %v6509_v22 = vld [vmem:[%s9864_s6 + $0x184] sm:$0xf0] }
 0x58a   : > { %v5737_v19 = vor.u32 %v6509_v22, %v5736_v32 }
 0x58b   : > { %v8508_v28 = vadd.f32 %v2729_v47, %v2474_v63 }
 0x58c   : > { %5762 = vmatmul.msk.bf16.gmra.mxu3 %vm2581_vm1, %v5725_v33 }
 0x58d   : > { %3188 = vmatmul.bf16.gmra.mxu2 %v5729_v31 }
 0x58e   : > { %v2645_v54 = vpop.f32.mrf.mxu1 }
 0x58f   : > { %v8510_v52 = vpop.f32.mrf.mxu3  ;;  %v2700_v61 = vadd.f32 %v2699_v12, %v2645_v54 }
 0x590   : > { %v2702_v49 = vpop.f32.mrf.mxu2 }
 0x591   : > { %v2730_v27 = vmul.f32 %v8317_v50, %v2700_v61  ;;  %v2477_v61 = vadd.f32 %v8312_v55, %v8001_v15  ;;  %v5738_v15 = vld [vmem:[%s9864_s6 + $0x188] sm:$0xf0] }
 0x593   : > { %v8521_v62 = vadd.f32 %v2730_v27, %v2475_v24  ;;  %v5639_v24 = vld [vmem:[%s9864_s6 + $0xf8] sm:$0xf0] }
 0x596   : > { %v2648_v29 = vpop.f32.mrf.mxu1 }
 0x597   : > { %v8529_v60 = vpop.f32.mrf.mxu3  ;;  %v2703_v9 = vadd.f32 %v2702_v49, %v2648_v29  ;;  %v6490_v49 = vld [vmem:[%s9864_s6 + $0xf4] sm:$0xf]  ;;  %v5744_v29 = vld [vmem:[%s9864_s6 + $0x190] sm:$0xf] }
 0x598   : > { %v2704_v33 = vpop.f32.mrf.mxu2  ;;  %v5642_v14 = vor.u32 %v6490_v49, %v5639_v24  ;;  %v5647_v49 = vld [vmem:[%s9864_s6 + $0x108] sm:$0xf0] }
 0x599   : > { %v2731_v48 = vmul.f32 %v8317_v50, %v2703_v9  ;;  %5664 = vmatmul.msk.bf16.gmra.mxu1 %vm2581_vm1, %v5634_v16  ;;  %v5741_v16 = vor.u32 %v6508_v25, %v5738_v15  ;;  %v2478_v9 = vadd.f32 %v8312_v55, %v7997_v10  ;;  %v6510_v25 = vld [vmem:[%s9864_s6 + $0x194] sm:$0xf] }
 0x59b   : > { %v8542_v12 = vadd.f32 %v2731_v48, %v2476_v5 }
 0x59c   : > { %5763 = vmatmul.msk.bf16.gmra.mxu3 %vm2581_vm1, %v5733_v36  ;;  %v6511_v36 = vld [vmem:[%s9864_s6 + $0x194] sm:$0xf0] }
 0x59d   : > { %3193 = vmatmul.bf16.gmra.mxu2 %v5737_v19  ;;  %v5745_v5 = vor.u32 %v6511_v36, %v5744_v29  ;;  %v5752_v29 = vld [vmem:[%s9864_s6 + $0x1a0] sm:$0xf]  ;;  %v6513_v36 = vld [vmem:[%s9864_s6 + $0x1a4] sm:$0xf0] }
 0x59e   : > { %v2650_v47 = vpop.f32.mrf.mxu1 }
 0x59f   : > { %v8544_v63 = vpop.f32.mrf.mxu3  ;;  %v2705_v31 = vadd.f32 %v2704_v33, %v2650_v47 }
 0x5a0   : > { %v2707_v54 = vpop.f32.mrf.mxu2 }
 0x5a1   : > { %v2732_v59 = vmul.f32 %v8317_v50, %v2705_v31 }
 0x5a3   : > { %v8555_v27 = vadd.f32 %v2732_v59, %v2477_v61  ;;  %v6492_v59 = vld [vmem:[%s9864_s6 + $0x104] sm:$0xf] }
 0x5a6   : > { %v2653_v38 = vpop.f32.mrf.mxu1 }
 0x5a7   : > { %v8563_v57 = vpop.f32.mrf.mxu3  ;;  %v2708_v32 = vadd.f32 %v2707_v54, %v2653_v38  ;;  %v2479_v54 = vadd.f32 %v8312_v55, %v7999_v1  ;;  %v5746_v1 = vld [vmem:[%s9864_s6 + $0x198] sm:$0xf0] }
 0x5a8   : > { %v2709_v22 = vpop.f32.mrf.mxu2 }
 0x5a9   : > { %v2733_v33 = vmul.f32 %v8317_v50, %v2708_v32  ;;  %5665 = vmatmul.msk.bf16.gmra.mxu1 %vm2581_vm1, %v5642_v14  ;;  %v5650_v14 = vor.u32 %v6492_v59, %v5647_v49  ;;  %v6494_v49 = vld [vmem:[%s9864_s6 + $0x114] sm:$0xf] }
 0x5ab   : > { %v8576_v48 = vadd.f32 %v2733_v33, %v2478_v9  ;;  %v2480_v9 = vadd.f32 %v8312_v55, %v8042_v44 }
 0x5ac   : > { %5764 = vmatmul.msk.bf16.gmra.mxu3 %vm2581_vm1, %v5741_v16  ;;  %v5749_v16 = vor.u32 %v6510_v25, %v5746_v1  ;;  %v5655_v25 = vld [vmem:[%s9864_s6 + $0x118] sm:$0xf0] }
 0x5ad   : > { %3198 = vmatmul.bf16.gmra.mxu2 %v5745_v5  ;;  %v5753_v5 = vor.u32 %v6513_v36, %v5752_v29  ;;  %v5658_v29 = vor.u32 %v6494_v49, %v5655_v25  ;;  %v8658_v49 = vld [vmem:[%s9865_s7 + $0x2] ss:$0 sm:$0xff] }
 0x5ae   : > { %v2655_v47 = vpop.f32.mrf.mxu1 }
 0x5af   : > { %v8578_v19 = vpop.f32.mrf.mxu3  ;;  %v2710_v31 = vadd.f32 %v2709_v22, %v2655_v47 }
 0x5b0   : > { %v2712_v61 = vpop.f32.mrf.mxu2 }
 0x5b1   : > { %v2734_v10 = vmul.f32 %v8317_v50, %v2710_v31 }
 0x5b3   : > { %v8589_v24 = vadd.f32 %v2734_v10, %v2479_v54 }
 0x5b6   : > { %v2658_v38 = vpop.f32.mrf.mxu1 }
 0x5b7   : > { %v8597_v15 = vpop.f32.mrf.mxu3  ;;  %v2713_v32 = vadd.f32 %v2712_v61, %v2658_v38  ;;  %v2481_v61 = vadd.f32 %v8312_v55, %v8044_v41  ;;  %v5754_v41 = vld [vmem:[%s9864_s6 + $0x1a8] sm:$0xf0]  ;;  %v5795_v55 = vld [vmem:[%s9864_s6 + $0x1c0] sm:$0xf] }
 0x5b8   : > { %v2714_v22 = vpop.f32.mrf.mxu2 }
 0x5b9   : > { %v2735_v33 = vmul.f32 %v8317_v50, %v2713_v32  ;;  %5666 = vmatmul.msk.bf16.gmra.mxu1 %vm2581_vm1, %v5650_v14  ;;  %v6512_v14 = vld [vmem:[%s9864_s6 + $0x1a4] sm:$0xf] }
 0x5bb   : > { %v8610_v47 = vadd.f32 %v2735_v33, %v2480_v9  ;;  %v5886_v9 = vld [vmem:[%s9864_s6 + $0x240] sm:$0xf]  ;;  %v6533_v33 = vld [vmem:[%s9864_s6 + $0x244] sm:$0xf0] }
 0x5bc   : > { %5765 = vmatmul.msk.bf16.gmra.mxu3 %vm2581_vm1, %v5749_v16  ;;  %v8642_v16 = vld [vmem:[%s9865_s7 + $0x1] ss:$0 sm:$0xff] }
 0x5bd   : > { %3203 = vmatmul.bf16.gmra.mxu2 %v5753_v5 }
 0x5be   : > { %v2660_v54 = vpop.f32.mrf.mxu1 }
 0x5bf   : > { %v8612_v31 = vpop.f32.mrf.mxu3  ;;  %v2715_v10 = vadd.f32 %v2714_v22, %v2660_v54  ;;  %v5757_v22 = vor.u32 %v6512_v14, %v5754_v41 }
 0x5c0   : > { %v3164_v59 = vpop.f32.mrf.mxu2 }
 0x5c1   : > { %v2736_v44 = vmul.f32 %v8317_v50, %v2715_v10  ;;  %v6517_v50 = vld [vmem:[%s9864_s6 + $0x1c4] sm:$0xf0] }
 0x5c2   : > { %v5796_v36 = vor.u32 %v6517_v50, %v5795_v55 }
 0x5c3   : > { %v8623_v1 = vadd.f32 %v2736_v44, %v2481_v61  ;;  %v5887_v61 = vor.u32 %v6533_v33, %v5886_v9 }
 0x5c4   : > { %3441 = vmatmul.bf16.gmra.mxu0 %v5796_v36 }
 0x5c6   : > { %v2945_v32 = vpop.f32.mrf.mxu1 }
 0x5c7   : > { %v8637_v38 = vpop.f32.mrf.mxu3  ;;  %v2946_v5 = vadd.f32 %v2945_v32, %v8330_v7  ;;  %v5888_v32 = vld [vmem:[%s9864_s6 + $0x248] sm:$0xf0] }
 0x5c8   : > { %v3166_v54 = vpop.f32.mrf.mxu2 }
 0x5c9   : > { %v2992_v10 = vmul.f32 %v8642_v16, %v2946_v5  ;;  %5667 = vmatmul.msk.bf16.gmra.mxu1 %vm2581_vm1, %v5658_v29 }
 0x5cb   : > { %v3010_v44 = vadd.f32 %v2992_v10, %v8328_v0  ;;  %v6514_v0 = vld [vmem:[%s9864_s6 + $0x1b4] sm:$0xf] }
 0x5cc   : > { %5766 = vmatmul.msk.bf16.gmra.mxu3 %vm2581_vm1, %v5757_v22  ;;  %v6519_v22 = vld [vmem:[%s9864_s6 + $0x1d4] sm:$0xf0] }
 0x5cd   : > { %3709 = vmatmul.bf16.vlgmr.msra.gmra.mxu2 %v5887_v61 }
 0x5ce   : > { %4793 = vmatpush.bf16.msra.mxu2 %v8005_v34  ;;  %v2947_v7 = vpop.f32.mrf.mxu1  ;;  %v5789_v34 = vld [vmem:[%s9864_s6 + $0x1b8] sm:$0xf0] }
 0x5cf   : > { %v3218_v25 = vpop.f32.mrf.mxu3  ;;  %v2948_v41 = vadd.f32 %v2947_v7, %v8351_v20  ;;  %v6532_v20 = vld [vmem:[%s9864_s6 + $0x244] sm:$0xf]  ;;  %v5792_v33 = vor.u32 %v6514_v0, %v5789_v34 }
 0x5d0   : > { %v3219_v14 = vadd.f32 %v3218_v25, %v3164_v59  ;;  %v3169_v50 = vpop.f32.mrf.mxu2  ;;  %v5891_v61 = vor.u32 %v6532_v20, %v5888_v32  ;;  %v6535_v25 = vld [vmem:[%s9864_s6 + $0x254] sm:$0xf0] }
 0x5d1   : > { %v2993_v29 = vmul.f32 %v8642_v16, %v2948_v41 }
 0x5d2   : > { %v3265_v55 = vmul.f32 %v8658_v49, %v3219_v14  ;;  %4794 = vmatpush.bf16.msra.mxu2 %v8016_v13  ;;  %v5803_v13 = vld [vmem:[%s9864_s6 + $0x1d0] sm:$0xf] }
 0x5d3   : > { %v3011_v59 = vadd.f32 %v2993_v29, %v8343_v21  ;;  %v5804_v5 = vor.u32 %v6519_v22, %v5803_v13 }
 0x5d4   : > { %v8664_v36 = vadd.f32 %v3265_v55, %v3010_v44  ;;  %v5894_v44 = vld [vmem:[%s9864_s6 + $0x250] sm:$0xf] }
 0x5d5   : > { %3446 = vmatmul.bf16.gmra.mxu0 %v5804_v5 }
 0x5d6   : > { %4795 = vmatpush.bf16.msra.mxu2 %v8027_v17  ;;  %v2950_v10 = vpop.f32.mrf.mxu1  ;;  %v5895_v17 = vor.u32 %v6535_v25, %v5894_v44  ;;  %v6537_v44 = vld [vmem:[%s9864_s6 + $0x264] sm:$0xf0] }
 0x5d7   : > { %v3220_v9 = vpop.f32.mrf.mxu3  ;;  %v2951_v14 = vadd.f32 %v2950_v10, %v8370_v45 }
 0x5d8   : > { %v3221_v21 = vadd.f32 %v3220_v9, %v3166_v54  ;;  %v3171_v41 = vpop.f32.mrf.mxu2  ;;  %v6521_v9 = vld [vmem:[%s9864_s6 + $0x1e4] sm:$0xf0] }
 0x5d9   : > { %v2994_v54 = vmul.f32 %v8642_v16, %v2951_v14  ;;  %5857 = vmatmul.msk.bf16.vlgmr.msra.gmra.mxu1 %vm2581_vm1, %v5792_v33 }
 0x5da   : > { %v3266_v7 = vmul.f32 %v8658_v49, %v3221_v21  ;;  %4581 = vmatpush.bf16.msra.mxu1 %v8063_v26  ;;  %4796 = vmatpush.bf16.msra.mxu2 %v8038_v6  ;;  %v6516_v6 = vld [vmem:[%s9864_s6 + $0x1c4] sm:$0xf] }
 0x5db   : > { %v3012_v29 = vadd.f32 %v2994_v54, %v8366_v8 }
 0x5dc   : > { %v8697_v55 = vadd.f32 %v3266_v7, %v3011_v59  ;;  %5956 = vmatmul.msk.bf16.vlgmr.msra.gmra.mxu3 %vm2581_vm1, %v5891_v61  ;;  %v5902_v61 = vld [vmem:[%s9864_s6 + $0x260] sm:$0xf] }
 0x5dd   : > { %4854 = vmatpush.bf16.msra.mxu3 %v8063_v26  ;;  %3714 = vmatmul.bf16.gmra.mxu2 %v5895_v17  ;;  %v5797_v26 = vld [vmem:[%s9864_s6 + $0x1c8] sm:$0xf0]  ;;  %v5903_v54 = vor.u32 %v6537_v44, %v5902_v61 }
 0x5de   : > { %v2952_v34 = vpop.f32.mrf.mxu1  ;;  %4797 = vmatpush.bf16.msra.mxu2 %v8059_v42  ;;  %v6534_v42 = vld [vmem:[%s9864_s6 + $0x254] sm:$0xf] }
 0x5df   : > { %v3223_v45 = vpop.f32.mrf.mxu3  ;;  %v2953_v20 = vadd.f32 %v2952_v34, %v8391_v53  ;;  %v5896_v53 = vld [vmem:[%s9864_s6 + $0x258] sm:$0xf0] }
 0x5e0   : > { %v3224_v0 = vadd.f32 %v3223_v45, %v3169_v50  ;;  %v3174_v32 = vpop.f32.mrf.mxu2  ;;  %v5811_v50 = vld [vmem:[%s9864_s6 + $0x1e0] sm:$0xf]  ;;  %v5899_v10 = vor.u32 %v6534_v42, %v5896_v53 }
 0x5e1   : > { %v2995_v13 = vmul.f32 %v8642_v16, %v2953_v20  ;;  %v5812_v5 = vor.u32 %v6521_v9, %v5811_v50 }
 0x5e2   : > { %v3267_v59 = vmul.f32 %v8658_v49, %v3224_v0  ;;  %4798 = vmatpush.bf16.msra.mxu2 %v8075_v40 }
 0x5e3   : > { %v3013_v8 = vadd.f32 %v2995_v13, %v8382_v46  ;;  %v5800_v46 = vor.u32 %v6516_v6, %v5797_v26  ;;  %v6518_v6 = vld [vmem:[%s9864_s6 + $0x1d4] sm:$0xf]  ;;  %v5819_v26 = vld [vmem:[%s9864_s6 + $0x1f0] sm:$0xf] }
 0x5e4   : > { %v8708_v22 = vadd.f32 %v3267_v59, %v3012_v29 }
 0x5e5   : > { %3451 = vmatmul.bf16.gmra.mxu0 %v5812_v5  ;;  %v6539_v5 = vld [vmem:[%s9864_s6 + $0x274] sm:$0xf0] }
 0x5e6   : > { %v2955_v21 = vpop.f32.mrf.mxu1  ;;  %4799 = vmatpush.bf16.msra.mxu2 %v8089_v23 }
 0x5e7   : > { %v3225_v33 = vpop.f32.mrf.mxu3  ;;  %v2956_v25 = vadd.f32 %v2955_v21, %v8408_v35 }
 0x5e8   : > { %v3226_v40 = vadd.f32 %v3225_v33, %v3171_v41  ;;  %v3176_v7 = vpop.f32.mrf.mxu2 }
 0x5e9   : > { %v2996_v41 = vmul.f32 %v8642_v16, %v2956_v25  ;;  %5858 = vmatmul.msk.bf16.gmra.mxu1 %vm2581_vm1, %v5800_v46  ;;  %v5910_v46 = vld [vmem:[%s9864_s6 + $0x270] sm:$0xf] }
 0x5ea   : > { %v3268_v14 = vmul.f32 %v8658_v49, %v3226_v40  ;;  %4800 = vmatpush.bf16.msra.mxu2 %v8112_v30  ;;  %v5805_v30 = vld [vmem:[%s9864_s6 + $0x1d8] sm:$0xf0]  ;;  %v5911_v44 = vor.u32 %v6539_v5, %v5910_v46 }
 0x5eb   : > { %v3014_v29 = vadd.f32 %v2996_v41, %v8405_v43  ;;  %v5808_v53 = vor.u32 %v6518_v6, %v5805_v30  ;;  %v6525_v6 = vld [vmem:[%s9864_s6 + $0x204] sm:$0xf0] }
 0x5ec   : > { %v8741_v17 = vadd.f32 %v3268_v14, %v3013_v8  ;;  %5957 = vmatmul.msk.bf16.gmra.mxu3 %vm2581_vm1, %v5899_v10  ;;  %v6523_v8 = vld [vmem:[%s9864_s6 + $0x1f4] sm:$0xf0] }
 0x5ed   : > { %3719 = vmatmul.bf16.gmra.mxu2 %v5903_v54  ;;  %v5820_v50 = vor.u32 %v6523_v8, %v5819_v26  ;;  %v5918_v8 = vld [vmem:[%s9864_s6 + $0x280] sm:$0xf] }
 0x5ee   : > { %v2957_v45 = vpop.f32.mrf.mxu1 }
 0x5ef   : > { %v3228_v23 = vpop.f32.mrf.mxu3  ;;  %v2958_v0 = vadd.f32 %v2957_v45, %v8427_v4  ;;  %v6536_v4 = vld [vmem:[%s9864_s6 + $0x264] sm:$0xf] }
 0x5f0   : > { %v3229_v35 = vadd.f32 %v3228_v23, %v3174_v32  ;;  %v3179_v20 = vpop.f32.mrf.mxu2  ;;  %v5904_v32 = vld [vmem:[%s9864_s6 + $0x268] sm:$0xf0] }
 0x5f1   : > { %v2997_v59 = vmul.f32 %v8642_v16, %v2958_v0  ;;  %v5907_v33 = vor.u32 %v6536_v4, %v5904_v32  ;;  %v6520_v0 = vld [vmem:[%s9864_s6 + $0x1e4] sm:$0xf] }
 0x5f2   : > { %v3269_v34 = vmul.f32 %v8658_v49, %v3229_v35 }
 0x5f3   : > { %v3015_v43 = vadd.f32 %v2997_v59, %v8419_v11  ;;  %v5827_v59 = vld [vmem:[%s9864_s6 + $0x200] sm:$0xf] }
 0x5f4   : > { %v8749_v13 = vadd.f32 %v3269_v34, %v3014_v29  ;;  %v5828_v4 = vor.u32 %v6525_v6, %v5827_v59  ;;  %v6543_v59 = vld [vmem:[%s9864_s6 + $0x294] sm:$0xf0] }
 0x5f5   : > { %3456 = vmatmul.bf16.gmra.mxu0 %v5820_v50 }
 0x5f6   : > { %v2960_v9 = vpop.f32.mrf.mxu1 }
 0x5f7   : > { %v3230_v42 = vpop.f32.mrf.mxu3  ;;  %v2961_v40 = vadd.f32 %v2960_v9, %v8442_v3 }
 0x5f8   : > { %v3231_v11 = vadd.f32 %v3230_v42, %v3176_v7  ;;  %v3181_v10 = vpop.f32.mrf.mxu2  ;;  %v6541_v42 = vld [vmem:[%s9864_s6 + $0x284] sm:$0xf0] }
 0x5f9   : > { %v2998_v61 = vmul.f32 %v8642_v16, %v2961_v40  ;;  %5859 = vmatmul.msk.bf16.gmra.mxu1 %vm2581_vm1, %v5808_v53 }
 0x5fa   : > { %v3270_v21 = vmul.f32 %v8658_v49, %v3231_v11 }
 0x5fb   : > { %v3016_v14 = vadd.f32 %v2998_v61, %v8440_v39  ;;  %v5813_v39 = vld [vmem:[%s9864_s6 + $0x1e8] sm:$0xf0] }
 0x5fc   : > { %v8780_v25 = vadd.f32 %v3270_v21, %v3015_v43  ;;  %5958 = vmatmul.msk.bf16.gmra.mxu3 %vm2581_vm1, %v5907_v33  ;;  %v5816_v43 = vor.u32 %v6520_v0, %v5813_v39  ;;  %v5919_v33 = vor.u32 %v6541_v42, %v5918_v8 }
 0x5fd   : > { %3724 = vmatmul.bf16.gmra.mxu2 %v5911_v44 }
 0x5fe   : > { %v2962_v54 = vpop.f32.mrf.mxu1 }
 0x5ff   : > { %v3233_v7 = vpop.f32.mrf.mxu3  ;;  %v2963_v3 = vadd.f32 %v2962_v54, %v8461_v37  ;;  %v6538_v37 = vld [vmem:[%s9864_s6 + $0x274] sm:$0xf] }
 0x600   : > { %v3234_v41 = vadd.f32 %v3233_v7, %v3179_v20  ;;  %v3184_v23 = vpop.f32.mrf.mxu2  ;;  %v5912_v20 = vld [vmem:[%s9864_s6 + $0x278] sm:$0xf0] }
 0x601   : > { %v2999_v35 = vmul.f32 %v8642_v16, %v2963_v3  ;;  %v5915_v26 = vor.u32 %v6538_v37, %v5912_v20  ;;  %v5920_v3 = vld [vmem:[%s9864_s6 + $0x288] sm:$0xf0]  ;;  %v5926_v20 = vld [vmem:[%s9864_s6 + $0x290] sm:$0xf] }
 0x602   : > { %v3271_v29 = vmul.f32 %v8658_v49, %v3234_v41  ;;  %v6522_v41 = vld [vmem:[%s9864_s6 + $0x1f4] sm:$0xf] }
 0x603   : > { %v3017_v34 = vadd.f32 %v2999_v35, %v8453_v2 }
 0x604   : > { %v8787_v45 = vadd.f32 %v3271_v29, %v3016_v14  ;;  %v5835_v29 = vld [vmem:[%s9864_s6 + $0x210] sm:$0xf] }
 0x605   : > { %3461 = vmatmul.bf16.gmra.mxu0 %v5828_v4 }
 0x606   : > { %v2965_v32 = vpop.f32.mrf.mxu1 }
 0x607   : > { %v3235_v30 = vpop.f32.mrf.mxu3  ;;  %v2966_v53 = vadd.f32 %v2965_v32, %v8476_v51 }
 0x608   : > { %v3236_v2 = vadd.f32 %v3235_v30, %v3181_v10  ;;  %v3186_v11 = vpop.f32.mrf.mxu2 }
 0x609   : > { %v3000_v9 = vmul.f32 %v8642_v16, %v2966_v53  ;;  %5860 = vmatmul.msk.bf16.gmra.mxu1 %vm2581_vm1, %v5816_v43 }
 0x60a   : > { %v3272_v50 = vmul.f32 %v8658_v49, %v3236_v2  ;;  %v5927_v2 = vor.u32 %v6543_v59, %v5926_v20 }
 0x60b   : > { %v3018_v5 = vadd.f32 %v3000_v9, %v8474_v58  ;;  %v5821_v58 = vld [vmem:[%s9864_s6 + $0x1f8] sm:$0xf0] }
 0x60c   : > { %v8818_v46 = vadd.f32 %v3272_v50, %v3017_v34  ;;  %5959 = vmatmul.msk.bf16.gmra.mxu3 %vm2581_vm1, %v5915_v26  ;;  %v5824_v0 = vor.u32 %v6522_v41, %v5821_v58 }
 0x60d   : > { %3729 = vmatmul.bf16.gmra.mxu2 %v5919_v33 }
 0x60e   : > { %v2967_v10 = vpop.f32.mrf.mxu1 }
 0x60f   : > { %v3238_v40 = vpop.f32.mrf.mxu3  ;;  %v2968_v51 = vadd.f32 %v2967_v10, %v8495_v18  ;;  %v6540_v18 = vld [vmem:[%s9864_s6 + $0x284] sm:$0xf]  ;;  %v5843_v10 = vld [vmem:[%s9864_s6 + $0x220] sm:$0xf] }
 0x610   : > { %v3239_v21 = vadd.f32 %v3238_v40, %v3184_v23  ;;  %v3189_v44 = vpop.f32.mrf.mxu2  ;;  %v6527_v23 = vld [vmem:[%s9864_s6 + $0x214] sm:$0xf0]  ;;  %v5923_v37 = vor.u32 %v6540_v18, %v5920_v3  ;;  %v6545_v18 = vld [vmem:[%s9864_s6 + $0x2a4] sm:$0xf0] }
 0x611   : > { %v3001_v14 = vmul.f32 %v8642_v16, %v2968_v51  ;;  %v5836_v39 = vor.u32 %v6527_v23, %v5835_v29  ;;  %v6529_v51 = vld [vmem:[%s9864_s6 + $0x224] sm:$0xf0] }
 0x612   : > { %v3273_v61 = vmul.f32 %v8658_v49, %v3239_v21  ;;  %v5928_v21 = vld [vmem:[%s9864_s6 + $0x298] sm:$0xf0] }
 0x613   : > { %v3019_v54 = vadd.f32 %v3001_v14, %v8487_v56  ;;  %v5844_v14 = vor.u32 %v6529_v51, %v5843_v10 }
 0x614   : > { %v8825_v7 = vadd.f32 %v3273_v61, %v3018_v5  ;;  %v6524_v5 = vld [vmem:[%s9864_s6 + $0x204] sm:$0xf] }
 0x615   : > { %3466 = vmatmul.bf16.gmra.mxu0 %v5836_v39 }
 0x616   : > { %v2970_v34 = vpop.f32.mrf.mxu1 }
 0x617   : > { %v3240_v35 = vpop.f32.mrf.mxu3  ;;  %v2971_v6 = vadd.f32 %v2970_v34, %v8510_v52 }
 0x618   : > { %v3241_v56 = vadd.f32 %v3240_v35, %v3186_v11  ;;  %v3191_v43 = vpop.f32.mrf.mxu2 }
 0x619   : > { %v3002_v4 = vmul.f32 %v8642_v16, %v2971_v6  ;;  %5861 = vmatmul.msk.bf16.gmra.mxu1 %vm2581_vm1, %v5824_v0 }
 0x61a   : > { %v3274_v30 = vmul.f32 %v8658_v49, %v3241_v56 }
 0x61b   : > { %v3020_v26 = vadd.f32 %v3002_v4, %v8508_v28  ;;  %v5829_v28 = vld [vmem:[%s9864_s6 + $0x208] sm:$0xf0]  ;;  %v6526_v4 = vld [vmem:[%s9864_s6 + $0x214] sm:$0xf] }
 0x61c   : > { %v8856_v32 = vadd.f32 %v3274_v30, %v3019_v54  ;;  %5960 = vmatmul.msk.bf16.gmra.mxu3 %vm2581_vm1, %v5923_v37  ;;  %v5934_v54 = vld [vmem:[%s9864_s6 + $0x2a0] sm:$0xf] }
 0x61d   : > { %3734 = vmatmul.bf16.gmra.mxu2 %v5927_v2  ;;  %v5935_v0 = vor.u32 %v6545_v18, %v5934_v54 }
 0x61e   : > { %v2972_v53 = vpop.f32.mrf.mxu1 }
 0x61f   : > { %v3243_v8 = vpop.f32.mrf.mxu3  ;;  %v2973_v52 = vadd.f32 %v2972_v53, %v8529_v60  ;;  %v6542_v60 = vld [vmem:[%s9864_s6 + $0x294] sm:$0xf]  ;;  %v6531_v53 = vld [vmem:[%s9864_s6 + $0x234] sm:$0xf0] }
 0x620   : > { %v3244_v42 = vadd.f32 %v3243_v8, %v3189_v44  ;;  %v3194_v11 = vpop.f32.mrf.mxu2  ;;  %v5832_v44 = vor.u32 %v6524_v5, %v5829_v28  ;;  %v5931_v58 = vor.u32 %v6542_v60, %v5928_v21  ;;  %v8916_v8 = vpop.f32.mrf.mxu0  ;;  %v5942_v28 = vld [vmem:[%s9864_s6 + $0x2b0] sm:$0xf] }
 0x621   : > { %v3003_v9 = vmul.f32 %v8642_v16, %v2973_v52 }
 0x622   : > { %v3275_v50 = vmul.f32 %v8658_v49, %v3244_v42  ;;  %v5851_v42 = vld [vmem:[%s9864_s6 + $0x230] sm:$0xf] }
 0x623   : > { %v3021_v40 = vadd.f32 %v3003_v9, %v8521_v62 }
 0x624   : > { %v8863_v33 = vadd.f32 %v3275_v50, %v3020_v26  ;;  %v5936_v26 = vld [vmem:[%s9864_s6 + $0x2a8] sm:$0xf0]  ;;  %v5852_v50 = vor.u32 %v6531_v53, %v5851_v42 }
 0x625   : > { %3471 = vmatmul.bf16.gmra.mxu0 %v5844_v14 }
 0x626   : > { %v2975_v41 = vpop.f32.mrf.mxu1 }
 0x627   : > { %v3245_v61 = vpop.f32.mrf.mxu3  ;;  %v2976_v3 = vadd.f32 %v2975_v41, %v8544_v63 }
 0x628   : > { %v3246_v62 = vadd.f32 %v3245_v61, %v3191_v43  ;;  %v3196_v23 = vpop.f32.mrf.mxu2 }
 0x629   : > { %v3004_v35 = vmul.f32 %v8642_v16, %v2976_v3  ;;  %5862 = vmatmul.msk.bf16.gmra.mxu1 %vm2581_vm1, %v5832_v44 }
 0x62a   : > { %v3276_v29 = vmul.f32 %v8658_v49, %v3246_v62  ;;  %v8938_v62 = vpop.f32.mrf.mxu0 }
 0x62b   : > { %v3022_v56 = vadd.f32 %v3004_v35, %v8542_v12  ;;  %v5837_v12 = vld [vmem:[%s9864_s6 + $0x218] sm:$0xf0]  ;;  %v6528_v35 = vld [vmem:[%s9864_s6 + $0x224] sm:$0xf] }
 0x62c   : > { %v8894_v39 = vadd.f32 %v3276_v29, %v3021_v40  ;;  %5961 = vmatmul.msk.bf16.gmra.mxu3 %vm2581_vm1, %v5931_v58  ;;  %v6547_v40 = vld [vmem:[%s9864_s6 + $0x2b4] sm:$0xf0] }
 0x62d   : > { %3739 = vmatmul.bf16.gmra.mxu2 %v5935_v0  ;;  %v5943_v61 = vor.u32 %v6547_v40, %v5942_v28 }
 0x62e   : > { %v2977_v20 = vpop.f32.mrf.mxu1 }
 0x62f   : > { %v3248_v34 = vpop.f32.mrf.mxu3  ;;  %v2978_v63 = vadd.f32 %v2977_v20, %v8563_v57  ;;  %v6544_v57 = vld [vmem:[%s9864_s6 + $0x2a4] sm:$0xf]  ;;  %v6551_v20 = vld [vmem:[%s9864_s6 + $0x2d4] sm:$0xf0] }
 0x630   : > { %v3249_v37 = vadd.f32 %v3248_v34, %v3194_v11  ;;  %v3199_v6 = vpop.f32.mrf.mxu2  ;;  %v5939_v5 = vor.u32 %v6544_v57, %v5936_v26 }
 0x631   : > { %v3005_v30 = vmul.f32 %v8642_v16, %v2978_v63 }
 0x632   : > { %v3277_v59 = vmul.f32 %v8658_v49, %v3249_v37  ;;  %v5985_v37 = vld [vmem:[%s9864_s6 + $0x2d0] sm:$0xf] }
 0x633   : > { %v3023_v2 = vadd.f32 %v3005_v30, %v8555_v27  ;;  %v5840_v27 = vor.u32 %v6526_v4, %v5837_v12  ;;  %v5950_v12 = vld [vmem:[%s9864_s6 + $0x2c0] sm:$0xf] }
 0x634   : > { %v8901_v43 = vadd.f32 %v3277_v59, %v3022_v56  ;;  %v5944_v56 = vld [vmem:[%s9864_s6 + $0x2b8] sm:$0xf0]  ;;  %v5986_v59 = vor.u32 %v6551_v20, %v5985_v37 }
 0x635   : > { %3476 = vmatmul.bf16.gmra.mxu0 %v5852_v50 }
 0x636   : > { %v2980_v9 = vpop.f32.mrf.mxu1 }
 0x637   : > { %v3250_v52 = vpop.f32.mrf.mxu3  ;;  %v2981_v60 = vadd.f32 %v2980_v9, %v8578_v19 }
 0x638   : > { %v3251_v11 = vadd.f32 %v3250_v52, %v3196_v23  ;;  %v3201_v10 = vpop.f32.mrf.mxu2 }
 0x639   : > { %v3006_v51 = vmul.f32 %v8642_v16, %v2981_v60  ;;  %5863 = vmatmul.msk.bf16.gmra.mxu1 %vm2581_vm1, %v5840_v27 }
 0x63a   : > { %v3278_v21 = vmul.f32 %v8658_v49, %v3251_v11 }
 0x63b   : > { %v3024_v14 = vadd.f32 %v3006_v51, %v8576_v48  ;;  %v5845_v48 = vld [vmem:[%s9864_s6 + $0x228] sm:$0xf0]  ;;  %v6530_v51 = vld [vmem:[%s9864_s6 + $0x234] sm:$0xf] }
 0x63c   : > { %v8934_v44 = vadd.f32 %v3278_v21, %v3023_v2  ;;  %5962 = vmatmul.msk.bf16.gmra.mxu3 %vm2581_vm1, %v5939_v5  ;;  %v6549_v2 = vld [vmem:[%s9864_s6 + $0x2c4] sm:$0xf0] }
 0x63d   : > { %3744 = vmatmul.bf16.gmra.mxu2 %v5943_v61  ;;  %v5951_v52 = vor.u32 %v6549_v2, %v5950_v12 }
 0x63e   : > { %v2982_v58 = vpop.f32.mrf.mxu1 }
 0x63f   : > { %v3253_v41 = vpop.f32.mrf.mxu3  ;;  %v2983_v54 = vadd.f32 %v2982_v58, %v8597_v15  ;;  %v6546_v15 = vld [vmem:[%s9864_s6 + $0x2b4] sm:$0xf] }
 0x640   : > { %v3254_v19 = vadd.f32 %v3253_v41, %v3199_v6  ;;  %v3204_v3 = vpop.f32.mrf.mxu2  ;;  %v5947_v4 = vor.u32 %v6546_v15, %v5944_v56  ;;  %v5993_v41 = vld [vmem:[%s9864_s6 + $0x2e0] sm:$0xf] }
 0x641   : > { %v3007_v29 = vmul.f32 %v8642_v16, %v2983_v54  ;;  %v8958_v34 = vpop.f32.mrf.mxu0 }
 0x642   : > { %v3279_v18 = vmul.f32 %v8658_v49, %v3254_v19  ;;  %v6553_v19 = vld [vmem:[%s9864_s6 + $0x2e4] sm:$0xf0] }
 0x643   : > { %v3025_v0 = vadd.f32 %v3007_v29, %v8589_v24  ;;  %v5848_v24 = vor.u32 %v6528_v35, %v5845_v48  ;;  %v6084_v48 = vld [vmem:[%s9864_s6 + $0x360] sm:$0xf] }
 0x644   : > { %v8943_v23 = vadd.f32 %v3279_v18, %v3024_v14  ;;  %v5994_v18 = vor.u32 %v6553_v19, %v5993_v41 }
 0x645   : > { %3982 = vmatmul.bf16.vlgmr.msra.gmra.mxu0 %v5986_v59 }
 0x646   : > { %v2985_v30 = vpop.f32.mrf.mxu1 }
 0x647   : > { %v3255_v63 = vpop.f32.mrf.mxu3  ;;  %v2986_v57 = vadd.f32 %v2985_v30, %v8612_v31 }
 0x648   : > { %v3256_v6 = vadd.f32 %v3255_v63, %v3201_v10  ;;  %v3206_v42 = vpop.f32.mrf.mxu2 }
 0x649   : > { %v3008_v53 = vmul.f32 %v8642_v16, %v2986_v57  ;;  %5864 = vmatmul.msk.bf16.gmra.mxu1 %vm2581_vm1, %v5848_v24  ;;  %v8980_v11 = vpop.f32.mrf.mxu0 }
 0x64a   : > { %v3280_v26 = vmul.f32 %v8658_v49, %v3256_v6  ;;  %v9030_v6 = vld [vmem:[%s9865_s7 + $0x4] ss:$0 sm:$0xff] }
 0x64b   : > { %v3026_v50 = vadd.f32 %v3008_v53, %v8610_v47  ;;  %v5853_v47 = vld [vmem:[%s9864_s6 + $0x238] sm:$0xf0] }
 0x64c   : > { %v8976_v27 = vadd.f32 %v3280_v26, %v3025_v0  ;;  %5963 = vmatmul.msk.bf16.gmra.mxu3 %vm2581_vm1, %v5947_v4  ;;  %v5856_v54 = vor.u32 %v6530_v51, %v5853_v47  ;;  %v6569_v0 = vld [vmem:[%s9864_s6 + $0x364] sm:$0xf0]  ;;  %v5987_v53 = vld [vmem:[%s9864_s6 + $0x2d8] sm:$0xf0]  ;;  %v6092_v47 = vld [vmem:[%s9864_s6 + $0x370] sm:$0xf] }
 0x64d   : > { %3749 = vmatmul.bf16.gmra.mxu2 %v5951_v52  ;;  %v6085_v63 = vor.u32 %v6569_v0, %v6084_v48 }
 0x64e   : > { %v2987_v5 = vpop.f32.mrf.mxu1 }
 0x64f   : > { %v3258_v9 = vpop.f32.mrf.mxu3  ;;  %v2988_v28 = vadd.f32 %v2987_v5, %v8637_v38  ;;  %v6548_v38 = vld [vmem:[%s9864_s6 + $0x2c4] sm:$0xf]  ;;  %v6555_v5 = vld [vmem:[%s9864_s6 + $0x2f4] sm:$0xf0] }
 0x650   : > { %v3259_v31 = vadd.f32 %v3258_v9, %v3204_v3  ;;  %v3710_v60 = vpop.f32.mrf.mxu2 }
 0x651   : > { %v3009_v21 = vmul.f32 %v8642_v16, %v2988_v28  ;;  %v5952_v16 = vld [vmem:[%s9864_s6 + $0x2c8] sm:$0xf0] }
 0x652   : > { %v3281_v40 = vmul.f32 %v8658_v49, %v3259_v31  ;;  %v9000_v14 = vpop.f32.mrf.mxu0  ;;  %v5955_v35 = vor.u32 %v6548_v38, %v5952_v16  ;;  %v6001_v31 = vld [vmem:[%s9864_s6 + $0x2f0] sm:$0xf] }
 0x653   : > { %v3027_v61 = vadd.f32 %v3009_v21, %v8623_v1  ;;  %v9011_v1 = vld [vmem:[%s9865_s7 + $0x3] ss:$0 sm:$0xff] }
 0x654   : > { %v8985_v10 = vadd.f32 %v3281_v40, %v3026_v50  ;;  %v6086_v50 = vld [vmem:[%s9864_s6 + $0x368] sm:$0xf0]  ;;  %v6002_v40 = vor.u32 %v6555_v5, %v6001_v31 }
 0x655   : > { %3987 = vmatmul.bf16.gmra.mxu0 %v5994_v18 }
 0x656   : > { %v3491_v29 = vpop.f32.mrf.mxu1 }
 0x657   : > { %v3260_v58 = vpop.f32.mrf.mxu3  ;;  %v3492_v15 = vadd.f32 %v3491_v29, %v8916_v8 }
 0x658   : > { %v3261_v3 = vadd.f32 %v3260_v58, %v3206_v42  ;;  %v3712_v37 = vpop.f32.mrf.mxu2 }
 0x659   : > { %v3538_v20 = vmul.f32 %v9011_v1, %v3492_v15  ;;  %5865 = vmatmul.msk.bf16.gmra.mxu1 %vm2581_vm1, %v5856_v54 }
 0x65a   : > { %v3282_v56 = vmul.f32 %v8658_v49, %v3261_v3  ;;  %v9032_v8 = vpop.f32.mrf.mxu0 }
 0x65b   : > { %v3556_v59 = vadd.f32 %v3538_v20, %v8664_v36  ;;  %v6550_v36 = vld [vmem:[%s9864_s6 + $0x2d4] sm:$0xf]  ;;  %v6552_v20 = vld [vmem:[%s9864_s6 + $0x2e4] sm:$0xf] }
 0x65c   : > { %v9023_v24 = vadd.f32 %v3282_v56, %v3027_v61  ;;  %5964 = vmatmul.msk.bf16.gmra.mxu3 %vm2581_vm1, %v5955_v35  ;;  %v6571_v61 = vld [vmem:[%s9864_s6 + $0x374] sm:$0xf0] }
 0x65d   : > { %4255 = vmatmul.bf16.vlgmr.msrb.gmra.mxu2 %v6085_v63  ;;  %v6093_v58 = vor.u32 %v6571_v61, %v6092_v47 }
 0x65e   : > { %v3493_v4 = vpop.f32.mrf.mxu1 }
 0x65f   : > { %v3764_v49 = vpop.f32.mrf.mxu3  ;;  %v3494_v12 = vadd.f32 %v3493_v4, %v8938_v62  ;;  %v6568_v62 = vld [vmem:[%s9864_s6 + $0x364] sm:$0xf]  ;;  %v6557_v4 = vld [vmem:[%s9864_s6 + $0x304] sm:$0xf0] }
 0x660   : > { %v3765_v30 = vadd.f32 %v3764_v49, %v3710_v60  ;;  %v3715_v57 = vpop.f32.mrf.mxu2  ;;  %v6089_v51 = vor.u32 %v6568_v62, %v6086_v50 }
 0x661   : > { %v3539_v26 = vmul.f32 %v9011_v1, %v3494_v12 }
 0x662   : > { %v3811_v2 = vmul.f32 %v9030_v6, %v3765_v30  ;;  %v9052_v9 = vpop.f32.mrf.mxu0  ;;  %v6009_v30 = vld [vmem:[%s9864_s6 + $0x300] sm:$0xf] }
 0x663   : > { %v3557_v52 = vadd.f32 %v3539_v26, %v8697_v55  ;;  %v5990_v55 = vor.u32 %v6550_v36, %v5987_v53  ;;  %v6100_v53 = vld [vmem:[%s9864_s6 + $0x380] sm:$0xf] }
 0x664   : > { %v9037_v42 = vadd.f32 %v3811_v2, %v3556_v59  ;;  %v6094_v59 = vld [vmem:[%s9864_s6 + $0x378] sm:$0xf0]  ;;  %v6010_v2 = vor.u32 %v6557_v4, %v6009_v30 }
 0x665   : > { %3992 = vmatmul.bf16.gmra.mxu0 %v6002_v40 }
 0x666   : > { %v3496_v21 = vpop.f32.mrf.mxu1 }
 0x667   : > { %v3766_v28 = vpop.f32.mrf.mxu3  ;;  %v3497_v38 = vadd.f32 %v3496_v21, %v8958_v34 }
 0x668   : > { %v3767_v60 = vadd.f32 %v3766_v28, %v3712_v37  ;;  %v3717_v41 = vpop.f32.mrf.mxu2 }
 0x669   : > { %v3540_v19 = vmul.f32 %v9011_v1, %v3497_v38  ;;  %6055 = vmatmul.msk.bf16.vlgmr.msrb.gmra.mxu1 %vm2581_vm1, %v5990_v55 }
 0x66a   : > { %v3812_v16 = vmul.f32 %v9030_v6, %v3767_v60  ;;  %v9074_v3 = vpop.f32.mrf.mxu0 }
 0x66b   : > { %v3558_v18 = vadd.f32 %v3540_v19, %v8708_v22  ;;  %v5995_v22 = vld [vmem:[%s9864_s6 + $0x2e8] sm:$0xf0]  ;;  %v6554_v19 = vld [vmem:[%s9864_s6 + $0x2f4] sm:$0xf] }
 0x66c   : > { %v9070_v54 = vadd.f32 %v3812_v16, %v3557_v52  ;;  %6154 = vmatmul.msk.bf16.vlgmr.msrb.gmra.mxu3 %vm2581_vm1, %v6089_v51  ;;  %v6573_v52 = vld [vmem:[%s9864_s6 + $0x384] sm:$0xf0] }
 0x66d   : > { %4260 = vmatmul.bf16.gmra.mxu2 %v6093_v58  ;;  %v6101_v28 = vor.u32 %v6573_v52, %v6100_v53 }
 0x66e   : > { %v3498_v35 = vpop.f32.mrf.mxu1 }
 0x66f   : > { %v3769_v29 = vpop.f32.mrf.mxu3  ;;  %v3499_v48 = vadd.f32 %v3498_v35, %v8980_v11  ;;  %v6570_v11 = vld [vmem:[%s9864_s6 + $0x374] sm:$0xf]  ;;  %v6559_v35 = vld [vmem:[%s9864_s6 + $0x314] sm:$0xf0] }
 0x670   : > { %v3770_v34 = vadd.f32 %v3769_v29, %v3715_v57  ;;  %v3720_v15 = vpop.f32.mrf.mxu2  ;;  %v6097_v36 = vor.u32 %v6570_v11, %v6094_v59 }
 0x671   : > { %v3541_v56 = vmul.f32 %v9011_v1, %v3499_v48 }
 0x672   : > { %v3813_v0 = vmul.f32 %v9030_v6, %v3770_v34  ;;  %v9094_v49 = vpop.f32.mrf.mxu0  ;;  %v6017_v34 = vld [vmem:[%s9864_s6 + $0x310] sm:$0xf] }
 0x673   : > { %v3559_v63 = vadd.f32 %v3541_v56, %v8741_v17  ;;  %v5998_v17 = vor.u32 %v6552_v20, %v5995_v22  ;;  %v6108_v22 = vld [vmem:[%s9864_s6 + $0x390] sm:$0xf] }
 0x674   : > { %v9079_v37 = vadd.f32 %v3813_v0, %v3558_v18  ;;  %v6102_v18 = vld [vmem:[%s9864_s6 + $0x388] sm:$0xf0]  ;;  %v6018_v0 = vor.u32 %v6559_v35, %v6017_v34 }
 0x675   : > { %3997 = vmatmul.bf16.gmra.mxu0 %v6010_v2 }
 0x676   : > { %v3501_v26 = vpop.f32.mrf.mxu1 }
 0x677   : > { %v3771_v12 = vpop.f32.mrf.mxu3  ;;  %v3502_v62 = vadd.f32 %v3501_v26, %v9000_v14 }
 0x678   : > { %v3772_v57 = vadd.f32 %v3771_v12, %v3717_v41  ;;  %v3722_v31 = vpop.f32.mrf.mxu2 }
 0x679   : > { %v3542_v5 = vmul.f32 %v9011_v1, %v3502_v62  ;;  %6056 = vmatmul.msk.bf16.gmra.mxu1 %vm2581_vm1, %v5998_v17 }
 0x67a   : > { %v3814_v50 = vmul.f32 %v9030_v6, %v3772_v57  ;;  %v9116_v60 = vpop.f32.mrf.mxu0 }
 0x67b   : > { %v3560_v40 = vadd.f32 %v3542_v5, %v8749_v13  ;;  %v6003_v13 = vld [vmem:[%s9864_s6 + $0x2f8] sm:$0xf0]  ;;  %v6556_v5 = vld [vmem:[%s9864_s6 + $0x304] sm:$0xf] }
 0x67c   : > { %v9112_v55 = vadd.f32 %v3814_v50, %v3559_v63  ;;  %6155 = vmatmul.msk.bf16.gmra.mxu3 %vm2581_vm1, %v6097_v36  ;;  %v6575_v63 = vld [vmem:[%s9864_s6 + $0x394] sm:$0xf0] }
 0x67d   : > { %4265 = vmatmul.bf16.gmra.mxu2 %v6101_v28  ;;  %v6109_v12 = vor.u32 %v6575_v63, %v6108_v22 }
 0x67e   : > { %v3503_v51 = vpop.f32.mrf.mxu1 }
 0x67f   : > { %v3774_v21 = vpop.f32.mrf.mxu3  ;;  %v3504_v47 = vadd.f32 %v3503_v51, %v9032_v8  ;;  %v6572_v8 = vld [vmem:[%s9864_s6 + $0x384] sm:$0xf]  ;;  %v6561_v51 = vld [vmem:[%s9864_s6 + $0x324] sm:$0xf0] }
 0x680   : > { %v3775_v14 = vadd.f32 %v3774_v21, %v3720_v15  ;;  %v3725_v38 = vpop.f32.mrf.mxu2  ;;  %v6105_v20 = vor.u32 %v6572_v8, %v6102_v18 }
 0x681   : > { %v3543_v16 = vmul.f32 %v9011_v1, %v3504_v47 }
 0x682   : > { %v3815_v61 = vmul.f32 %v9030_v6, %v3775_v14  ;;  %v9136_v29 = vpop.f32.mrf.mxu0  ;;  %v6025_v14 = vld [vmem:[%s9864_s6 + $0x320] sm:$0xf] }
 0x683   : > { %v3561_v58 = vadd.f32 %v3543_v16, %v8780_v25  ;;  %v6006_v25 = vor.u32 %v6554_v19, %v6003_v13  ;;  %v6116_v13 = vld [vmem:[%s9864_s6 + $0x3a0] sm:$0xf] }
 0x684   : > { %v9121_v41 = vadd.f32 %v3815_v61, %v3560_v40  ;;  %v6110_v40 = vld [vmem:[%s9864_s6 + $0x398] sm:$0xf0]  ;;  %v6026_v61 = vor.u32 %v6561_v51, %v6025_v14 }
 0x685   : > { %4002 = vmatmul.bf16.gmra.mxu0 %v6018_v0 }
 0x686   : > { %v3506_v56 = vpop.f32.mrf.mxu1 }
 0x687   : > { %v3776_v48 = vpop.f32.mrf.mxu3  ;;  %v3507_v11 = vadd.f32 %v3506_v56, %v9052_v9 }
 0x688   : > { %v3777_v15 = vadd.f32 %v3776_v48, %v3722_v31  ;;  %v3727_v30 = vpop.f32.mrf.mxu2 }
 0x689   : > { %v3544_v4 = vmul.f32 %v9011_v1, %v3507_v11  ;;  %6057 = vmatmul.msk.bf16.gmra.mxu1 %vm2581_vm1, %v6006_v25 }
 0x68a   : > { %v3816_v59 = vmul.f32 %v9030_v6, %v3777_v15  ;;  %v9158_v57 = vpop.f32.mrf.mxu0 }
 0x68b   : > { %v3562_v2 = vadd.f32 %v3544_v4, %v8787_v45  ;;  %v6011_v45 = vld [vmem:[%s9864_s6 + $0x308] sm:$0xf0]  ;;  %v6558_v4 = vld [vmem:[%s9864_s6 + $0x314] sm:$0xf] }
 0x68c   : > { %v9154_v17 = vadd.f32 %v3816_v59, %v3561_v58  ;;  %6156 = vmatmul.msk.bf16.gmra.mxu3 %vm2581_vm1, %v6105_v20  ;;  %v6577_v58 = vld [vmem:[%s9864_s6 + $0x3a4] sm:$0xf0] }
 0x68d   : > { %4270 = vmatmul.bf16.gmra.mxu2 %v6109_v12  ;;  %v6117_v48 = vor.u32 %v6577_v58, %v6116_v13 }
 0x68e   : > { %v3508_v36 = vpop.f32.mrf.mxu1 }
 0x68f   : > { %v3779_v26 = vpop.f32.mrf.mxu3  ;;  %v3509_v53 = vadd.f32 %v3508_v36, %v9074_v3  ;;  %v6574_v3 = vld [vmem:[%s9864_s6 + $0x394] sm:$0xf]  ;;  %v6563_v36 = vld [vmem:[%s9864_s6 + $0x334] sm:$0xf0] }
 0x690   : > { %v3780_v9 = vadd.f32 %v3779_v26, %v3725_v38  ;;  %v3730_v62 = vpop.f32.mrf.mxu2  ;;  %v6113_v19 = vor.u32 %v6574_v3, %v6110_v40 }
 0x691   : > { %v3545_v50 = vmul.f32 %v9011_v1, %v3509_v53 }
 0x692   : > { %v3817_v52 = vmul.f32 %v9030_v6, %v3780_v9  ;;  %v9178_v21 = vpop.f32.mrf.mxu0  ;;  %v6033_v9 = vld [vmem:[%s9864_s6 + $0x330] sm:$0xf] }
 0x693   : > { %v3563_v28 = vadd.f32 %v3545_v50, %v8818_v46  ;;  %v6014_v46 = vor.u32 %v6556_v5, %v6011_v45  ;;  %v6124_v45 = vld [vmem:[%s9864_s6 + $0x3b0] sm:$0xf] }
 0x694   : > { %v9163_v31 = vadd.f32 %v3817_v52, %v3562_v2  ;;  %v6118_v2 = vld [vmem:[%s9864_s6 + $0x3a8] sm:$0xf0]  ;;  %v6034_v52 = vor.u32 %v6563_v36, %v6033_v9 }
 0x695   : > { %4007 = vmatmul.bf16.gmra.mxu0 %v6026_v61 }
 0x696   : > { %v3511_v16 = vpop.f32.mrf.mxu1 }
 0x697   : > { %v3781_v47 = vpop.f32.mrf.mxu3  ;;  %v3512_v8 = vadd.f32 %v3511_v16, %v9094_v49 }
 0x698   : > { %v3782_v38 = vadd.f32 %v3781_v47, %v3727_v30  ;;  %v3732_v34 = vpop.f32.mrf.mxu2 }
 0x699   : > { %v3546_v35 = vmul.f32 %v9011_v1, %v3512_v8  ;;  %6058 = vmatmul.msk.bf16.gmra.mxu1 %vm2581_vm1, %v6014_v46 }
 0x69a   : > { %v3818_v18 = vmul.f32 %v9030_v6, %v3782_v38  ;;  %v9200_v15 = vpop.f32.mrf.mxu0 }
 0x69b   : > { %v3564_v0 = vadd.f32 %v3546_v35, %v8825_v7  ;;  %v6019_v7 = vld [vmem:[%s9864_s6 + $0x318] sm:$0xf0]  ;;  %v6560_v35 = vld [vmem:[%s9864_s6 + $0x324] sm:$0xf] }
 0x69c   : > { %v9196_v25 = vadd.f32 %v3818_v18, %v3563_v28  ;;  %6157 = vmatmul.msk.bf16.gmra.mxu3 %vm2581_vm1, %v6113_v19  ;;  %v6579_v28 = vld [vmem:[%s9864_s6 + $0x3b4] sm:$0xf0] }
 0x69d   : > { %4275 = vmatmul.bf16.gmra.mxu2 %v6117_v48  ;;  %v6125_v47 = vor.u32 %v6579_v28, %v6124_v45 }
 0x69e   : > { %v3513_v20 = vpop.f32.mrf.mxu1 }
 0x69f   : > { %v3784_v56 = vpop.f32.mrf.mxu3  ;;  %v3514_v22 = vadd.f32 %v3513_v20, %v9116_v60  ;;  %v6576_v60 = vld [vmem:[%s9864_s6 + $0x3a4] sm:$0xf]  ;;  %v6565_v20 = vld [vmem:[%s9864_s6 + $0x344] sm:$0xf0] }
 0x6a0   : > { %v3785_v49 = vadd.f32 %v3784_v56, %v3730_v62  ;;  %v3735_v11 = vpop.f32.mrf.mxu2  ;;  %v6121_v5 = vor.u32 %v6576_v60, %v6118_v2 }
 0x6a1   : > { %v3547_v59 = vmul.f32 %v9011_v1, %v3514_v22 }
 0x6a2   : > { %v3819_v63 = vmul.f32 %v9030_v6, %v3785_v49  ;;  %v9220_v26 = vpop.f32.mrf.mxu0  ;;  %v6041_v49 = vld [vmem:[%s9864_s6 + $0x340] sm:$0xf] }
 0x6a3   : > { %v3565_v12 = vadd.f32 %v3547_v59, %v8856_v32  ;;  %v6022_v32 = vor.u32 %v6558_v4, %v6019_v7  ;;  %v6132_v7 = vld [vmem:[%s9864_s6 + $0x3c0] sm:$0xf] }
 0x6a4   : > { %v9205_v30 = vadd.f32 %v3819_v63, %v3564_v0  ;;  %v6126_v0 = vld [vmem:[%s9864_s6 + $0x3b8] sm:$0xf0]  ;;  %v6042_v63 = vor.u32 %v6565_v20, %v6041_v49 }
 0x6a5   : > { %4012 = vmatmul.bf16.gmra.mxu0 %v6034_v52 }
 0x6a6   : > { %v3516_v50 = vpop.f32.mrf.mxu1 }
 0x6a7   : > { %v3786_v53 = vpop.f32.mrf.mxu3  ;;  %v3517_v3 = vadd.f32 %v3516_v50, %v9136_v29 }
 0x6a8   : > { %v3787_v62 = vadd.f32 %v3786_v53, %v3732_v34  ;;  %v3737_v14 = vpop.f32.mrf.mxu2 }
 0x6a9   : > { %v3548_v51 = vmul.f32 %v9011_v1, %v3517_v3  ;;  %6059 = vmatmul.msk.bf16.gmra.mxu1 %vm2581_vm1, %v6022_v32 }
 0x6aa   : > { %v3820_v40 = vmul.f32 %v9030_v6, %v3787_v62  ;;  %v9242_v38 = vpop.f32.mrf.mxu0 }
 0x6ab   : > { %v3566_v61 = vadd.f32 %v3548_v51, %v8863_v33  ;;  %v6027_v33 = vld [vmem:[%s9864_s6 + $0x328] sm:$0xf0]  ;;  %v6562_v51 = vld [vmem:[%s9864_s6 + $0x334] sm:$0xf] }
 0x6ac   : > { %v9238_v46 = vadd.f32 %v3820_v40, %v3565_v12  ;;  %6158 = vmatmul.msk.bf16.gmra.mxu3 %vm2581_vm1, %v6121_v5  ;;  %v6581_v12 = vld [vmem:[%s9864_s6 + $0x3c4] sm:$0xf0] }
 0x6ad   : > { %4280 = vmatmul.bf16.gmra.mxu2 %v6125_v47  ;;  %v6133_v53 = vor.u32 %v6581_v12, %v6132_v7 }
 0x6ae   : > { %v3518_v19 = vpop.f32.mrf.mxu1 }
 0x6af   : > { %v3789_v16 = vpop.f32.mrf.mxu3  ;;  %v3519_v13 = vadd.f32 %v3518_v19, %v9158_v57  ;;  %v6578_v57 = vld [vmem:[%s9864_s6 + $0x3b4] sm:$0xf]  ;;  %v6567_v19 = vld [vmem:[%s9864_s6 + $0x354] sm:$0xf0] }
 0x6b0   : > { %v3790_v29 = vadd.f32 %v3789_v16, %v3735_v11  ;;  %v3740_v8 = vpop.f32.mrf.mxu2  ;;  %v6129_v4 = vor.u32 %v6578_v57, %v6126_v0 }
 0x6b1   : > { %v3549_v18 = vmul.f32 %v9011_v1, %v3519_v13 }
 0x6b2   : > { %v3821_v58 = vmul.f32 %v9030_v6, %v3790_v29  ;;  %v9262_v56 = vpop.f32.mrf.mxu0  ;;  %v6049_v29 = vld [vmem:[%s9864_s6 + $0x350] sm:$0xf] }
 0x6b3   : > { %v3567_v48 = vadd.f32 %v3549_v18, %v8894_v39  ;;  %v6030_v39 = vor.u32 %v6560_v35, %v6027_v33  ;;  %v6140_v33 = vld [vmem:[%s9864_s6 + $0x3d0] sm:$0xf] }
 0x6b4   : > { %v9247_v34 = vadd.f32 %v3821_v58, %v3566_v61  ;;  %v6134_v61 = vld [vmem:[%s9864_s6 + $0x3c8] sm:$0xf0]  ;;  %v6050_v58 = vor.u32 %v6567_v19, %v6049_v29 }
 0x6b5   : > { %4017 = vmatmul.bf16.gmra.mxu0 %v6042_v63 }
 0x6b6   : > { %v3521_v59 = vpop.f32.mrf.mxu1 }
 0x6b7   : > { %v3791_v22 = vpop.f32.mrf.mxu3  ;;  %v3522_v60 = vadd.f32 %v3521_v59, %v9178_v21 }
 0x6b8   : > { %v3792_v11 = vadd.f32 %v3791_v22, %v3737_v14  ;;  %v3742_v9 = vpop.f32.mrf.mxu2 }
 0x6b9   : > { %v3550_v36 = vmul.f32 %v9011_v1, %v3522_v60  ;;  %6060 = vmatmul.msk.bf16.gmra.mxu1 %vm2581_vm1, %v6030_v39 }
 0x6ba   : > { %v3822_v2 = vmul.f32 %v9030_v6, %v3792_v11  ;;  %v9284_v62 = vpop.f32.mrf.mxu0 }
 0x6bb   : > { %v3568_v52 = vadd.f32 %v3550_v36, %v8901_v43  ;;  %v6035_v43 = vld [vmem:[%s9864_s6 + $0x338] sm:$0xf0]  ;;  %v6564_v36 = vld [vmem:[%s9864_s6 + $0x344] sm:$0xf] }
 0x6bc   : > { %v9280_v32 = vadd.f32 %v3822_v2, %v3567_v48  ;;  %6159 = vmatmul.msk.bf16.gmra.mxu3 %vm2581_vm1, %v6129_v4  ;;  %v6583_v48 = vld [vmem:[%s9864_s6 + $0x3d4] sm:$0xf0] }
 0x6bd   : > { %4285 = vmatmul.bf16.gmra.mxu2 %v6133_v53  ;;  %v6141_v22 = vor.u32 %v6583_v48, %v6140_v33 }
 0x6be   : > { %v3523_v5 = vpop.f32.mrf.mxu1 }
 0x6bf   : > { %v3794_v50 = vpop.f32.mrf.mxu3  ;;  %v3524_v45 = vadd.f32 %v3523_v5, %v9200_v15  ;;  %v6580_v15 = vld [vmem:[%s9864_s6 + $0x3c4] sm:$0xf]  ;;  %v6587_v5 = vld [vmem:[%s9864_s6 + $0x3f4] sm:$0xf0] }
 0x6c0   : > { %v3795_v21 = vadd.f32 %v3794_v50, %v3740_v8  ;;  %v3745_v3 = vpop.f32.mrf.mxu2  ;;  %v6137_v35 = vor.u32 %v6580_v15, %v6134_v61 }
 0x6c1   : > { %v3551_v40 = vmul.f32 %v9011_v1, %v3524_v45 }
 0x6c2   : > { %v3823_v28 = vmul.f32 %v9030_v6, %v3795_v21  ;;  %v9304_v16 = vpop.f32.mrf.mxu0  ;;  %v6183_v21 = vld [vmem:[%s9864_s6 + $0x3f0] sm:$0xf] }
 0x6c3   : > { %v3569_v47 = vadd.f32 %v3551_v40, %v8934_v44  ;;  %v6038_v44 = vor.u32 %v6562_v51, %v6035_v43  ;;  %v6148_v43 = vld [vmem:[%s9864_s6 + $0x3e0] sm:$0xf] }
 0x6c4   : > { %v9289_v14 = vadd.f32 %v3823_v28, %v3568_v52  ;;  %v6142_v52 = vld [vmem:[%s9864_s6 + $0x3d8] sm:$0xf0]  ;;  %v6184_v28 = vor.u32 %v6587_v5, %v6183_v21 }
 0x6c5   : > { %4022 = vmatmul.bf16.gmra.mxu0 %v6050_v58 }
 0x6c6   : > { %v3526_v18 = vpop.f32.mrf.mxu1 }
 0x6c7   : > { %v3796_v13 = vpop.f32.mrf.mxu3  ;;  %v3527_v57 = vadd.f32 %v3526_v18, %v9220_v26 }
 0x6c8   : > { %v3797_v8 = vadd.f32 %v3796_v13, %v3742_v9  ;;  %v3747_v49 = vpop.f32.mrf.mxu2 }
 0x6c9   : > { %v3552_v20 = vmul.f32 %v9011_v1, %v3527_v57  ;;  %6061 = vmatmul.msk.bf16.gmra.mxu1 %vm2581_vm1, %v6038_v44 }
 0x6ca   : > { %v3824_v0 = vmul.f32 %v9030_v6, %v3797_v8  ;;  %v9326_v11 = vpop.f32.mrf.mxu0 }
 0x6cb   : > { %v3570_v63 = vadd.f32 %v3552_v20, %v8943_v23  ;;  %v6043_v23 = vld [vmem:[%s9864_s6 + $0x348] sm:$0xf0]  ;;  %v6566_v20 = vld [vmem:[%s9864_s6 + $0x354] sm:$0xf] }
 0x6cc   : > { %v9322_v39 = vadd.f32 %v3824_v0, %v3569_v47  ;;  %6160 = vmatmul.msk.bf16.gmra.mxu3 %vm2581_vm1, %v6137_v35  ;;  %v6585_v47 = vld [vmem:[%s9864_s6 + $0x3e4] sm:$0xf0] }
 0x6cd   : > { %4290 = vmatmul.bf16.gmra.mxu2 %v6141_v22  ;;  %v6149_v13 = vor.u32 %v6585_v47, %v6148_v43 }
 0x6ce   : > { %v3528_v4 = vpop.f32.mrf.mxu1 }
 0x6cf   : > { %v3799_v59 = vpop.f32.mrf.mxu3  ;;  %v3529_v7 = vadd.f32 %v3528_v4, %v9242_v38  ;;  %v6582_v38 = vld [vmem:[%s9864_s6 + $0x3d4] sm:$0xf] }
 0x6d0   : > { %v3800_v26 = vadd.f32 %v3799_v59, %v3745_v3  ;;  %v3750_v60 = vpop.f32.mrf.mxu2  ;;  %v6145_v51 = vor.u32 %v6582_v38, %v6142_v52  ;;  %v6191_v59 = vld [vmem:[%s9864_s6 + $0x400] sm:$0xf] }
 0x6d1   : > { %v3553_v2 = vmul.f32 %v9011_v1, %v3529_v7 }
 0x6d2   : > { %v3825_v12 = vmul.f32 %v9030_v6, %v3800_v26  ;;  %v9346_v50 = vpop.f32.mrf.mxu0  ;;  %v6589_v26 = vld [vmem:[%s9864_s6 + $0x404] sm:$0xf0] }
 0x6d3   : > { %v3571_v53 = vadd.f32 %v3553_v2, %v8976_v27  ;;  %v6046_v27 = vor.u32 %v6564_v36, %v6043_v23  ;;  %v6282_v23 = vld [vmem:[%s9864_s6 + $0x480] sm:$0xf] }
 0x6d4   : > { %v9331_v9 = vadd.f32 %v3825_v12, %v3570_v63  ;;  %v6192_v12 = vor.u32 %v6589_v26, %v6191_v59 }
 0x6d5   : > { %4528 = vmatmul.bf16.vlgmr.msrb.gmra.mxu0 %v6184_v28 }
 0x6d6   : > { %v3531_v40 = vpop.f32.mrf.mxu1 }
 0x6d7   : > { %v3801_v45 = vpop.f32.mrf.mxu3  ;;  %v3532_v15 = vadd.f32 %v3531_v40, %v9262_v56 }
 0x6d8   : > { %v3802_v3 = vadd.f32 %v3801_v45, %v3747_v49  ;;  %v3752_v29 = vpop.f32.mrf.mxu2 }
 0x6d9   : > { %v3554_v19 = vmul.f32 %v9011_v1, %v3532_v15  ;;  %6062 = vmatmul.msk.bf16.gmra.mxu1 %vm2581_vm1, %v6046_v27 }
 0x6da   : > { %v3826_v61 = vmul.f32 %v9030_v6, %v3802_v3  ;;  %v9368_v8 = vpop.f32.mrf.mxu0  ;;  %v9418_v3 = vld [vmem:[%s9865_s7 + $0x6] ss:$0 sm:$0xff] }
 0x6db   : > { %v3572_v58 = vadd.f32 %v3554_v19, %v8985_v10  ;;  %v6051_v10 = vld [vmem:[%s9864_s6 + $0x358] sm:$0xf0] }
 0x6dc   : > { %v9364_v44 = vadd.f32 %v3826_v61, %v3571_v53  ;;  %6161 = vmatmul.msk.bf16.gmra.mxu3 %vm2581_vm1, %v6145_v51  ;;  %v6054_v7 = vor.u32 %v6566_v20, %v6051_v10  ;;  %v6605_v53 = vld [vmem:[%s9864_s6 + $0x484] sm:$0xf0]  ;;  %v6185_v19 = vld [vmem:[%s9864_s6 + $0x3f8] sm:$0xf0]  ;;  %v6290_v10 = vld [vmem:[%s9864_s6 + $0x490] sm:$0xf] }
 0x6dd   : > { %4295 = vmatmul.bf16.gmra.mxu2 %v6149_v13  ;;  %v6283_v45 = vor.u32 %v6605_v53, %v6282_v23 }
 0x6de   : > { %v3533_v35 = vpop.f32.mrf.mxu1 }
 0x6df   : > { %v3804_v18 = vpop.f32.mrf.mxu3  ;;  %v3534_v33 = vadd.f32 %v3533_v35, %v9284_v62  ;;  %v6584_v62 = vld [vmem:[%s9864_s6 + $0x3e4] sm:$0xf]  ;;  %v6591_v35 = vld [vmem:[%s9864_s6 + $0x414] sm:$0xf0] }
 0x6e0   : > { %v3805_v56 = vadd.f32 %v3804_v18, %v3750_v60  ;;  %v4256_v57 = vpop.f32.mrf.mxu2 }
 0x6e1   : > { %v3555_v0 = vmul.f32 %v9011_v1, %v3534_v33  ;;  %v6150_v1 = vld [vmem:[%s9864_s6 + $0x3e8] sm:$0xf0] }
 0x6e2   : > { %v3827_v48 = vmul.f32 %v9030_v6, %v3805_v56  ;;  %v9388_v63 = vpop.f32.mrf.mxu0  ;;  %v6153_v36 = vor.u32 %v6584_v62, %v6150_v1  ;;  %v6199_v56 = vld [vmem:[%s9864_s6 + $0x410] sm:$0xf] }
 0x6e3   : > { %v3573_v22 = vadd.f32 %v3555_v0, %v9023_v24  ;;  %v9399_v24 = vld [vmem:[%s9865_s7 + $0x5] ss:$0 sm:$0xff] }
 0x6e4   : > { %v9373_v49 = vadd.f32 %v3827_v48, %v3572_v58  ;;  %v6284_v58 = vld [vmem:[%s9864_s6 + $0x488] sm:$0xf0]  ;;  %v6200_v48 = vor.u32 %v6591_v35, %v6199_v56 }
 0x6e5   : > { %4533 = vmatmul.bf16.gmra.mxu0 %v6192_v12 }
 0x6e6   : > { %v4037_v2 = vpop.f32.mrf.mxu1 }
 0x6e7   : > { %v3806_v4 = vpop.f32.mrf.mxu3  ;;  %v4038_v38 = vadd.f32 %v4037_v2, %v9304_v16 }
 0x6e8   : > { %v3807_v60 = vadd.f32 %v3806_v4, %v3752_v29  ;;  %v4258_v21 = vpop.f32.mrf.mxu2 }
 0x6e9   : > { %v4084_v5 = vmul.f32 %v9399_v24, %v4038_v38  ;;  %6063 = vmatmul.msk.bf16.gmra.mxu1 %vm2581_vm1, %v6054_v7 }
 0x6ea   : > { %v3828_v52 = vmul.f32 %v9030_v6, %v3807_v60  ;;  %v9420_v16 = vpop.f32.mrf.mxu0 }
 0x6eb   : > { %v4102_v28 = vadd.f32 %v4084_v5, %v9037_v42  ;;  %v6586_v42 = vld [vmem:[%s9864_s6 + $0x3f4] sm:$0xf]  ;;  %v6588_v5 = vld [vmem:[%s9864_s6 + $0x404] sm:$0xf] }
 0x6ec   : > { %v9411_v27 = vadd.f32 %v3828_v52, %v3573_v22  ;;  %6162 = vmatmul.msk.bf16.gmra.mxu3 %vm2581_vm1, %v6153_v36  ;;  %v6607_v22 = vld [vmem:[%s9864_s6 + $0x494] sm:$0xf0] }
 0x6ed   : > { %4801 = vmatmul.bf16.vlgmr.msra.gmra.mxu2 %v6283_v45  ;;  %v6291_v4 = vor.u32 %v6607_v22, %v6290_v10 }
 0x6ee   : > { %v4039_v51 = vpop.f32.mrf.mxu1 }
 0x6ef   : > { %v4310_v6 = vpop.f32.mrf.mxu3  ;;  %v4040_v43 = vadd.f32 %v4039_v51, %v9326_v11  ;;  %v6604_v11 = vld [vmem:[%s9864_s6 + $0x484] sm:$0xf]  ;;  %v6593_v51 = vld [vmem:[%s9864_s6 + $0x424] sm:$0xf0] }
 0x6f0   : > { %v4311_v40 = vadd.f32 %v4310_v6, %v4256_v57  ;;  %v4261_v15 = vpop.f32.mrf.mxu2  ;;  %v6287_v20 = vor.u32 %v6604_v11, %v6284_v58 }
 0x6f1   : > { %v4085_v61 = vmul.f32 %v9399_v24, %v4040_v43 }
 0x6f2   : > { %v4357_v47 = vmul.f32 %v9418_v3, %v4311_v40  ;;  %v9440_v18 = vpop.f32.mrf.mxu0  ;;  %v6207_v40 = vld [vmem:[%s9864_s6 + $0x420] sm:$0xf] }
 0x6f3   : > { %v4103_v13 = vadd.f32 %v4085_v61, %v9070_v54  ;;  %v6188_v54 = vor.u32 %v6586_v42, %v6185_v19  ;;  %v6298_v19 = vld [vmem:[%s9864_s6 + $0x4a0] sm:$0xf] }
 0x6f4   : > { %v9425_v29 = vadd.f32 %v4357_v47, %v4102_v28  ;;  %v6292_v28 = vld [vmem:[%s9864_s6 + $0x498] sm:$0xf0]  ;;  %v6208_v47 = vor.u32 %v6593_v51, %v6207_v40 }
 0x6f5   : > { %4538 = vmatmul.bf16.gmra.mxu0 %v6200_v48 }
 0x6f6   : > { %v4042_v0 = vpop.f32.mrf.mxu1 }
 0x6f7   : > { %v4312_v33 = vpop.f32.mrf.mxu3  ;;  %v4043_v62 = vadd.f32 %v4042_v0, %v9346_v50 }
 0x6f8   : > { %v4313_v57 = vadd.f32 %v4312_v33, %v4258_v21  ;;  %v4263_v59 = vpop.f32.mrf.mxu2 }
 0x6f9   : > { %v4086_v26 = vmul.f32 %v9399_v24, %v4043_v62  ;;  %6253 = vmatmul.msk.bf16.vlgmr.msra.gmra.mxu1 %vm2581_vm1, %v6188_v54 }
 0x6fa   : > { %v4358_v1 = vmul.f32 %v9418_v3, %v4313_v57  ;;  %v9462_v60 = vpop.f32.mrf.mxu0 }
 0x6fb   : > { %v4104_v12 = vadd.f32 %v4086_v26, %v9079_v37  ;;  %v6193_v37 = vld [vmem:[%s9864_s6 + $0x408] sm:$0xf0]  ;;  %v6590_v26 = vld [vmem:[%s9864_s6 + $0x414] sm:$0xf] }
 0x6fc   : > { %v9458_v7 = vadd.f32 %v4358_v1, %v4103_v13  ;;  %6352 = vmatmul.msk.bf16.vlgmr.msra.gmra.mxu3 %vm2581_vm1, %v6287_v20  ;;  %v6609_v13 = vld [vmem:[%s9864_s6 + $0x4a4] sm:$0xf0] }
 0x6fd   : > { %4806 = vmatmul.bf16.gmra.mxu2 %v6291_v4  ;;  %v6299_v33 = vor.u32 %v6609_v13, %v6298_v19 }
 0x6fe   : > { %v4044_v36 = vpop.f32.mrf.mxu1 }
 0x6ff   : > { %v4315_v2 = vpop.f32.mrf.mxu3  ;;  %v4045_v23 = vadd.f32 %v4044_v36, %v9368_v8  ;;  %v6606_v8 = vld [vmem:[%s9864_s6 + $0x494] sm:$0xf]  ;;  %v6595_v36 = vld [vmem:[%s9864_s6 + $0x434] sm:$0xf0] }
 0x700   : > { %v4316_v50 = vadd.f32 %v4315_v2, %v4261_v15  ;;  %v4266_v38 = vpop.f32.mrf.mxu2  ;;  %v6295_v42 = vor.u32 %v6606_v8, %v6292_v28 }
 0x701   : > { %v4087_v52 = vmul.f32 %v9399_v24, %v4045_v23 }
 0x702   : > { %v4359_v53 = vmul.f32 %v9418_v3, %v4316_v50  ;;  %v9482_v6 = vpop.f32.mrf.mxu0  ;;  %v6215_v50 = vld [vmem:[%s9864_s6 + $0x430] sm:$0xf] }
 0x703   : > { %v4105_v45 = vadd.f32 %v4087_v52, %v9112_v55  ;;  %v6196_v55 = vor.u32 %v6588_v5, %v6193_v37  ;;  %v6306_v37 = vld [vmem:[%s9864_s6 + $0x4b0] sm:$0xf] }
 0x704   : > { %v9467_v21 = vadd.f32 %v4359_v53, %v4104_v12  ;;  %v6300_v12 = vld [vmem:[%s9864_s6 + $0x4a8] sm:$0xf0]  ;;  %v6216_v53 = vor.u32 %v6595_v36, %v6215_v50 }
 0x705   : > { %4543 = vmatmul.bf16.gmra.mxu0 %v6208_v47 }
 0x706   : > { %v4047_v61 = vpop.f32.mrf.mxu1 }
 0x707   : > { %v4317_v43 = vpop.f32.mrf.mxu3  ;;  %v4048_v11 = vadd.f32 %v4047_v61, %v9388_v63 }
 0x708   : > { %v4318_v15 = vadd.f32 %v4317_v43, %v4263_v59  ;;  %v4268_v56 = vpop.f32.mrf.mxu2 }
 0x709   : > { %v4088_v35 = vmul.f32 %v9399_v24, %v4048_v11  ;;  %6254 = vmatmul.msk.bf16.gmra.mxu1 %vm2581_vm1, %v6196_v55 }
 0x70a   : > { %v4360_v58 = vmul.f32 %v9418_v3, %v4318_v15  ;;  %v9504_v57 = vpop.f32.mrf.mxu0 }
 0x70b   : > { %v4106_v48 = vadd.f32 %v4088_v35, %v9121_v41  ;;  %v6201_v41 = vld [vmem:[%s9864_s6 + $0x418] sm:$0xf0]  ;;  %v6592_v35 = vld [vmem:[%s9864_s6 + $0x424] sm:$0xf] }
 0x70c   : > { %v9500_v54 = vadd.f32 %v4360_v58, %v4105_v45  ;;  %6353 = vmatmul.msk.bf16.gmra.mxu3 %vm2581_vm1, %v6295_v42  ;;  %v6611_v45 = vld [vmem:[%s9864_s6 + $0x4b4] sm:$0xf0] }
 0x70d   : > { %4811 = vmatmul.bf16.gmra.mxu2 %v6299_v33  ;;  %v6307_v43 = vor.u32 %v6611_v45, %v6306_v37 }
 0x70e   : > { %v4049_v20 = vpop.f32.mrf.mxu1 }
 0x70f   : > { %v4320_v0 = vpop.f32.mrf.mxu3  ;;  %v4050_v10 = vadd.f32 %v4049_v20, %v9420_v16  ;;  %v6608_v16 = vld [vmem:[%s9864_s6 + $0x4a4] sm:$0xf]  ;;  %v6597_v20 = vld [vmem:[%s9864_s6 + $0x444] sm:$0xf0] }
 0x710   : > { %v4321_v63 = vadd.f32 %v4320_v0, %v4266_v38  ;;  %v4271_v62 = vpop.f32.mrf.mxu2  ;;  %v6303_v5 = vor.u32 %v6608_v16, %v6300_v12 }
 0x711   : > { %v4089_v1 = vmul.f32 %v9399_v24, %v4050_v10 }
 0x712   : > { %v4361_v22 = vmul.f32 %v9418_v3, %v4321_v63  ;;  %v9524_v2 = vpop.f32.mrf.mxu0  ;;  %v6223_v63 = vld [vmem:[%s9864_s6 + $0x440] sm:$0xf] }
 0x713   : > { %v4107_v4 = vadd.f32 %v4089_v1, %v9154_v17  ;;  %v6204_v17 = vor.u32 %v6590_v26, %v6201_v41  ;;  %v6314_v41 = vld [vmem:[%s9864_s6 + $0x4c0] sm:$0xf] }
 0x714   : > { %v9509_v59 = vadd.f32 %v4361_v22, %v4106_v48  ;;  %v6308_v48 = vld [vmem:[%s9864_s6 + $0x4b8] sm:$0xf0]  ;;  %v6224_v22 = vor.u32 %v6597_v20, %v6223_v63 }
 0x715   : > { %4548 = vmatmul.bf16.gmra.mxu0 %v6216_v53 }
 0x716   : > { %v4052_v52 = vpop.f32.mrf.mxu1 }
 0x717   : > { %v4322_v23 = vpop.f32.mrf.mxu3  ;;  %v4053_v8 = vadd.f32 %v4052_v52, %v9440_v18 }
 0x718   : > { %v4323_v38 = vadd.f32 %v4322_v23, %v4268_v56  ;;  %v4273_v40 = vpop.f32.mrf.mxu2 }
 0x719   : > { %v4090_v51 = vmul.f32 %v9399_v24, %v4053_v8  ;;  %6255 = vmatmul.msk.bf16.gmra.mxu1 %vm2581_vm1, %v6204_v17 }
 0x71a   : > { %v4362_v28 = vmul.f32 %v9418_v3, %v4323_v38  ;;  %v9546_v15 = vpop.f32.mrf.mxu0 }
 0x71b   : > { %v4108_v47 = vadd.f32 %v4090_v51, %v9163_v31  ;;  %v6209_v31 = vld [vmem:[%s9864_s6 + $0x428] sm:$0xf0]  ;;  %v6594_v51 = vld [vmem:[%s9864_s6 + $0x434] sm:$0xf] }
 0x71c   : > { %v9542_v55 = vadd.f32 %v4362_v28, %v4107_v4  ;;  %6354 = vmatmul.msk.bf16.gmra.mxu3 %vm2581_vm1, %v6303_v5  ;;  %v6613_v4 = vld [vmem:[%s9864_s6 + $0x4c4] sm:$0xf0] }
 0x71d   : > { %4816 = vmatmul.bf16.gmra.mxu2 %v6307_v43  ;;  %v6315_v23 = vor.u32 %v6613_v4, %v6314_v41 }
 0x71e   : > { %v4054_v42 = vpop.f32.mrf.mxu1 }
 0x71f   : > { %v4325_v61 = vpop.f32.mrf.mxu3  ;;  %v4055_v19 = vadd.f32 %v4054_v42, %v9462_v60  ;;  %v6610_v60 = vld [vmem:[%s9864_s6 + $0x4b4] sm:$0xf]  ;;  %v6599_v42 = vld [vmem:[%s9864_s6 + $0x454] sm:$0xf0] }
 0x720   : > { %v4326_v18 = vadd.f32 %v4325_v61, %v4271_v62  ;;  %v4276_v11 = vpop.f32.mrf.mxu2  ;;  %v6311_v26 = vor.u32 %v6610_v60, %v6308_v48 }
 0x721   : > { %v4091_v58 = vmul.f32 %v9399_v24, %v4055_v19 }
 0x722   : > { %v4363_v13 = vmul.f32 %v9418_v3, %v4326_v18  ;;  %v9566_v0 = vpop.f32.mrf.mxu0  ;;  %v6231_v18 = vld [vmem:[%s9864_s6 + $0x450] sm:$0xf] }
 0x723   : > { %v4109_v33 = vadd.f32 %v4091_v58, %v9196_v25  ;;  %v6212_v25 = vor.u32 %v6592_v35, %v6209_v31  ;;  %v6322_v31 = vld [vmem:[%s9864_s6 + $0x4d0] sm:$0xf] }
 0x724   : > { %v9551_v56 = vadd.f32 %v4363_v13, %v4108_v47  ;;  %v6316_v47 = vld [vmem:[%s9864_s6 + $0x4c8] sm:$0xf0]  ;;  %v6232_v13 = vor.u32 %v6599_v42, %v6231_v18 }
 0x725   : > { %4553 = vmatmul.bf16.gmra.mxu0 %v6224_v22 }
 0x726   : > { %v4057_v1 = vpop.f32.mrf.mxu1 }
 0x727   : > { %v4327_v10 = vpop.f32.mrf.mxu3  ;;  %v4058_v16 = vadd.f32 %v4057_v1, %v9482_v6 }
 0x728   : > { %v4328_v62 = vadd.f32 %v4327_v10, %v4273_v40  ;;  %v4278_v50 = vpop.f32.mrf.mxu2 }
 0x729   : > { %v4092_v36 = vmul.f32 %v9399_v24, %v4058_v16  ;;  %6256 = vmatmul.msk.bf16.gmra.mxu1 %vm2581_vm1, %v6212_v25 }
 0x72a   : > { %v4364_v12 = vmul.f32 %v9418_v3, %v4328_v62  ;;  %v9588_v38 = vpop.f32.mrf.mxu0 }
 0x72b   : > { %v4110_v53 = vadd.f32 %v4092_v36, %v9205_v30  ;;  %v6217_v30 = vld [vmem:[%s9864_s6 + $0x438] sm:$0xf0]  ;;  %v6596_v36 = vld [vmem:[%s9864_s6 + $0x444] sm:$0xf] }
 0x72c   : > { %v9584_v17 = vadd.f32 %v4364_v12, %v4109_v33  ;;  %6355 = vmatmul.msk.bf16.gmra.mxu3 %vm2581_vm1, %v6311_v26  ;;  %v6615_v33 = vld [vmem:[%s9864_s6 + $0x4d4] sm:$0xf0] }
 0x72d   : > { %4821 = vmatmul.bf16.gmra.mxu2 %v6315_v23  ;;  %v6323_v10 = vor.u32 %v6615_v33, %v6322_v31 }
 0x72e   : > { %v4059_v5 = vpop.f32.mrf.mxu1 }
 0x72f   : > { %v4330_v52 = vpop.f32.mrf.mxu3  ;;  %v4060_v37 = vadd.f32 %v4059_v5, %v9504_v57  ;;  %v6612_v57 = vld [vmem:[%s9864_s6 + $0x4c4] sm:$0xf]  ;;  %v6601_v5 = vld [vmem:[%s9864_s6 + $0x464] sm:$0xf0] }
 0x730   : > { %v4331_v6 = vadd.f32 %v4330_v52, %v4276_v11  ;;  %v4281_v8 = vpop.f32.mrf.mxu2  ;;  %v6319_v35 = vor.u32 %v6612_v57, %v6316_v47 }
 0x731   : > { %v4093_v28 = vmul.f32 %v9399_v24, %v4060_v37 }
 0x732   : > { %v4365_v45 = vmul.f32 %v9418_v3, %v4331_v6  ;;  %v9608_v61 = vpop.f32.mrf.mxu0  ;;  %v6239_v6 = vld [vmem:[%s9864_s6 + $0x460] sm:$0xf] }
 0x733   : > { %v4111_v43 = vadd.f32 %v4093_v28, %v9238_v46  ;;  %v6220_v46 = vor.u32 %v6594_v51, %v6217_v30  ;;  %v6330_v30 = vld [vmem:[%s9864_s6 + $0x4e0] sm:$0xf] }
 0x734   : > { %v9593_v40 = vadd.f32 %v4365_v45, %v4110_v53  ;;  %v6324_v53 = vld [vmem:[%s9864_s6 + $0x4d8] sm:$0xf0]  ;;  %v6240_v45 = vor.u32 %v6601_v5, %v6239_v6 }
 0x735   : > { %4558 = vmatmul.bf16.gmra.mxu0 %v6232_v13 }
 0x736   : > { %v4062_v58 = vpop.f32.mrf.mxu1 }
 0x737   : > { %v4332_v19 = vpop.f32.mrf.mxu3  ;;  %v4063_v60 = vadd.f32 %v4062_v58, %v9524_v2 }
 0x738   : > { %v4333_v11 = vadd.f32 %v4332_v19, %v4278_v50  ;;  %v4283_v63 = vpop.f32.mrf.mxu2 }
 0x739   : > { %v4094_v20 = vmul.f32 %v9399_v24, %v4063_v60  ;;  %6257 = vmatmul.msk.bf16.gmra.mxu1 %vm2581_vm1, %v6220_v46 }
 0x73a   : > { %v4366_v48 = vmul.f32 %v9418_v3, %v4333_v11  ;;  %v9630_v62 = vpop.f32.mrf.mxu0 }
 0x73b   : > { %v4112_v22 = vadd.f32 %v4094_v20, %v9247_v34  ;;  %v6225_v34 = vld [vmem:[%s9864_s6 + $0x448] sm:$0xf0]  ;;  %v6598_v20 = vld [vmem:[%s9864_s6 + $0x454] sm:$0xf] }
 0x73c   : > { %v9626_v25 = vadd.f32 %v4366_v48, %v4111_v43  ;;  %6356 = vmatmul.msk.bf16.gmra.mxu3 %vm2581_vm1, %v6319_v35  ;;  %v6617_v43 = vld [vmem:[%s9864_s6 + $0x4e4] sm:$0xf0] }
 0x73d   : > { %4826 = vmatmul.bf16.gmra.mxu2 %v6323_v10  ;;  %v6331_v19 = vor.u32 %v6617_v43, %v6330_v30 }
 0x73e   : > { %v4064_v26 = vpop.f32.mrf.mxu1 }
 0x73f   : > { %v4335_v1 = vpop.f32.mrf.mxu3  ;;  %v4065_v41 = vadd.f32 %v4064_v26, %v9546_v15  ;;  %v6614_v15 = vld [vmem:[%s9864_s6 + $0x4d4] sm:$0xf] }
 0x740   : > { %v4336_v2 = vadd.f32 %v4335_v1, %v4281_v8  ;;  %v4286_v16 = vpop.f32.mrf.mxu2  ;;  %v6327_v51 = vor.u32 %v6614_v15, %v6324_v53  ;;  %v6247_v1 = vld [vmem:[%s9864_s6 + $0x470] sm:$0xf] }
 0x741   : > { %v4095_v12 = vmul.f32 %v9399_v24, %v4065_v41 }
 0x742   : > { %v4367_v4 = vmul.f32 %v9418_v3, %v4336_v2  ;;  %v9650_v52 = vpop.f32.mrf.mxu0  ;;  %v6603_v2 = vld [vmem:[%s9864_s6 + $0x474] sm:$0xf0] }
 0x743   : > { %v4113_v23 = vadd.f32 %v4095_v12, %v9280_v32  ;;  %v6228_v32 = vor.u32 %v6596_v36, %v6225_v34  ;;  %v6338_v34 = vld [vmem:[%s9864_s6 + $0x4f0] sm:$0xf] }
 0x744   : > { %v9635_v50 = vadd.f32 %v4367_v4, %v4112_v22  ;;  %v6332_v22 = vld [vmem:[%s9864_s6 + $0x4e8] sm:$0xf0] }
 0x745   : > { %4563 = vmatmul.bf16.gmra.mxu0 %v6240_v45 }
 0x746   : > { %v4067_v28 = vpop.f32.mrf.mxu1 }
 0x747   : > { %v4337_v37 = vpop.f32.mrf.mxu3  ;;  %v4068_v57 = vadd.f32 %v4067_v28, %v9566_v0 }
 0x748   : > { %v4338_v8 = vadd.f32 %v4337_v37, %v4283_v63  ;;  %v4288_v18 = vpop.f32.mrf.mxu2 }
 0x749   : > { %v4096_v42 = vmul.f32 %v9399_v24, %v4068_v57  ;;  %6258 = vmatmul.msk.bf16.gmra.mxu1 %vm2581_vm1, %v6228_v32 }
 0x74a   : > { %v4368_v47 = vmul.f32 %v9418_v3, %v4338_v8  ;;  %v9672_v11 = vpop.f32.mrf.mxu0 }
 0x74b   : > { %v4114_v13 = vadd.f32 %v4096_v42, %v9289_v14  ;;  %v6233_v14 = vld [vmem:[%s9864_s6 + $0x458] sm:$0xf0]  ;;  %v6600_v42 = vld [vmem:[%s9864_s6 + $0x464] sm:$0xf] }
 0x74c   : > { %v9668_v46 = vadd.f32 %v4368_v47, %v4113_v23  ;;  %6357 = vmatmul.msk.bf16.gmra.mxu3 %vm2581_vm1, %v6327_v51  ;;  %v6236_v41 = vor.u32 %v6598_v20, %v6233_v14  ;;  %v6619_v23 = vld [vmem:[%s9864_s6 + $0x4f4] sm:$0xf0] }
 0x74d   : > { %4831 = vmatmul.bf16.gmra.mxu2 %v6331_v19  ;;  %v6339_v37 = vor.u32 %v6619_v23, %v6338_v34  ;;  %v6602_v23 = vld [vmem:[%s9864_s6 + $0x474] sm:$0xf] }
 0x74e   : > { %v4069_v35 = vpop.f32.mrf.mxu1 }
 0x74f   : > { %v4340_v58 = vpop.f32.mrf.mxu3  ;;  %v4070_v31 = vadd.f32 %v4069_v35, %v9588_v38  ;;  %v6616_v38 = vld [vmem:[%s9864_s6 + $0x4e4] sm:$0xf] }
 0x750   : > { %v4341_v0 = vadd.f32 %v4340_v58, %v4286_v16  ;;  %v4291_v60 = vpop.f32.mrf.mxu2  ;;  %v6335_v36 = vor.u32 %v6616_v38, %v6332_v22 }
 0x751   : > { %v4097_v48 = vmul.f32 %v9399_v24, %v4070_v31 }
 0x752   : > { %v4369_v33 = vmul.f32 %v9418_v3, %v4341_v0  ;;  %v9698_v4 = vpop.f32.mrf.mxu0 }
 0x753   : > { %v4115_v10 = vadd.f32 %v4097_v48, %v9322_v39  ;;  %v6248_v39 = vor.u32 %v6603_v2, %v6247_v1 }
 0x754   : > { %v9677_v63 = vadd.f32 %v4369_v33, %v4114_v13  ;;  %v6340_v13 = vld [vmem:[%s9864_s6 + $0x4f8] sm:$0xf0] }
 0x755   : > { %4568 = vmatmul.bf16.gmra.mxu0 %v6248_v39 }
 0x756   : > { %v4072_v12 = vpop.f32.mrf.mxu1 }
 0x757   : > { %v4342_v26 = vpop.f32.mrf.mxu3  ;;  %v4073_v15 = vadd.f32 %v4072_v12, %v9608_v61 }
 0x758   : > { %v4343_v16 = vadd.f32 %v4342_v26, %v4288_v18  ;;  %v4293_v6 = vpop.f32.mrf.mxu2 }
 0x759   : > { %v4098_v5 = vmul.f32 %v9399_v24, %v4073_v15  ;;  %6259 = vmatmul.msk.bf16.gmra.mxu1 %vm2581_vm1, %v6236_v41 }
 0x75a   : > { %v4370_v53 = vmul.f32 %v9418_v3, %v4343_v16  ;;  %v4531_v30 = vpop.f32.mrf.mxu0 }
 0x75b   : > { %v4116_v45 = vadd.f32 %v4098_v5, %v9331_v9  ;;  %v6241_v9 = vld [vmem:[%s9864_s6 + $0x468] sm:$0xf0] }
 0x75c   : > { %v9710_v32 = vadd.f32 %v4370_v53, %v4115_v10  ;;  %6358 = vmatmul.msk.bf16.gmra.mxu3 %vm2581_vm1, %v6335_v36  ;;  %v6244_v0 = vor.u32 %v6600_v42, %v6241_v9  ;;  %v9773_v42 = vld [vmem:[%s9865_s7 + $0x7] ss:$0 sm:$0xff] }
 0x75d   : > { %4836 = vmatmul.bf16.gmra.mxu2 %v6339_v37 }
 0x75e   : > { %v4074_v51 = vpop.f32.mrf.mxu1 }
 0x75f   : > { %v4345_v8 = vpop.f32.mrf.mxu3  ;;  %v4075_v61 = vadd.f32 %v4074_v51, %v9630_v62  ;;  %v6618_v62 = vld [vmem:[%s9864_s6 + $0x4f4] sm:$0xf] }
 0x760   : > { %v4346_v28 = vadd.f32 %v4345_v8, %v4291_v60  ;;  %v4296_v57 = vpop.f32.mrf.mxu2  ;;  %v6343_v33 = vor.u32 %v6618_v62, %v6340_v13  ;;  %v6346_v60 = vld [vmem:[%s9864_s6 + $0x500] sm:$0xf]  ;;  %v9778_v62 = vld [vmem:[%s9865_s7 + $0x8] ss:$0 sm:$0xff] }
 0x761   : > { %v4099_v47 = vmul.f32 %v9399_v24, %v4075_v61 }
 0x762   : > { %v4371_v43 = vmul.f32 %v9418_v3, %v4346_v28  ;;  %v4534_v22 = vpop.f32.mrf.mxu0 }
 0x763   : > { %v4117_v19 = vadd.f32 %v4099_v47, %v9364_v44  ;;  %v6621_v44 = vld [vmem:[%s9864_s6 + $0x504] sm:$0xf0] }
 0x764   : > { %v9717_v18 = vadd.f32 %v4371_v43, %v4116_v45  ;;  %v6347_v38 = vor.u32 %v6621_v44, %v6346_v60 }
 0x766   : > { %v4077_v31 = vpop.f32.mrf.mxu1 }
 0x767   : > { %v4347_v58 = vpop.f32.mrf.mxu3  ;;  %v4078_v48 = vadd.f32 %v4077_v31, %v9650_v52 }
 0x768   : > { %v4348_v35 = vadd.f32 %v4347_v58, %v4293_v6  ;;  %v4298_v14 = vpop.f32.mrf.mxu2 }
 0x769   : > { %v4100_v10 = vmul.f32 %v9399_v24, %v4078_v48  ;;  %6260 = vmatmul.msk.bf16.gmra.mxu1 %vm2581_vm1, %v6244_v0 }
 0x76a   : > { %v4372_v20 = vmul.f32 %v9418_v3, %v4348_v35  ;;  %v4536_v53 = vpop.f32.mrf.mxu0 }
 0x76b   : > { %v4118_v2 = vadd.f32 %v4100_v10, %v9373_v49  ;;  %v6249_v49 = vld [vmem:[%s9864_s6 + $0x478] sm:$0xf0] }
 0x76c   : > { %v9742_v1 = vadd.f32 %v4372_v20, %v4117_v19  ;;  %6359 = vmatmul.msk.bf16.gmra.mxu3 %vm2581_vm1, %v6343_v33  ;;  %v6252_v5 = vor.u32 %v6602_v23, %v6249_v49 }
 0x76d   : > { %4841 = vmatmul.bf16.gmra.mxu2 %v6347_v38 }
 0x76e   : > { %v4079_v39 = vpop.f32.mrf.mxu1 }
 0x76f   : > { %v4350_v26 = vpop.f32.mrf.mxu3  ;;  %v4080_v52 = vadd.f32 %v4079_v39, %v9672_v11  ;;  %v6620_v11 = vld [vmem:[%s9864_s6 + $0x504] sm:$0xf] }
 0x770   : > { %v4351_v41 = vadd.f32 %v4350_v26, %v4296_v57  ;;  %v4802_v12 = vpop.f32.mrf.mxu2 }
 0x771   : > { %v4101_v36 = vmul.f32 %v9399_v24, %v4080_v52  ;;  %v6348_v24 = vld [vmem:[%s9864_s6 + $0x508] sm:$0xf0] }
 0x772   : > { %v4373_v16 = vmul.f32 %v9418_v3, %v4351_v41  ;;  %v6351_v8 = vor.u32 %v6620_v11, %v6348_v24  ;;  %v4539_v43 = vpop.f32.mrf.mxu0 }
 0x773   : > { %v4119_v15 = vadd.f32 %v4101_v36, %v9411_v27 }
 0x774   : > { %v9749_v34 = vadd.f32 %v4373_v16, %v4118_v2 }
 0x776   : > { %v4583_v45 = vpop.f32.mrf.mxu1 }
 0x777   : > { %v4352_v6 = vpop.f32.mrf.mxu3  ;;  %v4584_v47 = vadd.f32 %v4583_v45, %v9698_v4 }
 0x778   : > { %v4353_v37 = vadd.f32 %v4352_v6, %v4298_v14  ;;  %v4804_v51 = vpop.f32.mrf.mxu2 }
 0x779   : > { %6261 = vmatmul.msk.bf16.gmra.mxu1 %vm2581_vm1, %v6252_v5  ;;  %v4630_v13 = vmul.f32 %v9773_v42, %v4584_v47 }
 0x77a   : > { %v4374_v28 = vmul.f32 %v9418_v3, %v4353_v37  ;;  %v4541_v33 = vpop.f32.mrf.mxu0 }
 0x77c   : > { %v9766_v27 = vadd.f32 %v4374_v28, %v4119_v15  ;;  %6360 = vmatmul.msk.bf16.gmra.mxu3 %vm2581_vm1, %v6351_v8 }
 0x77e   : > { %v4585_v57 = vpop.f32.mrf.mxu1 }
 0x77f   : > { %v4856_v61 = vpop.f32.mrf.mxu3  ;;  %v4586_v9 = vadd.f32 %v4585_v57, %v4531_v30  ;;  %v4648_v30 = vadd.f32 %v4630_v13, %v9425_v29 }
 0x780   : > { %v4807_v3 = vpop.f32.mrf.mxu2  ;;  %v4857_v19 = vadd.f32 %v4856_v61, %v4802_v12 }
 0x781   : > { %v4631_v58 = vmul.f32 %v9773_v42, %v4586_v9 }
 0x782   : > { %v4903_v4 = vmul.f32 %v9778_v62, %v4857_v19  ;;  %v4544_v39 = vpop.f32.mrf.mxu0 }
 0x783   : > { %v4649_v60 = vadd.f32 %v4631_v58, %v9458_v7 }
 0x784   : > { %v4921_v20 = vadd.f32 %v4903_v4, %v4648_v30 }
 0x786   : > { %v4588_v31 = vpop.f32.mrf.mxu1 }
 0x787   : > { %v4858_v0 = vpop.f32.mrf.mxu3  ;;  %v4589_v26 = vadd.f32 %v4588_v31, %v4534_v22 }
 0x788   : > { %v4859_v35 = vadd.f32 %v4858_v0, %v4804_v51  ;;  %v4809_v48 = vpop.f32.mrf.mxu2 }
 0x789   : > { %v4632_v52 = vmul.f32 %v9773_v42, %v4589_v26 }
 0x78a   : > { %v4904_v44 = vmul.f32 %v9778_v62, %v4859_v35  ;;  %v4546_v5 = vpop.f32.mrf.mxu0 }
 0x78b   : > { %v4650_v15 = vadd.f32 %v4632_v52, %v9467_v21 }
 0x78c   : > { %v4922_v14 = vadd.f32 %v4904_v44, %v4649_v60 }
 0x78e   : > { %v6625_v10 = vpack.c.bf16 %v4922_v14, %v4921_v20  ;;  %v4590_v2 = vpop.f32.mrf.mxu1 }
 0x78f   : > { %v4861_v38 = vpop.f32.mrf.mxu3  ;;  %v4591_v41 = vadd.f32 %v4590_v2, %v4536_v53 }
 0x790   : > { %6626 = vst [vmem:[%s9790_s25] sm:$0xff] %v6625_v10   ;;  %v4812_v29 = vpop.f32.mrf.mxu2  ;;  %v4862_v7 = vadd.f32 %v4861_v38, %v4807_v3 }
 0x791   : > { %v4633_v16 = vmul.f32 %v9773_v42, %v4591_v41 }
 0x792   : > { %v4905_v36 = vmul.f32 %v9778_v62, %v4862_v7  ;;  %v4549_v9 = vpop.f32.mrf.mxu0 }
 0x793   : > { %v4651_v11 = vadd.f32 %v4633_v16, %v9500_v54 }
 0x794   : > { %v4923_v53 = vadd.f32 %v4905_v36, %v4650_v15 }
 0x796   : > { %v4593_v49 = vpop.f32.mrf.mxu1 }
 0x797   : > { %v4863_v12 = vpop.f32.mrf.mxu3  ;;  %v4594_v28 = vadd.f32 %v4593_v49, %v4539_v43 }
 0x798   : > { %v4864_v23 = vadd.f32 %v4863_v12, %v4809_v48  ;;  %v4814_v24 = vpop.f32.mrf.mxu2 }
 0x799   : > { %v4634_v47 = vmul.f32 %v9773_v42, %v4594_v28 }
 0x79a   : > { %v4906_v22 = vmul.f32 %v9778_v62, %v4864_v23  ;;  %v4551_v44 = vpop.f32.mrf.mxu0 }
 0x79b   : > { %v4652_v58 = vadd.f32 %v4634_v47, %v9509_v59 }
 0x79c   : > { %v4924_v6 = vadd.f32 %v4906_v22, %v4651_v11 }
 0x79e   : > { %v6630_v37 = vpack.c.bf16 %v4924_v6, %v4923_v53  ;;  %v4595_v8 = vpop.f32.mrf.mxu1 }
 0x79f   : > { %v4866_v45 = vpop.f32.mrf.mxu3  ;;  %v4596_v51 = vadd.f32 %v4595_v8, %v4541_v33 }
 0x7a0   : > { %6667 = vst [vmem:[%s9790_s25 + $0x8] sm:$0xff] %v6630_v37   ;;  %v4817_v61 = vpop.f32.mrf.mxu2  ;;  %v4867_v57 = vadd.f32 %v4866_v45, %v4812_v29 }
 0x7a1   : > { %v4635_v21 = vmul.f32 %v9773_v42, %v4596_v51 }
 0x7a2   : > { %v4907_v3 = vmul.f32 %v9778_v62, %v4867_v57  ;;  %v4554_v16 = vpop.f32.mrf.mxu0 }
 0x7a3   : > { %v4653_v0 = vadd.f32 %v4635_v21, %v9542_v55 }
 0x7a4   : > { %v4925_v35 = vadd.f32 %v4907_v3, %v4652_v58 }
 0x7a6   : > { %v4598_v13 = vpop.f32.mrf.mxu1 }
 0x7a7   : > { %v4868_v54 = vpop.f32.mrf.mxu3  ;;  %v4599_v48 = vadd.f32 %v4598_v13, %v4544_v39 }
 0x7a8   : > { %v4869_v19 = vadd.f32 %v4868_v54, %v4814_v24  ;;  %v4819_v4 = vpop.f32.mrf.mxu2 }
 0x7a9   : > { %v4636_v38 = vmul.f32 %v9773_v42, %v4599_v48 }
 0x7aa   : > { %v4908_v43 = vmul.f32 %v9778_v62, %v4869_v19  ;;  %v4556_v6 = vpop.f32.mrf.mxu0 }
 0x7ab   : > { %v4654_v29 = vadd.f32 %v4636_v38, %v9551_v56 }
 0x7ac   : > { %v4926_v31 = vadd.f32 %v4908_v43, %v4653_v0 }
 0x7ae   : > { %v6635_v33 = vpack.c.bf16 %v4926_v31, %v4925_v35  ;;  %v4600_v60 = vpop.f32.mrf.mxu1 }
 0x7af   : > { %v4871_v30 = vpop.f32.mrf.mxu3  ;;  %v4601_v20 = vadd.f32 %v4600_v60, %v4546_v5 }
 0x7b0   : > { %6668 = vst [vmem:[%s9790_s25 + $0x10] sm:$0xff] %v6635_v33   ;;  %v4822_v14 = vpop.f32.mrf.mxu2  ;;  %v4872_v10 = vadd.f32 %v4871_v30, %v4817_v61 }
 0x7b1   : > { %v4637_v59 = vmul.f32 %v9773_v42, %v4601_v20 }
 0x7b2   : > { %v4909_v2 = vmul.f32 %v9778_v62, %v4872_v10  ;;  %v4559_v3 = vpop.f32.mrf.mxu0 }
 0x7b3   : > { %v4655_v7 = vadd.f32 %v4637_v59, %v9584_v17 }
 0x7b4   : > { %v4927_v12 = vadd.f32 %v4909_v2, %v4654_v29 }
 0x7b6   : > { %v4603_v41 = vpop.f32.mrf.mxu1 }
 0x7b7   : > { %v4873_v55 = vpop.f32.mrf.mxu3  ;;  %v4604_v11 = vadd.f32 %v4603_v41, %v4549_v9 }
 0x7b8   : > { %v4874_v26 = vadd.f32 %v4873_v55, %v4819_v4  ;;  %v4824_v39 = vpop.f32.mrf.mxu2 }
 0x7b9   : > { %v4638_v56 = vmul.f32 %v9773_v42, %v4604_v11 }
 0x7ba   : > { %v4910_v52 = vmul.f32 %v9778_v62, %v4874_v26  ;;  %v4561_v30 = vpop.f32.mrf.mxu0 }
 0x7bb   : > { %v4656_v28 = vadd.f32 %v4638_v56, %v9593_v40 }
 0x7bc   : > { %v4928_v36 = vadd.f32 %v4910_v52, %v4655_v7 }
 0x7be   : > { %v6640_v23 = vpack.c.bf16 %v4928_v36, %v4927_v12  ;;  %v4605_v15 = vpop.f32.mrf.mxu1 }
 0x7bf   : > { %v4876_v49 = vpop.f32.mrf.mxu3  ;;  %v4606_v22 = vadd.f32 %v4605_v15, %v4551_v44 }
 0x7c0   : > { %6669 = vst [vmem:[%s9790_s25 + $0x18] sm:$0xff] %v6640_v23   ;;  %v4827_v24 = vpop.f32.mrf.mxu2  ;;  %v4877_v53 = vadd.f32 %v4876_v49, %v4822_v14 }
 0x7c1   : > { %v4639_v17 = vmul.f32 %v9773_v42, %v4606_v22 }
 0x7c2   : > { %v4911_v37 = vmul.f32 %v9778_v62, %v4877_v53  ;;  %v4564_v41 = vpop.f32.mrf.mxu0 }
 0x7c3   : > { %v4657_v51 = vadd.f32 %v4639_v17, %v9626_v25 }
 0x7c4   : > { %v4929_v47 = vadd.f32 %v4911_v37, %v4656_v28 }
 0x7c6   : > { %v4608_v8 = vpop.f32.mrf.mxu1 }
 0x7c7   : > { %v4878_v5 = vpop.f32.mrf.mxu3  ;;  %v4609_v13 = vadd.f32 %v4608_v8, %v4554_v16 }
 0x7c8   : > { %v4879_v45 = vadd.f32 %v4878_v5, %v4824_v39  ;;  %v4829_v57 = vpop.f32.mrf.mxu2 }
 0x7c9   : > { %v4640_v4 = vmul.f32 %v9773_v42, %v4609_v13 }
 0x7ca   : > { %v4912_v61 = vmul.f32 %v9778_v62, %v4879_v45  ;;  %v4566_v22 = vpop.f32.mrf.mxu0 }
 0x7cb   : > { %v4658_v60 = vadd.f32 %v4640_v4, %v9635_v50 }
 0x7cc   : > { %v4930_v21 = vadd.f32 %v4912_v61, %v4657_v51 }
 0x7ce   : > { %v6645_v54 = vpack.c.bf16 %v4930_v21, %v4929_v47  ;;  %v4610_v19 = vpop.f32.mrf.mxu1 }
 0x7cf   : > { %v4881_v9 = vpop.f32.mrf.mxu3  ;;  %v4611_v58 = vadd.f32 %v4610_v19, %v4556_v6 }
 0x7d0   : > { %6670 = vst [vmem:[%s9790_s25 + $0x20] sm:$0xff] %v6645_v54   ;;  %v4882_v0 = vadd.f32 %v4881_v9, %v4827_v24  ;;  %v4832_v43 = vpop.f32.mrf.mxu2 }
 0x7d1   : > { %v4641_v40 = vmul.f32 %v9773_v42, %v4611_v58 }
 0x7d2   : > { %v4913_v35 = vmul.f32 %v9778_v62, %v4882_v0 }
 0x7d3   : > { %v4659_v44 = vadd.f32 %v4641_v40, %v9668_v46 }
 0x7d4   : > { %v4931_v20 = vadd.f32 %v4913_v35, %v4658_v60 }
 0x7d6   : > { %v4613_v33 = vpop.f32.mrf.mxu1 }
 0x7d7   : > { %v4883_v25 = vpop.f32.mrf.mxu3  ;;  %v4614_v2 = vadd.f32 %v4613_v33, %v4559_v3 }
 0x7d8   : > { %v4884_v31 = vadd.f32 %v4883_v25, %v4829_v57  ;;  %v4834_v59 = vpop.f32.mrf.mxu2 }
 0x7d9   : > { %v4642_v7 = vmul.f32 %v9773_v42, %v4614_v2 }
 0x7da   : > { %v4914_v48 = vmul.f32 %v9778_v62, %v4884_v31 }
 0x7db   : > { %v4660_v36 = vadd.f32 %v4642_v7, %v9677_v63 }
 0x7dc   : > { %v4932_v14 = vadd.f32 %v4914_v48, %v4659_v44 }
 0x7de   : > { %v6650_v10 = vpack.c.bf16 %v4932_v14, %v4931_v20  ;;  %v4615_v55 = vpop.f32.mrf.mxu1 }
 0x7df   : > { %v4886_v38 = vpop.f32.mrf.mxu3  ;;  %v4616_v26 = vadd.f32 %v4615_v55, %v4561_v30 }
 0x7e0   : > { %6671 = vst [vmem:[%s9790_s25 + $0x28] sm:$0xff] %v6650_v10   ;;  %v4887_v29 = vadd.f32 %v4886_v38, %v4832_v43  ;;  %v4837_v12 = vpop.f32.mrf.mxu2 }
 0x7e1   : > { %v4643_v50 = vmul.f32 %v9773_v42, %v4616_v26 }
 0x7e2   : > { %v4915_v46 = vmul.f32 %v9778_v62, %v4887_v29 }
 0x7e3   : > { %v4661_v23 = vadd.f32 %v4643_v50, %v9710_v32  ;;  %v4569_v32 = vpop.f32.mrf.mxu0 }
 0x7e4   : > { %v4933_v15 = vadd.f32 %v4915_v46, %v4660_v36 }
 0x7e6   : > { %v4618_v16 = vpop.f32.mrf.mxu1 }
 0x7e7   : > { %v4888_v52 = vpop.f32.mrf.mxu3  ;;  %v4619_v56 = vadd.f32 %v4618_v16, %v4564_v41 }
 0x7e8   : > { %v4889_v39 = vadd.f32 %v4888_v52, %v4834_v59  ;;  %v4839_v5 = vpop.f32.mrf.mxu2 }
 0x7e9   : > { %v4644_v45 = vmul.f32 %v9773_v42, %v4619_v56 }
 0x7ea   : > { %v4916_v49 = vmul.f32 %v9778_v62, %v4889_v39 }
 0x7eb   : > { %v4662_v57 = vadd.f32 %v4644_v45, %v9717_v18  ;;  %v4571_v0 = vpop.f32.mrf.mxu0 }
 0x7ec   : > { %v4934_v11 = vadd.f32 %v4916_v49, %v4661_v23 }
 0x7ee   : > { %v6655_v24 = vpack.c.bf16 %v4934_v11, %v4933_v15  ;;  %v4620_v6 = vpop.f32.mrf.mxu1 }
 0x7ef   : > { %v4891_v53 = vpop.f32.mrf.mxu3  ;;  %v4621_v17 = vadd.f32 %v4620_v6, %v4566_v22 }
 0x7f0   : > { %6672 = vst [vmem:[%s9790_s25 + $0x30] sm:$0xff] %v6655_v24   ;;  %v4892_v37 = vadd.f32 %v4891_v53, %v4837_v12  ;;  %v4842_v3 = vpop.f32.mrf.mxu2 }
 0x7f1   : > { %v4645_v63 = vmul.f32 %v9773_v42, %v4621_v17 }
 0x7f2   : > { %v4917_v28 = vmul.f32 %v9778_v62, %v4892_v37 }
 0x7f3   : > { %v4663_v47 = vadd.f32 %v4645_v63, %v9742_v1 }
 0x7f4   : > { %v4935_v54 = vadd.f32 %v4917_v28, %v4662_v57 }
 0x7f6   : > { %v4623_v61 = vpop.f32.mrf.mxu1 }
 0x7f7   : > { %v4893_v8 = vpop.f32.mrf.mxu3  ;;  %v4624_v43 = vadd.f32 %v4623_v61, %v4569_v32 }
 0x7f8   : > { %v4894_v51 = vadd.f32 %v4893_v8, %v4839_v5  ;;  %v4844_v35 = vpop.f32.mrf.mxu2 }
 0x7f9   : > { %v4646_v25 = vmul.f32 %v9773_v42, %v4624_v43 }
 0x7fa   : > { %v4918_v21 = vmul.f32 %v9778_v62, %v4894_v51 }
 0x7fb   : > { %v4664_v30 = vadd.f32 %v4646_v25, %v9749_v34 }
 0x7fc   : > { %v4936_v9 = vadd.f32 %v4918_v21, %v4663_v47 }
 0x7fe   : > { %v6660_v19 = vpack.c.bf16 %v4936_v9, %v4935_v54  ;;  %v4625_v58 = vpop.f32.mrf.mxu1 }
 0x7ff   : > { %v4896_v13 = vpop.f32.mrf.mxu3  ;;  %v4626_v4 = vadd.f32 %v4625_v58, %v4571_v0 }
 0x800   : > { %6673 = vst [vmem:[%s9790_s25 + $0x38] sm:$0xff] %v6660_v19   ;;  %v4897_v40 = vadd.f32 %v4896_v13, %v4842_v3 }
 0x801   : > { %v4647_v18 = vmul.f32 %v9773_v42, %v4626_v4 }
 0x802   : > { %v4919_v31 = vmul.f32 %v9778_v62, %v4897_v40 }
 0x803   : > { %v4665_v60 = vadd.f32 %v4647_v18, %v9766_v27 }
 0x804   : > { %v4937_v48 = vadd.f32 %v4919_v31, %v4664_v30 }
 0x807   : > { %v4898_v1 = vpop.f32.mrf.mxu3 }
 0x808   : > { %v4899_v33 = vadd.f32 %v4898_v1, %v4844_v35 }
 0x80a   : > { %v4920_v44 = vmul.f32 %v9778_v62, %v4899_v33 }
 0x80c   : > { %v4938_v20 = vadd.f32 %v4920_v44, %v4665_v60 }
 0x80e   : > { %v6665_v14 = vpack.c.bf16 %v4938_v20, %v4937_v48 }
 0x810   : > { %6674 = vst [vmem:[%s9790_s25 + $0x40] sm:$0xff] %v6665_v14  }
 0x811 PF: > { %s19_s11 = sadd.s32 1, %s6881_s11   ;;  %s9868_s30 = smov %s6877_s10 }
 0x812   : > { %p16_p5 = scmp.ge.s32.totalorder %s19_s11, 4   ;;  %s9869_s10 = smov %s9871_s12 }
 0x814   :  { %18 = sbr.rel (!%p16_p5) target bundleno = 2 (0x2), region = 111 }

</bundles_post_ra>
